<compile_context>
chip_gen: v6e
topology: v6e:2x2x1
jax: 0.10.0
libtpu: 0.0.40
codegen_flags: <defaults>
</compile_context>

<pallas_src>
import functools

import numpy as np

import jax
import jax.numpy as jnp
from jax import lax
from jax.experimental import pallas as pl
from jax.experimental.pallas import tpu as pltpu


def _wave_block_kernel(x_ref, widx_ref,
                       wstack_ref, bstack_ref, mh_ref, mw_ref,
                       wr1_ref, br1_ref, wr2_ref, br2_ref,
                       wproj_ref, bproj_ref,
                       wm1_ref, bm1_ref, wm2_ref, bm2_ref,
                       out_ref, *, C, H, W):
    """One batch element per grid step; activations are (C, H*W) lane-dense slabs."""
    N = H * W
    f32 = jnp.float32
    bf16 = jnp.bfloat16

    x = x_ref[0].astype(f32)                       # (C, N)
    w_idx = widx_ref[...]                          # (1, N) int32: w coordinate per lane

    # ---- norm1 + {theta_h, theta_w, fc_h, fc_w, fc_c}: ONE stacked matmul ----
    z = jnp.dot(wstack_ref[...], x.astype(bf16),
                preferred_element_type=f32) + bstack_ref[...]              # (5C, N)
    theta_h = jnp.maximum(z[0 * C:1 * C], 0.0)     # ReLU(BN(conv(.)))  (BN folded)
    theta_w = jnp.maximum(z[1 * C:2 * C], 0.0)
    x_h = z[2 * C:3 * C]
    x_w = z[3 * C:4 * C]
    c_br = z[4 * C:5 * C]

    # ---- phase modulation ----------------------------------------------------
    cat_h = jnp.concatenate([x_h * jnp.cos(theta_h), x_h * jnp.sin(theta_h)], axis=0)
    cat_w = jnp.concatenate([x_w * jnp.cos(theta_w), x_w * jnp.sin(theta_w)], axis=0)

    # ---- token FC: depthwise (1,7)/(7,1) grouped convs as ONE matmul each ----
    # Shifts along the flattened H*W lane axis (zero fill at the image border,
    # row-boundary masks for the width taps).  No padded scratch buffers.
    def shift_flat(t, s):
        rows = t.shape[0]
        if s == 0:
            return t
        if s > 0:
            return jnp.concatenate([t[:, s:], jnp.zeros((rows, s), t.dtype)], axis=1)
        return jnp.concatenate([jnp.zeros((rows, -s), t.dtype), t[:, :N + s]], axis=1)

    taps_h = []
    for d in range(-3, 4):                         # horizontal taps need a row mask
        t = shift_flat(cat_h, d)
        if d != 0:
            ok = (w_idx + d >= 0) & (w_idx + d < W)
            t = jnp.where(ok, t, 0.0)
        taps_h.append(t)
    taps_h = jnp.concatenate(taps_h, axis=0)                               # (14C, N)
    taps_w = jnp.concatenate(
        [shift_flat(cat_w, d * W) for d in range(-3, 4)], axis=0)          # (14C, N)

    h_br = jnp.dot(mh_ref[...], taps_h.astype(bf16), preferred_element_type=f32)
    w_br = jnp.dot(mw_ref[...], taps_w.astype(bf16), preferred_element_type=f32)

    # ---- channel re-weighting: global pool + tiny MLP + 3-way softmax --------
    pooled = jnp.mean(h_br + w_br + c_br, axis=1, keepdims=True)           # (C, 1)
    r1 = jnp.dot(wr1_ref[...], pooled, preferred_element_type=f32) + br1_ref[...]
    r1 = jnp.where(r1 >= 0, r1, 0.3 * r1)          # LeakyReLU(0.3)
    r2 = jnp.dot(wr2_ref[...], r1, preferred_element_type=f32) + br2_ref[...]  # (3C, 1)
    e_h, e_w, e_c = r2[0:C], r2[C:2 * C], r2[2 * C:3 * C]
    m = jnp.maximum(jnp.maximum(e_h, e_w), e_c)
    p_h = jnp.exp(e_h - m)
    p_w = jnp.exp(e_w - m)
    p_c = jnp.exp(e_c - m)
    inv = 1.0 / (p_h + p_w + p_c)
    mix = h_br * (p_h * inv) + w_br * (p_w * inv) + c_br * (p_c * inv)     # (C, N)

    attn = jnp.dot(wproj_ref[...], mix.astype(bf16),
                   preferred_element_type=f32) + bproj_ref[...]
    x_res = x + attn                               # residual 1

    # ---- norm2 (folded into fc1) + channel MLP --------------------------------
    u = jnp.dot(wm1_ref[...], x_res.astype(bf16),
                preferred_element_type=f32) + bm1_ref[...]                 # (4C, N)
    u = jnp.where(u >= 0, u, 0.3 * u)              # LeakyReLU(0.3)
    v = jnp.dot(wm2_ref[...], u.astype(bf16),
                preferred_element_type=f32) + bm2_ref[...]                 # (C, N)

    out_ref[0] = (x_res + v).astype(out_ref.dtype)  # residual 2, lane-dense store


def wave_block_pallas(x, p):
    """x: (B, C, H, W) float32; p: dict of WaveBlock parameters (see __main__)."""
    B, C, H, W = x.shape
    N = H * W
    eps = 1e-5
    f32 = jnp.float32
    bf16 = jnp.bfloat16
    rhid = p['rw1_w'].shape[0]

    # ---- fold inference-mode BatchNorms into neighbouring linear ops ---------
    def bn_fold(g, b, rm, rv):
        s = g / jnp.sqrt(rv + eps)
        return s, b - rm * s

    s1, t1 = bn_fold(p['bn1_g'], p['bn1_b'], p['bn1_rm'], p['bn1_rv'])
    sbh, tbh = bn_fold(p['thh_bn_g'], p['thh_bn_b'], p['thh_bn_rm'], p['thh_bn_rv'])
    sbw, tbw = bn_fold(p['thw_bn_g'], p['thw_bn_b'], p['thw_bn_rm'], p['thw_bn_rv'])
    s2, t2 = bn_fold(p['bn2_g'], p['bn2_b'], p['bn2_rm'], p['bn2_rv'])

    # theta branches: BN-after-1x1-conv folded into the conv.
    w_th = p['thh_w'] * sbh[:, None]
    b_th = p['thh_b'] * sbh + tbh
    w_tw = p['thw_w'] * sbw[:, None]
    b_tw = p['thw_b'] * sbw + tbw

    # Stack the five 1x1 convs that consume norm1(x); fold norm1 on the input side.
    w_stack_raw = jnp.concatenate(
        [w_th, w_tw, p['fch_w'], p['fcw_w'], p['fcc_w']], axis=0)          # (5C, C)
    b_stack_raw = jnp.concatenate(
        [b_th, b_tw, jnp.zeros((3 * C,), f32)], axis=0)                    # (5C,)
    w_stack = w_stack_raw * s1[None, :]
    b_stack = b_stack_raw + w_stack_raw @ t1

    # Depthwise (groups=C) token-FC convs -> dense (C, 14C) im2col weights.
    # taps row index = k*2C + (2g + j)  <->  tap k of concat channel 2g+j.
    eye = jnp.eye(C, dtype=f32)

    def dw_dense(wt_gjk):                                                  # (C, 2, 7)
        t = jnp.einsum('gjk,gc->gkcj', wt_gjk, eye)                        # (C, 7, C, 2)
        return t.reshape(C, 7 * 2 * C)

    m_h = dw_dense(p['tfch_w'][:, :, 0, :])
    m_w = dw_dense(p['tfcw_w'][:, :, :, 0])

    # reweight MLP layer 2: permute outputs so the kernel sees [h | w | c] blocks
    # instead of the interleaved (channel, 3) ordering of the PyTorch reshape.
    w_r2 = p['rw2_w'].reshape(C, 3, rhid).transpose(1, 0, 2).reshape(3 * C, rhid)
    b_r2 = p['rw2_b'].reshape(C, 3).transpose(1, 0).reshape(3 * C)

    # channel MLP: fold norm2 into fc1.
    w_m1 = p['mlp_w1'] * s2[None, :]
    b_m1 = p['mlp_b1'] + p['mlp_w1'] @ t2

    col = lambda v: jnp.reshape(v, (-1, 1)).astype(f32)
    w_lane_idx = jnp.asarray((np.arange(N) % W).reshape(1, N), dtype=jnp.int32)

    inputs = (
        x.reshape(B, C, N).astype(f32),        # activations, lane axis = H*W
        w_lane_idx,                            # w coordinate of every lane
        w_stack.astype(bf16), col(b_stack),
        m_h.astype(bf16), m_w.astype(bf16),
        p['rw1_w'].astype(f32), col(p['rw1_b']),
        w_r2.astype(f32), col(b_r2),
        p['proj_w'].astype(bf16), col(p['proj_b']),
        w_m1.astype(bf16), col(b_m1),
        p['mlp_w2'].astype(bf16), col(p['mlp_b2']),
    )

    def _rep(a):  # parameter blocks: same (whole-array) block every grid step
        return pl.BlockSpec(a.shape, lambda b: (0, 0))

    in_specs = [pl.BlockSpec((1, C, N), lambda b: (b, 0, 0))]
    in_specs += [_rep(a) for a in inputs[1:]]

    out = pl.pallas_call(
        functools.partial(_wave_block_kernel, C=C, H=H, W=W),
        out_shape=jax.ShapeDtypeStruct((B, C, N), f32),
        grid_spec=pltpu.PrefetchScalarGridSpec(
            num_scalar_prefetch=0,
            grid=(B,),
            in_specs=in_specs,
            out_specs=pl.BlockSpec((1, C, N), lambda b: (b, 0, 0)),
        ),
        compiler_params=pltpu.CompilerParams(
            dimension_semantics=("parallel",)),
    )(*inputs)

    return out.reshape(B, C, H, W)


def wave_block_reference(x, p):
    """Plain-JAX reference with the same semantics, for verification."""
    eps = 1e-5
    B, C, H, W = x.shape

    def bn(t, g, b, rm, rv):
        s = g / jnp.sqrt(rv + eps)
        return t * s.reshape(1, -1, 1, 1) + (b - rm * s).reshape(1, -1, 1, 1)

    def c1x1(t, w, b=None):
        y = jnp.einsum('oc,bchw->bohw', w, t)
        if b is not None:
            y = y + b.reshape(1, -1, 1, 1)
        return y

    lrelu = lambda t: jnp.where(t >= 0, t, 0.3 * t)

    y = bn(x, p['bn1_g'], p['bn1_b'], p['bn1_rm'], p['bn1_rv'])

    theta_h = jax.nn.relu(bn(c1x1(y, p['thh_w'], p['thh_b']),
                             p['thh_bn_g'], p['thh_bn_b'],
                             p['thh_bn_rm'], p['thh_bn_rv']))
    theta_w = jax.nn.relu(bn(c1x1(y, p['thw_w'], p['thw_b']),
                             p['thw_bn_g'], p['thw_bn_b'],
                             p['thw_bn_rm'], p['thw_bn_rv']))
    x_h = c1x1(y, p['fch_w'])
    x_w = c1x1(y, p['fcw_w'])
    c_b = c1x1(y, p['fcc_w'])

    cat_h = jnp.concatenate([x_h * jnp.cos(theta_h), x_h * jnp.sin(theta_h)], axis=1)
    cat_w = jnp.concatenate([x_w * jnp.cos(theta_w), x_w * jnp.sin(theta_w)], axis=1)

    dn = ('NCHW', 'OIHW', 'NCHW')
    h_b = lax.conv_general_dilated(cat_h, p['tfch_w'], (1, 1), ((0, 0), (3, 3)),
                                   dimension_numbers=dn, feature_group_count=C)
    w_b = lax.conv_general_dilated(cat_w, p['tfcw_w'], (1, 1), ((3, 3), (0, 0)),
                                   dimension_numbers=dn, feature_group_count=C)

    pooled = jnp.mean(h_b + w_b + c_b, axis=(2, 3))            # (B, C)
    r1 = lrelu(pooled @ p['rw1_w'].T + p['rw1_b'])
    r2 = r1 @ p['rw2_w'].T + p['rw2_b']                        # (B, 3C)
    a = jax.nn.softmax(r2.reshape(B, C, 3), axis=-1)
    a0 = a[..., 0][:, :, None, None]
    a1 = a[..., 1][:, :, None, None]
    a2 = a[..., 2][:, :, None, None]

    attn = c1x1(h_b * a0 + w_b * a1 + c_b * a2, p['proj_w'], p['proj_b'])
    x2 = x + attn

    z2 = bn(x2, p['bn2_g'], p['bn2_b'], p['bn2_rm'], p['bn2_rv'])
    u = lrelu(c1x1(z2, p['mlp_w1'], p['mlp_b1']))
    v = c1x1(u, p['mlp_w2'], p['mlp_b2'])
    return x2 + v


if __name__ == "__main__":
    B, C, H, W = 2, 16, 16, 16     # dim = 16, mlp_ratio = 4
    hidden = 4 * C
    rhid = C // 4

    _key = [jax.random.PRNGKey(0)]

    def _rand(shape, scale=0.1, base=0.0):
        _key[0], sub = jax.random.split(_key[0])
        return base + scale * jax.random.normal(sub, shape, dtype=jnp.float32)

    def _randu(shape, lo, hi):
        _key[0], sub = jax.random.split(_key[0])
        return jax.random.uniform(sub, shape, dtype=jnp.float32, minval=lo, maxval=hi)

    def _bn(prefix):
        return {
            prefix + '_g': _rand((C,), 0.1, 1.0),
            prefix + '_b': _rand((C,)),
            prefix + '_rm': _rand((C,)),
            prefix + '_rv': _randu((C,), 0.5, 1.5),
        }

    params = {}
    params.update(_bn('bn1'))
    params['thh_w'] = _rand((C, C))
    params['thh_b'] = _rand((C,))
    params.update(_bn('thh_bn'))
    params['thw_w'] = _rand((C, C))
    params['thw_b'] = _rand((C,))
    params.update(_bn('thw_bn'))
    params['fch_w'] = _rand((C, C))
    params['fcw_w'] = _rand((C, C))
    params['fcc_w'] = _rand((C, C))
    params['tfch_w'] = _rand((C, 2, 1, 7))
    params['tfcw_w'] = _rand((C, 2, 7, 1))
    params['rw1_w'] = _rand((rhid, C))
    params['rw1_b'] = _rand((rhid,))
    params['rw2_w'] = _rand((3 * C, rhid))
    params['rw2_b'] = _rand((3 * C,))
    params['proj_w'] = _rand((C, C))
    params['proj_b'] = _rand((C,))
    params.update(_bn('bn2'))
    params['mlp_w1'] = _rand((hidden, C))
    params['mlp_b1'] = _rand((hidden,))
    params['mlp_w2'] = _rand((C, hidden))
    params['mlp_b2'] = _rand((C,))

    x = _rand((B, C, H, W), 1.0)

    out = wave_block_pallas(x, params)
    out = jax.block_until_ready(out)

    ref = wave_block_reference(x, params)
    ref = jax.block_until_ready(ref)

    assert out.shape == (B, C, H, W)
    max_err = float(jnp.max(jnp.abs(out - ref)))
    # bf16 MXU operands (f32 accumulation) => loose tolerance vs the f32 reference
    assert jnp.allclose(out, ref, atol=5e-2, rtol=5e-2), max_err
    print("KERNEL_OK")
</pallas_src>

<mosaic_0001>
module attributes {stable_mosaic.version = 11 : i64} {
  func.func @_wave_block_kernel(%arg0: i32, %arg1: memref<1x16x256xf32, #tpu.memory_space<vmem>>, %arg2: memref<1x256xi32, #tpu.memory_space<vmem>>, %arg3: memref<80x16xbf16, #tpu.memory_space<vmem>>, %arg4: memref<80x1xf32, #tpu.memory_space<vmem>>, %arg5: memref<16x224xbf16, #tpu.memory_space<vmem>>, %arg6: memref<16x224xbf16, #tpu.memory_space<vmem>>, %arg7: memref<4x16xf32, #tpu.memory_space<vmem>>, %arg8: memref<4x1xf32, #tpu.memory_space<vmem>>, %arg9: memref<48x4xf32, #tpu.memory_space<vmem>>, %arg10: memref<48x1xf32, #tpu.memory_space<vmem>>, %arg11: memref<16x16xbf16, #tpu.memory_space<vmem>>, %arg12: memref<16x1xf32, #tpu.memory_space<vmem>>, %arg13: memref<64x16xbf16, #tpu.memory_space<vmem>>, %arg14: memref<64x1xf32, #tpu.memory_space<vmem>>, %arg15: memref<16x64xbf16, #tpu.memory_space<vmem>>, %arg16: memref<16x1xf32, #tpu.memory_space<vmem>>, %arg17: memref<1x16x256xf32, #tpu.memory_space<vmem>>) attributes {dimension_semantics = [#tpu.dimension_semantics<parallel>], iteration_bounds = array<i64: 2>, scalar_prefetch = 0 : i64, scratch_operands = 0 : i64, tpu.core_type = #tpu.core_type<tc>, window_params = [{transform_indices = @transform_0, window_bounds = array<i64: 1, 16, 256>}, {pipeline_mode = #tpu.pipeline_mode<synchronous>, transform_indices = @transform_1, window_bounds = array<i64: 1, 256>}, {pipeline_mode = #tpu.pipeline_mode<synchronous>, transform_indices = @transform_2, window_bounds = array<i64: 80, 16>}, {pipeline_mode = #tpu.pipeline_mode<synchronous>, transform_indices = @transform_3, window_bounds = array<i64: 80, 1>}, {pipeline_mode = #tpu.pipeline_mode<synchronous>, transform_indices = @transform_4, window_bounds = array<i64: 16, 224>}, {pipeline_mode = #tpu.pipeline_mode<synchronous>, transform_indices = @transform_5, window_bounds = array<i64: 16, 224>}, {pipeline_mode = #tpu.pipeline_mode<synchronous>, transform_indices = @transform_6, window_bounds = array<i64: 4, 16>}, {pipeline_mode = #tpu.pipeline_mode<synchronous>, transform_indices = @transform_7, window_bounds = array<i64: 4, 1>}, {pipeline_mode = #tpu.pipeline_mode<synchronous>, transform_indices = @transform_8, window_bounds = array<i64: 48, 4>}, {pipeline_mode = #tpu.pipeline_mode<synchronous>, transform_indices = @transform_9, window_bounds = array<i64: 48, 1>}, {pipeline_mode = #tpu.pipeline_mode<synchronous>, transform_indices = @transform_10, window_bounds = array<i64: 16, 16>}, {pipeline_mode = #tpu.pipeline_mode<synchronous>, transform_indices = @transform_11, window_bounds = array<i64: 16, 1>}, {pipeline_mode = #tpu.pipeline_mode<synchronous>, transform_indices = @transform_12, window_bounds = array<i64: 64, 16>}, {pipeline_mode = #tpu.pipeline_mode<synchronous>, transform_indices = @transform_13, window_bounds = array<i64: 64, 1>}, {pipeline_mode = #tpu.pipeline_mode<synchronous>, transform_indices = @transform_14, window_bounds = array<i64: 16, 64>}, {pipeline_mode = #tpu.pipeline_mode<synchronous>, transform_indices = @transform_15, window_bounds = array<i64: 16, 1>}, {transform_indices = @transform_16, window_bounds = array<i64: 1, 16, 256>}]} {
    %c0 = arith.constant 0 : index
    %c0_0 = arith.constant 0 : index
    %c0_1 = arith.constant 0 : index
    %0 = vector.load %arg1[%c0, %c0_0, %c0_1] : memref<1x16x256xf32, #tpu.memory_space<vmem>>, vector<1x16x256xf32>
    %1 = vector.shape_cast %0 : vector<1x16x256xf32> to vector<16x256xf32>
    %c0_2 = arith.constant 0 : index
    %c0_3 = arith.constant 0 : index
    %2 = vector.load %arg2[%c0_2, %c0_3] : memref<1x256xi32, #tpu.memory_space<vmem>>, vector<1x256xi32>
    %c0_4 = arith.constant 0 : index
    %c0_5 = arith.constant 0 : index
    %3 = vector.load %arg3[%c0_4, %c0_5] : memref<80x16xbf16, #tpu.memory_space<vmem>>, vector<80x16xbf16>
    %4 = arith.truncf %1 : vector<16x256xf32> to vector<16x256xbf16>
    %cst = arith.constant dense<0.000000e+00> : vector<80x256xf32>
    %5 = tpu.matmul %3, %4, %cst {dimension_numbers = #tpu.dot_dimension_numbers<[1], [0], [0], [1], [0, 0, 1, 1], [], []>} : vector<80x16xbf16>, vector<16x256xbf16>, vector<80x256xf32> -> vector<80x256xf32>
    %c0_6 = arith.constant 0 : index
    %c0_7 = arith.constant 0 : index
    %6 = vector.load %arg4[%c0_6, %c0_7] : memref<80x1xf32, #tpu.memory_space<vmem>>, vector<80x1xf32>
    %7 = vector.broadcast %6 : vector<80x1xf32> to vector<80x256xf32>
    %8 = arith.addf %5, %7 : vector<80x256xf32>
    %9 = vector.extract_strided_slice %8 {offsets = [0, 0], sizes = [16, 256], strides = [1, 1]} : vector<80x256xf32> to vector<16x256xf32>
    %cst_8 = arith.constant 0.000000e+00 : f32
    %10 = vector.broadcast %cst_8 : f32 to vector<16x256xf32>
    %11 = arith.maximumf %9, %10 : vector<16x256xf32>
    %12 = vector.extract_strided_slice %8 {offsets = [16, 0], sizes = [16, 256], strides = [1, 1]} : vector<80x256xf32> to vector<16x256xf32>
    %cst_9 = arith.constant 0.000000e+00 : f32
    %13 = vector.broadcast %cst_9 : f32 to vector<16x256xf32>
    %14 = arith.maximumf %12, %13 : vector<16x256xf32>
    %15 = vector.extract_strided_slice %8 {offsets = [32, 0], sizes = [16, 256], strides = [1, 1]} : vector<80x256xf32> to vector<16x256xf32>
    %16 = vector.extract_strided_slice %8 {offsets = [48, 0], sizes = [16, 256], strides = [1, 1]} : vector<80x256xf32> to vector<16x256xf32>
    %17 = vector.extract_strided_slice %8 {offsets = [64, 0], sizes = [16, 256], strides = [1, 1]} : vector<80x256xf32> to vector<16x256xf32>
    %18 = math.cos %11 : vector<16x256xf32>
    %19 = arith.mulf %15, %18 : vector<16x256xf32>
    %20 = math.sin %11 : vector<16x256xf32>
    %21 = arith.mulf %15, %20 : vector<16x256xf32>
    %22 = tpu.concatenate %19, %21 in 0 : vector<16x256xf32>, vector<16x256xf32> -> vector<32x256xf32>
    %23 = math.cos %14 : vector<16x256xf32>
    %24 = arith.mulf %16, %23 : vector<16x256xf32>
    %25 = math.sin %14 : vector<16x256xf32>
    %26 = arith.mulf %16, %25 : vector<16x256xf32>
    %27 = tpu.concatenate %24, %26 in 0 : vector<16x256xf32>, vector<16x256xf32> -> vector<32x256xf32>
    %cst_10 = arith.constant 0.000000e+00 : f32
    %28 = vector.broadcast %cst_10 : f32 to vector<32x3xf32>
    %29 = vector.extract_strided_slice %22 {offsets = [0, 0], sizes = [32, 253], strides = [1, 1]} : vector<32x256xf32> to vector<32x253xf32>
    %30 = tpu.concatenate %28, %29 in 1 : vector<32x3xf32>, vector<32x253xf32> -> vector<32x256xf32>
    %c-3_i32 = arith.constant -3 : i32
    %31 = vector.broadcast %c-3_i32 : i32 to vector<1x256xi32>
    %32 = arith.addi %2, %31 : vector<1x256xi32>
    %c0_i32 = arith.constant 0 : i32
    %33 = vector.broadcast %c0_i32 : i32 to vector<1x256xi32>
    %34 = arith.cmpi sge, %32, %33 : vector<1x256xi32>
    %c-3_i32_11 = arith.constant -3 : i32
    %35 = vector.broadcast %c-3_i32_11 : i32 to vector<1x256xi32>
    %36 = arith.addi %2, %35 : vector<1x256xi32>
    %c16_i32 = arith.constant 16 : i32
    %37 = vector.broadcast %c16_i32 : i32 to vector<1x256xi32>
    %38 = arith.cmpi slt, %36, %37 : vector<1x256xi32>
    %39 = arith.andi %34, %38 : vector<1x256xi1>
    %cst_12 = arith.constant 0.000000e+00 : f32
    %40 = vector.shape_cast %39 : vector<1x256xi1> to vector<1x256xi1>
    %41 = vector.broadcast %40 : vector<1x256xi1> to vector<32x256xi1>
    %42 = vector.broadcast %cst_12 : f32 to vector<32x256xf32>
    %43 = arith.select %41, %30, %42 : vector<32x256xi1>, vector<32x256xf32>
    %cst_13 = arith.constant 0.000000e+00 : f32
    %44 = vector.broadcast %cst_13 : f32 to vector<32x2xf32>
    %45 = vector.extract_strided_slice %22 {offsets = [0, 0], sizes = [32, 254], strides = [1, 1]} : vector<32x256xf32> to vector<32x254xf32>
    %46 = tpu.concatenate %44, %45 in 1 : vector<32x2xf32>, vector<32x254xf32> -> vector<32x256xf32>
    %c-2_i32 = arith.constant -2 : i32
    %47 = vector.broadcast %c-2_i32 : i32 to vector<1x256xi32>
    %48 = arith.addi %2, %47 : vector<1x256xi32>
    %c0_i32_14 = arith.constant 0 : i32
    %49 = vector.broadcast %c0_i32_14 : i32 to vector<1x256xi32>
    %50 = arith.cmpi sge, %48, %49 : vector<1x256xi32>
    %c-2_i32_15 = arith.constant -2 : i32
    %51 = vector.broadcast %c-2_i32_15 : i32 to vector<1x256xi32>
    %52 = arith.addi %2, %51 : vector<1x256xi32>
    %c16_i32_16 = arith.constant 16 : i32
    %53 = vector.broadcast %c16_i32_16 : i32 to vector<1x256xi32>
    %54 = arith.cmpi slt, %52, %53 : vector<1x256xi32>
    %55 = arith.andi %50, %54 : vector<1x256xi1>
    %cst_17 = arith.constant 0.000000e+00 : f32
    %56 = vector.shape_cast %55 : vector<1x256xi1> to vector<1x256xi1>
    %57 = vector.broadcast %56 : vector<1x256xi1> to vector<32x256xi1>
    %58 = vector.broadcast %cst_17 : f32 to vector<32x256xf32>
    %59 = arith.select %57, %46, %58 : vector<32x256xi1>, vector<32x256xf32>
    %cst_18 = arith.constant 0.000000e+00 : f32
    %60 = vector.broadcast %cst_18 : f32 to vector<32x1xf32>
    %61 = vector.extract_strided_slice %22 {offsets = [0, 0], sizes = [32, 255], strides = [1, 1]} : vector<32x256xf32> to vector<32x255xf32>
    %62 = tpu.concatenate %60, %61 in 1 : vector<32x1xf32>, vector<32x255xf32> -> vector<32x256xf32>
    %c-1_i32 = arith.constant -1 : i32
    %63 = vector.broadcast %c-1_i32 : i32 to vector<1x256xi32>
    %64 = arith.addi %2, %63 : vector<1x256xi32>
    %c0_i32_19 = arith.constant 0 : i32
    %65 = vector.broadcast %c0_i32_19 : i32 to vector<1x256xi32>
    %66 = arith.cmpi sge, %64, %65 : vector<1x256xi32>
    %c-1_i32_20 = arith.constant -1 : i32
    %67 = vector.broadcast %c-1_i32_20 : i32 to vector<1x256xi32>
    %68 = arith.addi %2, %67 : vector<1x256xi32>
    %c16_i32_21 = arith.constant 16 : i32
    %69 = vector.broadcast %c16_i32_21 : i32 to vector<1x256xi32>
    %70 = arith.cmpi slt, %68, %69 : vector<1x256xi32>
    %71 = arith.andi %66, %70 : vector<1x256xi1>
    %cst_22 = arith.constant 0.000000e+00 : f32
    %72 = vector.shape_cast %71 : vector<1x256xi1> to vector<1x256xi1>
    %73 = vector.broadcast %72 : vector<1x256xi1> to vector<32x256xi1>
    %74 = vector.broadcast %cst_22 : f32 to vector<32x256xf32>
    %75 = arith.select %73, %62, %74 : vector<32x256xi1>, vector<32x256xf32>
    %76 = vector.extract_strided_slice %22 {offsets = [0, 1], sizes = [32, 255], strides = [1, 1]} : vector<32x256xf32> to vector<32x255xf32>
    %cst_23 = arith.constant 0.000000e+00 : f32
    %77 = vector.broadcast %cst_23 : f32 to vector<32x1xf32>
    %78 = tpu.concatenate %76, %77 in 1 : vector<32x255xf32>, vector<32x1xf32> -> vector<32x256xf32>
    %c1_i32 = arith.constant 1 : i32
    %79 = vector.broadcast %c1_i32 : i32 to vector<1x256xi32>
    %80 = arith.addi %2, %79 : vector<1x256xi32>
    %c0_i32_24 = arith.constant 0 : i32
    %81 = vector.broadcast %c0_i32_24 : i32 to vector<1x256xi32>
    %82 = arith.cmpi sge, %80, %81 : vector<1x256xi32>
    %c1_i32_25 = arith.constant 1 : i32
    %83 = vector.broadcast %c1_i32_25 : i32 to vector<1x256xi32>
    %84 = arith.addi %2, %83 : vector<1x256xi32>
    %c16_i32_26 = arith.constant 16 : i32
    %85 = vector.broadcast %c16_i32_26 : i32 to vector<1x256xi32>
    %86 = arith.cmpi slt, %84, %85 : vector<1x256xi32>
    %87 = arith.andi %82, %86 : vector<1x256xi1>
    %cst_27 = arith.constant 0.000000e+00 : f32
    %88 = vector.shape_cast %87 : vector<1x256xi1> to vector<1x256xi1>
    %89 = vector.broadcast %88 : vector<1x256xi1> to vector<32x256xi1>
    %90 = vector.broadcast %cst_27 : f32 to vector<32x256xf32>
    %91 = arith.select %89, %78, %90 : vector<32x256xi1>, vector<32x256xf32>
    %92 = vector.extract_strided_slice %22 {offsets = [0, 2], sizes = [32, 254], strides = [1, 1]} : vector<32x256xf32> to vector<32x254xf32>
    %cst_28 = arith.constant 0.000000e+00 : f32
    %93 = vector.broadcast %cst_28 : f32 to vector<32x2xf32>
    %94 = tpu.concatenate %92, %93 in 1 : vector<32x254xf32>, vector<32x2xf32> -> vector<32x256xf32>
    %c2_i32 = arith.constant 2 : i32
    %95 = vector.broadcast %c2_i32 : i32 to vector<1x256xi32>
    %96 = arith.addi %2, %95 : vector<1x256xi32>
    %c0_i32_29 = arith.constant 0 : i32
    %97 = vector.broadcast %c0_i32_29 : i32 to vector<1x256xi32>
    %98 = arith.cmpi sge, %96, %97 : vector<1x256xi32>
    %c2_i32_30 = arith.constant 2 : i32
    %99 = vector.broadcast %c2_i32_30 : i32 to vector<1x256xi32>
    %100 = arith.addi %2, %99 : vector<1x256xi32>
    %c16_i32_31 = arith.constant 16 : i32
    %101 = vector.broadcast %c16_i32_31 : i32 to vector<1x256xi32>
    %102 = arith.cmpi slt, %100, %101 : vector<1x256xi32>
    %103 = arith.andi %98, %102 : vector<1x256xi1>
    %cst_32 = arith.constant 0.000000e+00 : f32
    %104 = vector.shape_cast %103 : vector<1x256xi1> to vector<1x256xi1>
    %105 = vector.broadcast %104 : vector<1x256xi1> to vector<32x256xi1>
    %106 = vector.broadcast %cst_32 : f32 to vector<32x256xf32>
    %107 = arith.select %105, %94, %106 : vector<32x256xi1>, vector<32x256xf32>
    %108 = vector.extract_strided_slice %22 {offsets = [0, 3], sizes = [32, 253], strides = [1, 1]} : vector<32x256xf32> to vector<32x253xf32>
    %cst_33 = arith.constant 0.000000e+00 : f32
    %109 = vector.broadcast %cst_33 : f32 to vector<32x3xf32>
    %110 = tpu.concatenate %108, %109 in 1 : vector<32x253xf32>, vector<32x3xf32> -> vector<32x256xf32>
    %c3_i32 = arith.constant 3 : i32
    %111 = vector.broadcast %c3_i32 : i32 to vector<1x256xi32>
    %112 = arith.addi %2, %111 : vector<1x256xi32>
    %c0_i32_34 = arith.constant 0 : i32
    %113 = vector.broadcast %c0_i32_34 : i32 to vector<1x256xi32>
    %114 = arith.cmpi sge, %112, %113 : vector<1x256xi32>
    %c3_i32_35 = arith.constant 3 : i32
    %115 = vector.broadcast %c3_i32_35 : i32 to vector<1x256xi32>
    %116 = arith.addi %2, %115 : vector<1x256xi32>
    %c16_i32_36 = arith.constant 16 : i32
    %117 = vector.broadcast %c16_i32_36 : i32 to vector<1x256xi32>
    %118 = arith.cmpi slt, %116, %117 : vector<1x256xi32>
    %119 = arith.andi %114, %118 : vector<1x256xi1>
    %cst_37 = arith.constant 0.000000e+00 : f32
    %120 = vector.shape_cast %119 : vector<1x256xi1> to vector<1x256xi1>
    %121 = vector.broadcast %120 : vector<1x256xi1> to vector<32x256xi1>
    %122 = vector.broadcast %cst_37 : f32 to vector<32x256xf32>
    %123 = arith.select %121, %110, %122 : vector<32x256xi1>, vector<32x256xf32>
    %124 = tpu.concatenate %43, %59, %75, %22, %91, %107, %123 in 0 : vector<32x256xf32>, vector<32x256xf32>, vector<32x256xf32>, vector<32x256xf32>, vector<32x256xf32>, vector<32x256xf32>, vector<32x256xf32> -> vector<224x256xf32>
    %cst_38 = arith.constant 0.000000e+00 : f32
    %125 = vector.broadcast %cst_38 : f32 to vector<32x48xf32>
    %126 = vector.extract_strided_slice %27 {offsets = [0, 0], sizes = [32, 208], strides = [1, 1]} : vector<32x256xf32> to vector<32x208xf32>
    %127 = tpu.concatenate %125, %126 in 1 : vector<32x48xf32>, vector<32x208xf32> -> vector<32x256xf32>
    %cst_39 = arith.constant 0.000000e+00 : f32
    %128 = vector.broadcast %cst_39 : f32 to vector<32x32xf32>
    %129 = vector.extract_strided_slice %27 {offsets = [0, 0], sizes = [32, 224], strides = [1, 1]} : vector<32x256xf32> to vector<32x224xf32>
    %130 = tpu.concatenate %128, %129 in 1 : vector<32x32xf32>, vector<32x224xf32> -> vector<32x256xf32>
    %cst_40 = arith.constant 0.000000e+00 : f32
    %131 = vector.broadcast %cst_40 : f32 to vector<32x16xf32>
    %132 = vector.extract_strided_slice %27 {offsets = [0, 0], sizes = [32, 240], strides = [1, 1]} : vector<32x256xf32> to vector<32x240xf32>
    %133 = tpu.concatenate %131, %132 in 1 : vector<32x16xf32>, vector<32x240xf32> -> vector<32x256xf32>
    %134 = vector.extract_strided_slice %27 {offsets = [0, 16], sizes = [32, 240], strides = [1, 1]} : vector<32x256xf32> to vector<32x240xf32>
    %cst_41 = arith.constant 0.000000e+00 : f32
    %135 = vector.broadcast %cst_41 : f32 to vector<32x16xf32>
    %136 = tpu.concatenate %134, %135 in 1 : vector<32x240xf32>, vector<32x16xf32> -> vector<32x256xf32>
    %137 = vector.extract_strided_slice %27 {offsets = [0, 32], sizes = [32, 224], strides = [1, 1]} : vector<32x256xf32> to vector<32x224xf32>
    %cst_42 = arith.constant 0.000000e+00 : f32
    %138 = vector.broadcast %cst_42 : f32 to vector<32x32xf32>
    %139 = tpu.concatenate %137, %138 in 1 : vector<32x224xf32>, vector<32x32xf32> -> vector<32x256xf32>
    %140 = vector.extract_strided_slice %27 {offsets = [0, 48], sizes = [32, 208], strides = [1, 1]} : vector<32x256xf32> to vector<32x208xf32>
    %cst_43 = arith.constant 0.000000e+00 : f32
    %141 = vector.broadcast %cst_43 : f32 to vector<32x48xf32>
    %142 = tpu.concatenate %140, %141 in 1 : vector<32x208xf32>, vector<32x48xf32> -> vector<32x256xf32>
    %143 = tpu.concatenate %127, %130, %133, %27, %136, %139, %142 in 0 : vector<32x256xf32>, vector<32x256xf32>, vector<32x256xf32>, vector<32x256xf32>, vector<32x256xf32>, vector<32x256xf32>, vector<32x256xf32> -> vector<224x256xf32>
    %c0_44 = arith.constant 0 : index
    %c0_45 = arith.constant 0 : index
    %144 = vector.load %arg5[%c0_44, %c0_45] : memref<16x224xbf16, #tpu.memory_space<vmem>>, vector<16x224xbf16>
    %145 = arith.truncf %124 : vector<224x256xf32> to vector<224x256xbf16>
    %cst_46 = arith.constant dense<0.000000e+00> : vector<16x256xf32>
    %146 = tpu.matmul %144, %145, %cst_46 {dimension_numbers = #tpu.dot_dimension_numbers<[1], [0], [0], [1], [0, 0, 1, 1], [], []>} : vector<16x224xbf16>, vector<224x256xbf16>, vector<16x256xf32> -> vector<16x256xf32>
    %c0_47 = arith.constant 0 : index
    %c0_48 = arith.constant 0 : index
    %147 = vector.load %arg6[%c0_47, %c0_48] : memref<16x224xbf16, #tpu.memory_space<vmem>>, vector<16x224xbf16>
    %148 = arith.truncf %143 : vector<224x256xf32> to vector<224x256xbf16>
    %cst_49 = arith.constant dense<0.000000e+00> : vector<16x256xf32>
    %149 = tpu.matmul %147, %148, %cst_49 {dimension_numbers = #tpu.dot_dimension_numbers<[1], [0], [0], [1], [0, 0, 1, 1], [], []>} : vector<16x224xbf16>, vector<224x256xbf16>, vector<16x256xf32> -> vector<16x256xf32>
    %150 = arith.addf %146, %149 : vector<16x256xf32>
    %151 = arith.addf %150, %17 : vector<16x256xf32>
    %cst_50 = arith.constant dense<0.000000e+00> : vector<16xf32>
    %152 = vector.multi_reduction <add>, %151, %cst_50 [1] : vector<16x256xf32> to vector<16xf32>
    %153 = vector.shape_cast %152 : vector<16xf32> to vector<16x1xf32>
    %cst_51 = arith.constant 2.560000e+02 : f32
    %154 = vector.broadcast %cst_51 : f32 to vector<16x1xf32>
    %155 = arith.divf %153, %154 : vector<16x1xf32>
    %c0_52 = arith.constant 0 : index
    %c0_53 = arith.constant 0 : index
    %156 = vector.load %arg7[%c0_52, %c0_53] : memref<4x16xf32, #tpu.memory_space<vmem>>, vector<4x16xf32>
    %cst_54 = arith.constant dense<0.000000e+00> : vector<4x1xf32>
    %157 = tpu.matmul %156, %155, %cst_54 {dimension_numbers = #tpu.dot_dimension_numbers<[1], [0], [0], [1], [0, 0, 1, 1], [], []>} : vector<4x16xf32>, vector<16x1xf32>, vector<4x1xf32> -> vector<4x1xf32>
    %c0_55 = arith.constant 0 : index
    %c0_56 = arith.constant 0 : index
    %158 = vector.load %arg8[%c0_55, %c0_56] : memref<4x1xf32, #tpu.memory_space<vmem>>, vector<4x1xf32>
    %159 = arith.addf %157, %158 : vector<4x1xf32>
    %cst_57 = arith.constant 0.000000e+00 : f32
    %160 = vector.broadcast %cst_57 : f32 to vector<4x1xf32>
    %161 = arith.cmpf oge, %159, %160 : vector<4x1xf32>
    %cst_58 = arith.constant 3.000000e-01 : f32
    %162 = vector.broadcast %cst_58 : f32 to vector<4x1xf32>
    %163 = arith.mulf %162, %159 : vector<4x1xf32>
    %164 = arith.select %161, %159, %163 : vector<4x1xi1>, vector<4x1xf32>
    %c0_59 = arith.constant 0 : index
    %c0_60 = arith.constant 0 : index
    %165 = vector.load %arg9[%c0_59, %c0_60] : memref<48x4xf32, #tpu.memory_space<vmem>>, vector<48x4xf32>
    %cst_61 = arith.constant dense<0.000000e+00> : vector<48x1xf32>
    %166 = tpu.matmul %165, %164, %cst_61 {dimension_numbers = #tpu.dot_dimension_numbers<[1], [0], [0], [1], [0, 0, 1, 1], [], []>} : vector<48x4xf32>, vector<4x1xf32>, vector<48x1xf32> -> vector<48x1xf32>
    %c0_62 = arith.constant 0 : index
    %c0_63 = arith.constant 0 : index
    %167 = vector.load %arg10[%c0_62, %c0_63] : memref<48x1xf32, #tpu.memory_space<vmem>>, vector<48x1xf32>
    %168 = arith.addf %166, %167 : vector<48x1xf32>
    %169 = vector.extract_strided_slice %168 {offsets = [0, 0], sizes = [16, 1], strides = [1, 1]} : vector<48x1xf32> to vector<16x1xf32>
    %170 = vector.extract_strided_slice %168 {offsets = [16, 0], sizes = [16, 1], strides = [1, 1]} : vector<48x1xf32> to vector<16x1xf32>
    %171 = vector.extract_strided_slice %168 {offsets = [32, 0], sizes = [16, 1], strides = [1, 1]} : vector<48x1xf32> to vector<16x1xf32>
    %172 = arith.maximumf %169, %170 : vector<16x1xf32>
    %173 = arith.maximumf %172, %171 : vector<16x1xf32>
    %174 = arith.subf %169, %173 : vector<16x1xf32>
    %175 = math.exp %174 : vector<16x1xf32>
    %176 = arith.subf %170, %173 : vector<16x1xf32>
    %177 = math.exp %176 : vector<16x1xf32>
    %178 = arith.subf %171, %173 : vector<16x1xf32>
    %179 = math.exp %178 : vector<16x1xf32>
    %180 = arith.addf %175, %177 : vector<16x1xf32>
    %181 = arith.addf %180, %179 : vector<16x1xf32>
    %cst_64 = arith.constant 1.000000e+00 : f32
    %182 = vector.broadcast %cst_64 : f32 to vector<16x1xf32>
    %183 = arith.divf %182, %181 : vector<16x1xf32>
    %184 = arith.mulf %175, %183 : vector<16x1xf32>
    %185 = vector.broadcast %184 : vector<16x1xf32> to vector<16x256xf32>
    %186 = arith.mulf %146, %185 : vector<16x256xf32>
    %187 = arith.mulf %177, %183 : vector<16x1xf32>
    %188 = vector.broadcast %187 : vector<16x1xf32> to vector<16x256xf32>
    %189 = arith.mulf %149, %188 : vector<16x256xf32>
    %190 = arith.addf %186, %189 : vector<16x256xf32>
    %191 = arith.mulf %179, %183 : vector<16x1xf32>
    %192 = vector.broadcast %191 : vector<16x1xf32> to vector<16x256xf32>
    %193 = arith.mulf %17, %192 : vector<16x256xf32>
    %194 = arith.addf %190, %193 : vector<16x256xf32>
    %c0_65 = arith.constant 0 : index
    %c0_66 = arith.constant 0 : index
    %195 = vector.load %arg11[%c0_65, %c0_66] : memref<16x16xbf16, #tpu.memory_space<vmem>>, vector<16x16xbf16>
    %196 = arith.truncf %194 : vector<16x256xf32> to vector<16x256xbf16>
    %cst_67 = arith.constant dense<0.000000e+00> : vector<16x256xf32>
    %197 = tpu.matmul %195, %196, %cst_67 {dimension_numbers = #tpu.dot_dimension_numbers<[1], [0], [0], [1], [0, 0, 1, 1], [], []>} : vector<16x16xbf16>, vector<16x256xbf16>, vector<16x256xf32> -> vector<16x256xf32>
    %c0_68 = arith.constant 0 : index
    %c0_69 = arith.constant 0 : index
    %198 = vector.load %arg12[%c0_68, %c0_69] : memref<16x1xf32, #tpu.memory_space<vmem>>, vector<16x1xf32>
    %199 = vector.broadcast %198 : vector<16x1xf32> to vector<16x256xf32>
    %200 = arith.addf %197, %199 : vector<16x256xf32>
    %201 = arith.addf %1, %200 : vector<16x256xf32>
    %c0_70 = arith.constant 0 : index
    %c0_71 = arith.constant 0 : index
    %202 = vector.load %arg13[%c0_70, %c0_71] : memref<64x16xbf16, #tpu.memory_space<vmem>>, vector<64x16xbf16>
    %203 = arith.truncf %201 : vector<16x256xf32> to vector<16x256xbf16>
    %cst_72 = arith.constant dense<0.000000e+00> : vector<64x256xf32>
    %204 = tpu.matmul %202, %203, %cst_72 {dimension_numbers = #tpu.dot_dimension_numbers<[1], [0], [0], [1], [0, 0, 1, 1], [], []>} : vector<64x16xbf16>, vector<16x256xbf16>, vector<64x256xf32> -> vector<64x256xf32>
    %c0_73 = arith.constant 0 : index
    %c0_74 = arith.constant 0 : index
    %205 = vector.load %arg14[%c0_73, %c0_74] : memref<64x1xf32, #tpu.memory_space<vmem>>, vector<64x1xf32>
    %206 = vector.broadcast %205 : vector<64x1xf32> to vector<64x256xf32>
    %207 = arith.addf %204, %206 : vector<64x256xf32>
    %cst_75 = arith.constant 0.000000e+00 : f32
    %208 = vector.broadcast %cst_75 : f32 to vector<64x256xf32>
    %209 = arith.cmpf oge, %207, %208 : vector<64x256xf32>
    %cst_76 = arith.constant 3.000000e-01 : f32
    %210 = vector.broadcast %cst_76 : f32 to vector<64x256xf32>
    %211 = arith.mulf %210, %207 : vector<64x256xf32>
    %212 = arith.select %209, %207, %211 : vector<64x256xi1>, vector<64x256xf32>
    %c0_77 = arith.constant 0 : index
    %c0_78 = arith.constant 0 : index
    %213 = vector.load %arg15[%c0_77, %c0_78] : memref<16x64xbf16, #tpu.memory_space<vmem>>, vector<16x64xbf16>
    %214 = arith.truncf %212 : vector<64x256xf32> to vector<64x256xbf16>
    %cst_79 = arith.constant dense<0.000000e+00> : vector<16x256xf32>
    %215 = tpu.matmul %213, %214, %cst_79 {dimension_numbers = #tpu.dot_dimension_numbers<[1], [0], [0], [1], [0, 0, 1, 1], [], []>} : vector<16x64xbf16>, vector<64x256xbf16>, vector<16x256xf32> -> vector<16x256xf32>
    %c0_80 = arith.constant 0 : index
    %c0_81 = arith.constant 0 : index
    %216 = vector.load %arg16[%c0_80, %c0_81] : memref<16x1xf32, #tpu.memory_space<vmem>>, vector<16x1xf32>
    %217 = vector.broadcast %216 : vector<16x1xf32> to vector<16x256xf32>
    %218 = arith.addf %215, %217 : vector<16x256xf32>
    %219 = arith.addf %201, %218 : vector<16x256xf32>
    %c0_82 = arith.constant 0 : index
    %c0_83 = arith.constant 0 : index
    %c0_84 = arith.constant 0 : index
    %220 = vector.load %arg17[%c0_82, %c0_83, %c0_84] : memref<1x16x256xf32, #tpu.memory_space<vmem>>, vector<1x16x256xf32>
    %221 = vector.shape_cast %220 : vector<1x16x256xf32> to vector<16x256xf32>
    %222 = vector.shape_cast %219 : vector<16x256xf32> to vector<1x16x256xf32>
    tpu.vector_store %arg17[%c0_82, %c0_83, %c0_84], %222 {strides = array<i32>} : memref<1x16x256xf32, #tpu.memory_space<vmem>>, vector<1x16x256xf32>,
    return
  }
  func.func @transform_0(%arg0: i32) -> (i32, i32, i32) {
    %c0_i32 = arith.constant 0 : i32
    %c0_i32_0 = arith.constant 0 : i32
    %c0_i32_1 = arith.constant 0 : i32
    return %arg0, %c0_i32, %c0_i32_0 : i32, i32, i32
  }
  func.func @transform_1(%arg0: i32) -> (i32, i32) {
    %c0_i32 = arith.constant 0 : i32
    %c0_i32_0 = arith.constant 0 : i32
    %c0_i32_1 = arith.constant 0 : i32
    return %c0_i32, %c0_i32_0 : i32, i32
  }
  func.func @transform_2(%arg0: i32) -> (i32, i32) {
    %c0_i32 = arith.constant 0 : i32
    %c0_i32_0 = arith.constant 0 : i32
    %c0_i32_1 = arith.constant 0 : i32
    return %c0_i32, %c0_i32_0 : i32, i32
  }
  func.func @transform_3(%arg0: i32) -> (i32, i32) {
    %c0_i32 = arith.constant 0 : i32
    %c0_i32_0 = arith.constant 0 : i32
    %c0_i32_1 = arith.constant 0 : i32
    return %c0_i32, %c0_i32_0 : i32, i32
  }
  func.func @transform_4(%arg0: i32) -> (i32, i32) {
    %c0_i32 = arith.constant 0 : i32
    %c0_i32_0 = arith.constant 0 : i32
    %c0_i32_1 = arith.constant 0 : i32
    return %c0_i32, %c0_i32_0 : i32, i32
  }
  func.func @transform_5(%arg0: i32) -> (i32, i32) {
    %c0_i32 = arith.constant 0 : i32
    %c0_i32_0 = arith.constant 0 : i32
    %c0_i32_1 = arith.constant 0 : i32
    return %c0_i32, %c0_i32_0 : i32, i32
  }
  func.func @transform_6(%arg0: i32) -> (i32, i32) {
    %c0_i32 = arith.constant 0 : i32
    %c0_i32_0 = arith.constant 0 : i32
    %c0_i32_1 = arith.constant 0 : i32
    return %c0_i32, %c0_i32_0 : i32, i32
  }
  func.func @transform_7(%arg0: i32) -> (i32, i32) {
    %c0_i32 = arith.constant 0 : i32
    %c0_i32_0 = arith.constant 0 : i32
    %c0_i32_1 = arith.constant 0 : i32
    return %c0_i32, %c0_i32_0 : i32, i32
  }
  func.func @transform_8(%arg0: i32) -> (i32, i32) {
    %c0_i32 = arith.constant 0 : i32
    %c0_i32_0 = arith.constant 0 : i32
    %c0_i32_1 = arith.constant 0 : i32
    return %c0_i32, %c0_i32_0 : i32, i32
  }
  func.func @transform_9(%arg0: i32) -> (i32, i32) {
    %c0_i32 = arith.constant 0 : i32
    %c0_i32_0 = arith.constant 0 : i32
    %c0_i32_1 = arith.constant 0 : i32
    return %c0_i32, %c0_i32_0 : i32, i32
  }
  func.func @transform_10(%arg0: i32) -> (i32, i32) {
    %c0_i32 = arith.constant 0 : i32
    %c0_i32_0 = arith.constant 0 : i32
    %c0_i32_1 = arith.constant 0 : i32
    return %c0_i32, %c0_i32_0 : i32, i32
  }
  func.func @transform_11(%arg0: i32) -> (i32, i32) {
    %c0_i32 = arith.constant 0 : i32
    %c0_i32_0 = arith.constant 0 : i32
    %c0_i32_1 = arith.constant 0 : i32
    return %c0_i32, %c0_i32_0 : i32, i32
  }
  func.func @transform_12(%arg0: i32) -> (i32, i32) {
    %c0_i32 = arith.constant 0 : i32
    %c0_i32_0 = arith.constant 0 : i32
    %c0_i32_1 = arith.constant 0 : i32
    return %c0_i32, %c0_i32_0 : i32, i32
  }
  func.func @transform_13(%arg0: i32) -> (i32, i32) {
    %c0_i32 = arith.constant 0 : i32
    %c0_i32_0 = arith.constant 0 : i32
    %c0_i32_1 = arith.constant 0 : i32
    return %c0_i32, %c0_i32_0 : i32, i32
  }
  func.func @transform_14(%arg0: i32) -> (i32, i32) {
    %c0_i32 = arith.constant 0 : i32
    %c0_i32_0 = arith.constant 0 : i32
    %c0_i32_1 = arith.constant 0 : i32
    return %c0_i32, %c0_i32_0 : i32, i32
  }
  func.func @transform_15(%arg0: i32) -> (i32, i32) {
    %c0_i32 = arith.constant 0 : i32
    %c0_i32_0 = arith.constant 0 : i32
    %c0_i32_1 = arith.constant 0 : i32
    return %c0_i32, %c0_i32_0 : i32, i32
  }
  func.func @transform_16(%arg0: i32) -> (i32, i32, i32) {
    %c0_i32 = arith.constant 0 : i32
    %c0_i32_0 = arith.constant 0 : i32
    %c0_i32_1 = arith.constant 0 : i32
    return %arg0, %c0_i32, %c0_i32_0 : i32, i32, i32
  }
}

</mosaic_0001>

<bundles_post_ra>
// kernel: tpu_custom_call.1
= control target key start
LH: loop header
LB: loop body
LE: loop exit
PB: predicated region body
PF: predicated region fallthrough
CT: control target
= control target key end

     0   :  { %s6472_s0 = inlined_call_operand.vmem [shape: f32[2,16,256], index: 0, kind: input, shape index: {}]   ;;  %s6473_s1 = inlined_call_operand.vmem [shape: s32[1,256], index: 1, kind: input, shape index: {}]   ;;  %s6474_s2 = inlined_call_operand.vmem [shape: bf16[80,16], index: 2, kind: input, shape index: {}]   ;;  %s6475_s3 = inlined_call_operand.vmem [shape: f32[80,1], index: 3, kind: input, shape index: {}]   ;;  %s6476_s4 = inlined_call_operand.vmem [shape: bf16[16,224], index: 4, kind: input, shape index: {}]   ;;  %s6477_s5 = inlined_call_operand.vmem [shape: bf16[16,224], index: 5, kind: input, shape index: {}]   ;;  %s6478_s6 = inlined_call_operand.vmem [shape: f32[4,16], index: 6, kind: input, shape index: {}]   ;;  %s6479_s7 = inlined_call_operand.vmem [shape: f32[4,1], index: 7, kind: input, shape index: {}]   ;;  %s6480_s8 = inlined_call_operand.vmem [shape: f32[48,4], index: 8, kind: input, shape index: {}]   ;;  %s6481_s9 = inlined_call_operand.vmem [shape: f32[48,1], index: 9, kind: input, shape index: {}]   ;;  %s6482_s10 = inlined_call_operand.vmem [shape: bf16[16,16], index: 10, kind: input, shape index: {}]   ;;  %s6483_s11 = inlined_call_operand.vmem [shape: f32[16,1], index: 11, kind: input, shape index: {}]   ;;  %s6484_s12 = inlined_call_operand.vmem [shape: bf16[64,16], index: 12, kind: input, shape index: {}]   ;;  %s6485_s13 = inlined_call_operand.vmem [shape: f32[64,1], index: 13, kind: input, shape index: {}]   ;;  %s6486_s14 = inlined_call_operand.vmem [shape: bf16[16,64], index: 14, kind: input, shape index: {}]   ;;  %s6487_s15 = inlined_call_operand.vmem [shape: f32[16,1], index: 15, kind: input, shape index: {}]   ;;  %s6488_s16 = inlined_call_operand.hbm [shape: f32[2,16,256], index: 16, kind: output, shape index: {}]  }
   0x1   :  { %6505 = sst [smem:[#allocation10_spill]] %s6472_s0 }
   0x2   :  { %21 = vsyncpa [#allocation3], 0 }
   0x3   :  { %23 = vsyncpa [#allocation3 + $0x1], 0  ;;  %s4708_s21 = smov 0   ;;  %s4710_s22 = smov 0  }
   0x4   :  { %s4712_s23 = smov 0   ;;  %s4714_s24 = smov 0  }
   0x5 LB: > { %6506 = sst [smem:[#allocation5_spill]] %s4586_s21  ;;  %s4729_s25 = sadd.s32 4294967295, %s4598_s24   ;;  %s4598_s24 = sphi %s4714_s24, %s6596_s24   ;;  %s4594_s23 = sphi %s4712_s23, %s6598_s23   ;;  %s4590_s22 = sphi %s4710_s22, %s6600_s22   ;;  %s4586_s21 = sphi %s4708_s21, %s6599_s21  }
   0x6   : > { %6507 = sst [smem:[#allocation6_spill]] %s4594_s23  ;;  %s3872_s26 = sadd.s32 4294967294, %s4598_s24  }
   0x7   : > { %s4733_s27 = sadd.s32 1, %s4598_s24   ;;  %s377_s28 = sadd.s32 1, %s4594_s23 }
   0x8   : > { %6508 = sst [smem:[#allocation7_spill]] %s4733_s27  ;;  %s374_s29 = ssub.s32 %s4598_s24, %s4733_s27 }
   0x9   : > { %p387_p0 = scmp.ne.s32.totalorder %s4594_s23, %s4590_s22  ;;  %p375_p1 = scmp.eq.s32.totalorder %s374_s29, 0 }
   0xa   : > { %p388_p2 = scmp.eq.s32.totalorder %s4729_s25, 1  ;;  %p393_p3 = scmp.ne.s32.totalorder %s4590_s22, %s4586_s21 }
   0xb   : > { %p394_p4 = scmp.eq.s32.totalorder %s3872_s26, 1  ;;  %p3875_p7 = scmp.ge.s32.totalorder %s4598_s24, 1 }
   0xc   : > { %s4744_s30 = scalar_select %p375_p1, %s4594_s23, %s377_s28  }
   0xd   : > { %p4746_p5 = por %p388_p2, %p387_p0  ;;  %p4750_p6 = por %p394_p4, %p393_p3 }
   0xe   : > { %6509 = sst [smem:[#allocation8_spill]] %s4744_s30  ;;  %p465_p8 = scmp.lt.s32.totalorder %s4598_s24, 3 }
   0xf   : > { %s6511_s17 = scalar_select %p4750_p6, 1, 0 }
  0x10   : > { %p466_p9 = pnand %p3875_p7, %p465_p8 }
  0x11   : > { %6512 = sst [smem:[#allocation9_spill]] %s6511_s17  ;;  %p515_p10 = scmp.lt.s32.totalorder (!%p466_p9), %s4729_s25, 1 }
  0x12   : > { %469 = sbr.rel (%p466_p9) target bundleno = 2271 (0x8df), region = 84  ;;  %s6513_s30 = sld [smem:[#allocation10_spill]] (!%p466_p9) }
  0x13   : > { %s4609_s20 = smov (!%p466_p9), 2   ;;  %s4610_s26 = smov (!%p466_p9), 126  }
  0x14   : > { %s4611_s27 = smov (!%p466_p9), 3   ;;  %s4612_s17 = smov (!%p466_p9), 127  }
  0x15   : > { %s6504_s21 = smov (!%p466_p9), 16   ;;  %s4614_s28 = smov (!%p466_p9), 32  }
  0x16   : > { %s4615_s29 = smov (!%p466_p9), 48  }
  0x17   : > { %v6494_v0 = vmov 0   ;;  %s516_s18 = scalar_select %p515_p10, %s4729_s25, 1  ;;  %v538_v1 = vld [vmem:[%s6475_s3] sm:$0xff]  ;;  %v539_v2 = vld [vmem:[%s6475_s3 + $0x8] sm:$0xff]  ;;  %v540_v3 = vld [vmem:[%s6475_s3 + $0x10] sm:$0xff]  ;;  %vm6502_vm0 = vcmask 130048  }
  0x18   : > { %671 = vmatprep.mubr.bf16.mxu0 %v6494_v0  ;;  %4227 = vset.pattern.permute.xlu0 %v6494_v0  ;;  %v4469_v9 = vld [vmem:[%s6474_s2] sm:$0xff]   ;;  %v541_v10 = vld [vmem:[%s6475_s3 + $0x18] sm:$0xff]  ;;  %v543_v13 = vld [vmem:[%s6475_s3 + $0x28] sm:$0xff]  ;;  %v4601_v57 = vmov 683565275  }
  0x19   : > { %4228 = vset.pattern.permute.xlu1 %v6494_v0  ;;  %s4104_s19 = sshll.u32 %s516_s18, 5  ;;  %550 = vperm.xlu0 %4227, %v538_v1   ;;  %v542_v12 = vld [vmem:[%s6475_s3 + $0x20] sm:$0xff]  ;;  %v544_v14 = vld [vmem:[%s6475_s3 + $0x30] sm:$0xff]  ;;  %v545_v15 = vld [vmem:[%s6475_s3 + $0x38] sm:$0xff]  ;;  %v4602_v60 = vmov 2475754826  }
  0x1a   : > { %s4767_s23 = scalar_lea.vmem %s6513_s30, %s4104_s19  ;;  %560 = vperm.xlu1 %4228, %v540_v3   ;;  %v4470_v16 = vld [vmem:[%s6474_s2 + $0x8] sm:$0xff]   ;;  %v4471_v17 = vld [vmem:[%s6474_s2 + $0x10] sm:$0xff]   ;;  %v4472_v18 = vld [vmem:[%s6474_s2 + $0x18] sm:$0xff]   ;;  %v4603_v62 = vmov 2131351028   ;;  %s4607_s30 = smov 1  }
  0x1b   : > { %v522_v4 = vld [vmem:[%s4767_s23 + $0x8] sm:$0xff]  ;;  %v524_v5 = vld [vmem:[%s4767_s23 + $0x18] sm:$0xff]  ;;  %v521_v6 = vld [vmem:[%s4767_s23] sm:$0xff]  ;;  %v4604_v1 = vmov 2102212464   ;;  %s4608_s19 = smov 125  }
  0x1c   : > { %v537_v7 = vpack.c.bf16 %v524_v5, %v522_v4  ;;  %v523_v8 = vld [vmem:[%s4767_s23 + $0x10] sm:$0xff]  ;;  %v4605_v3 = vmov 920167782   ;;  %s4616_s18 = smov 80  }
  0x1d   : > { %v536_v11 = vpack.c.bf16 %v523_v8, %v521_v6  ;;  %555 = vperm.xlu0 %4227, %v539_v2  }
  0x1e   : > { %653 = vmatprep.subr.bf16.mxu0 %v537_v7  ;;  %565 = vperm.xlu1 %4228, %v541_v10   ;;  %v4606_v10 = vmov 1326507024  }
  0x1f   : > { %654 = vmatpush1.bf16.msra.mxu0 %v536_v11 }
  0x21   : > { %570 = vperm.xlu0 %4227, %v542_v12  }
  0x22   : > { %3884 = vmatmul.mubr.msk.bf16.vlgmr.msra.gmra.mxu0 %vm6502_vm0, %v4469_v9  ;;  %575 = vperm.xlu1 %4228, %v543_v13  }
  0x23   : > { %681 = vmatprep.mubr.bf16.mxu0 %v6494_v0 }
  0x25   : > { %580 = vperm.xlu0 %4227, %v544_v14  }
  0x26   : > { %585 = vperm.xlu1 %4228, %v545_v15  }
  0x2a   : > { %3885 = vmatmul.mubr.msk.bf16.gmra.mxu0 %vm6502_vm0, %v4470_v16 }
  0x2b   : > { %691 = vmatprep.mubr.bf16.mxu0 %v6494_v0 }
  0x32   : > { %3886 = vmatmul.mubr.msk.bf16.gmra.mxu0 %vm6502_vm0, %v4471_v17 }
  0x33   : > { %701 = vmatprep.mubr.bf16.mxu0 %v6494_v0 }
  0x3a   : > { %3887 = vmatmul.mubr.msk.bf16.gmra.mxu0 %vm6502_vm0, %v4472_v18 }
  0x3b   : > { %711 = vmatprep.mubr.bf16.mxu0 %v6494_v0 }
  0x94   : > { %v551_v19 = vpop.permute.xlu0 %550 }
  0x98   : > { %v556_v26 = vpop.permute.xlu0 %555 }
  0xe2   : > { %v673_v20 = vpop.f32.mrf.mxu0 }
  0xe3   : > { %v674_v21 = vadd.f32 %v673_v20, %v551_v19 }
  0xe4   : > { %v675_v22 = vpop.f32.mrf.mxu0 }
  0xe5   : > { %v4814_v23 = vmax.f32 %v674_v21, 0.0  ;;  %v676_v24 = vadd.f32 %v675_v22, %v551_v19 }
  0xe6   : > { %v677_v25 = vpop.f32.mrf.mxu0 }
  0xe7   : > { %v730_v27 = vand.u32 2147483647, %v4814_v23  ;;  %v733_v28 = vand.u32 2139095040, %v4814_v23  ;;  %v4818_v29 = vmax.f32 %v676_v24, 0.0  ;;  %v678_v30 = vadd.f32 %v677_v25, %v556_v26 }
  0xe8   : > { %v679_v36 = vpop.f32.mrf.mxu0 }
  0xe9   : > { %v734_v31 = vshrl.u32 %v733_v28, 23  ;;  %v6501_v32 = vand.u32 2147483647, %v4818_v29  ;;  %v737_v33 = vand.u32 8388607, %v730_v27  ;;  %v836_v34 = vand.u32 2139095040, %v4818_v29 }
  0xea   : > { %v4824_v35 = vmax.f32 %v678_v30, 0.0  ;;  %v680_v42 = vadd.f32 %v679_v36, %v556_v26 }
  0xeb   : > { %v3889_v37 = vadd.s32 4294967169, %v734_v31  ;;  %v840_v38 = vand.u32 8388607, %v6501_v32  ;;  %v837_v39 = vshrl.u32 %v836_v34, 23  ;;  %v738_v43 = vor.u32 8388608, %v737_v33 }
  0xec   : > { %v939_v40 = vand.u32 2139095040, %v4824_v35  ;;  %v936_v46 = vand.u32 2147483647, %v4824_v35  ;;  %v4838_v55 = vmax.f32 %v680_v42, 0.0 }
  0xed   : > { %v740_v41 = vadd.s32 1, %v3889_v37  ;;  %v3893_v44 = vadd.s32 4294967169, %v837_v39  ;;  %v841_v45 = vor.u32 8388608, %v840_v38  ;;  %v4830_v52 = vshll.u32 %v738_v43, 8 }
  0xee   : > { %v940_v47 = vshrl.u32 %v939_v40, 23  ;;  %v4836_v54 = vand.u32 8388607, %v936_v46 }
  0xef   : > { %vm741_vm1 = vcmp.gt.s32.totalorder %v740_v41, 0  ;;  %v843_v49 = vadd.s32 1, %v3893_v44  ;;  %v4832_v53 = vshll.u32 %v841_v45, 8 }
  0xf0   : > { %v742_v48 = vsel %vm741_vm1, %v740_v41, 0  ;;  %v3897_v59 = vadd.s32 4294967169, %v940_v47 }
  0xf1   : > { %v743_v50 = vshrl.u32 %v742_v48, 5  ;;  %v744_v51 = vand.u32 31, %v742_v48  ;;  %vm844_vm2 = vcmp.gt.s32.totalorder %v843_v49, 0 }
  0xf2   : > { %v845_v15 = vsel %vm844_vm2, %v843_v49, 0  ;;  %v946_v33 = vadd.s32 1, %v3897_v59 }
  0xf3   : > { %v745_v56 = vsub.s32 32, %v744_v51  ;;  %v747_v58 = vshll.u32 %v4601_v57, %v744_v51  ;;  %v750_v61 = vshll.u32 %v4602_v60, %v744_v51  ;;  %v753_v63 = vshll.u32 %v4603_v62, %v744_v51 }
  0xf4   : > { %v756_v2 = vshll.u32 %v4604_v1, %v744_v51  ;;  %v759_v4 = vshll.u32 %v4605_v3, %v744_v51  ;;  %vm762_vm3 = vcmp.lt.s32.totalorder %v743_v50, 1  ;;  %vm764_vm4 = vcmp.lt.s32.totalorder %v743_v50, 3 }
  0xf5   : > { %v748_v5 = vshrl.u32 %v4602_v60, %v745_v56  ;;  %v751_v6 = vshrl.u32 %v4603_v62, %v745_v56  ;;  %v754_v7 = vshrl.u32 %v4604_v1, %v745_v56  ;;  %v746_v8 = vshrl.u32 %v4601_v57, %v745_v56 }
  0xf6   : > { %v757_v9 = vshrl.u32 %v4605_v3, %v745_v56  ;;  %v760_v11 = vshrl.u32 %v4606_v10, %v745_v56  ;;  %vm765_vm5 = vcmp.lt.s32.totalorder %v743_v50, 4  ;;  %v847_v18 = vand.u32 31, %v845_v15 }
  0xf7   : > { %v749_v12 = vor.u32 %v748_v5, %v747_v58  ;;  %v752_v13 = vor.u32 %v751_v6, %v750_v61  ;;  %v755_v14 = vor.u32 %v754_v7, %v753_v63  ;;  %vm763_vm6 = vcmp.lt.s32.totalorder %v743_v50, 2 }
  0xf8   : > { %v758_v16 = vor.u32 %v757_v9, %v756_v2  ;;  %v761_v17 = vor.u32 %v760_v11, %v759_v4  ;;  %v848_v28 = vsub.s32 32, %v847_v18  ;;  %v846_v38 = vshrl.u32 %v845_v15, 5 }
  0xf9   : > { %v766_v19 = vsel %vm762_vm3, %v746_v8, %v749_v12  ;;  %v767_v20 = vsel %vm765_vm5, %v755_v14, 2102212464  ;;  %v770_v21 = vsel %vm762_vm3, %v749_v12, %v752_v13  ;;  %v774_v22 = vsel %vm762_vm3, %v752_v13, %v755_v14 }
  0xfa   : > { %v768_v24 = vsel %vm764_vm4, %v752_v13, %v767_v20  ;;  %v771_v25 = vsel %vm765_vm5, %v758_v16, 920167782  ;;  %v775_v26 = vsel %vm765_vm5, %v761_v17, 1326507024  ;;  %v850_v43 = vshll.u32 %v4601_v57, %v847_v18 }
  0xfb   : > { %v772_v30 = vsel %vm764_vm4, %v755_v14, %v771_v25  ;;  %v776_v31 = vsel %vm764_vm4, %v758_v16, %v775_v26  ;;  %v769_v34 = vsel %vm763_vm6, %v766_v19, %v768_v24  ;;  %v851_v44 = vshrl.u32 %v4602_v60, %v848_v28 }
  0xfc   : > { %v773_v36 = vsel %vm763_vm6, %v770_v21, %v772_v30  ;;  %v777_v37 = vsel %vm763_vm6, %v774_v22, %v776_v31  ;;  %v853_v45 = vshll.u32 %v4602_v60, %v847_v18  ;;  %v854_v47 = vshrl.u32 %v4603_v62, %v848_v28 }
  0xfd   : > { %v4859_v39 = vmul.u32.u64.low %v4830_v52, %v777_v37  ;;  %v4860_v40 = vmul.u32.u64.high %v4830_v52, %v777_v37, %v4859_v39  ;;  %v4863_v41 = vmul.u32.u64.low %v4830_v52, %v773_v36  ;;  %v4864_v42 = vmul.u32.u64.high %v4830_v52, %v773_v36, %v4863_v41 }
  0xfe   : > { %v856_v48 = vshll.u32 %v4603_v62, %v847_v18  ;;  %v857_v49 = vshrl.u32 %v4604_v1, %v848_v28  ;;  %v859_v50 = vshll.u32 %v4604_v1, %v847_v18  ;;  %v860_v51 = vshrl.u32 %v4605_v3, %v848_v28 }
  0xff   : > { %v852_v56 = vor.u32 %v851_v44, %v850_v43  ;;  %v855_v58 = vor.u32 %v854_v47, %v853_v45  ;;  %v862_v59 = vshll.u32 %v4605_v3, %v847_v18  ;;  %v863_v61 = vshrl.u32 %v4606_v10, %v848_v28 }
 0x100   : > { %v785_v63 = vmul.u32 %v4830_v52, %v769_v34  ;;  %vm787_vm7 = vc.u32 %v4860_v40, %v4863_v41  ;;  %v788_v2 = vadd.s32 1, %v4864_v42  ;;  %v858_v4 = vor.u32 %v857_v49, %v856_v48 }
 0x101   : > { %v849_v5 = vshrl.u32 %v4601_v57, %v848_v28  ;;  %v861_v6 = vor.u32 %v860_v51, %v859_v50  ;;  %v864_v7 = vor.u32 %v863_v61, %v862_v59  ;;  %vm865_vm8 = vcmp.lt.s32.totalorder %v846_v38, 1 }
 0x102   : > { %v789_v8 = vsel %vm787_vm7, %v788_v2, %v4864_v42  ;;  %vm867_vm9 = vcmp.lt.s32.totalorder %v846_v38, 3  ;;  %vm868_vm10 = vcmp.lt.s32.totalorder %v846_v38, 4  ;;  %v873_v9 = vsel %vm865_vm8, %v852_v56, %v855_v58 }
 0x103   : > { %v790_v11 = vadd.s32 %v789_v8, %v785_v63  ;;  %v870_v12 = vsel %vm868_vm10, %v858_v4, 2102212464  ;;  %v874_v13 = vsel %vm868_vm10, %v861_v6, 920167782  ;;  %v877_v52 = vsel %vm865_vm8, %v855_v58, %v858_v4 }
 0x104   : > { %vm866_vm11 = vcmp.lt.s32.totalorder %v846_v38, 2  ;;  %v875_v14 = vsel %vm867_vm9, %v858_v4, %v874_v13  ;;  %v878_v15 = vsel %vm868_vm10, %v864_v7, 1326507024  ;;  %vm947_vm12 = vcmp.gt.s32.totalorder %v946_v33, 0 }
 0x105   : > { %v791_v16 = vadd.s32 536870912, %v790_v11  ;;  %v869_v17 = vsel %vm865_vm8, %v849_v5, %v852_v56  ;;  %v876_v18 = vsel %vm866_vm11, %v873_v9, %v875_v14  ;;  %v879_v19 = vsel %vm867_vm9, %v861_v6, %v878_v15  ;;  %v683_v14 = vpop.f32.mrf.mxu0 }
 0x106   : > { %v871_v20 = vsel %vm867_vm9, %v855_v58, %v870_v12  ;;  %v880_v21 = vsel %vm866_vm11, %v877_v52, %v879_v19  ;;  %v4886_v22 = vmul.u32.u64.low %v4832_v53, %v876_v18  ;;  %v4887_v24 = vmul.u32.u64.high %v4832_v53, %v876_v18, %v4886_v22  ;;  %v4920_v52 = vpop.permute.xlu1 %560 }
 0x107   : > { %v4890_v25 = vshrl.u32 %v791_v16, 30  ;;  %v4893_v26 = vmul.u32.u64.low %v4832_v53, %v880_v21  ;;  %v4894_v28 = vmul.u32.u64.high %v4832_v53, %v880_v21, %v4893_v26  ;;  %v948_v30 = vsel %vm947_vm12, %v946_v33, 0 }
 0x108   : > { %v950_v31 = vand.u32 31, %v948_v30  ;;  %v872_v36 = vsel %vm866_vm11, %v869_v17, %v871_v20  ;;  %v891_v37 = vadd.s32 1, %v4887_v24  ;;  %v944_v39 = vor.u32 8388608, %v4836_v54 }
 0x109   : > { %v793_v34 = vshll.u32 %v4890_v25, 30  ;;  %vm890_vm13 = vc.u32 %v4894_v28, %v4886_v22  ;;  %v1042_v45 = vand.u32 2139095040, %v4838_v55  ;;  %v888_v54 = vmul.u32 %v4832_v53, %v872_v36 }
 0x10a   : > { %v951_v42 = vsub.s32 32, %v950_v31  ;;  %v953_v43 = vshll.u32 %v4601_v57, %v950_v31  ;;  %v956_v44 = vshll.u32 %v4602_v60, %v950_v31  ;;  %v892_v47 = vsel %vm890_vm13, %v891_v37, %v4887_v24 }
 0x10b   : > { %v4905_v33 = vsub.s32 %v790_v11, %v793_v34  ;;  %v949_v49 = vshrl.u32 %v948_v30, 5  ;;  %v959_v50 = vshll.u32 %v4603_v62, %v950_v31  ;;  %v962_v59 = vshll.u32 %v4604_v1, %v950_v31 }
 0x10c   : > { %v954_v38 = vshrl.u32 %v4602_v60, %v951_v42  ;;  %v957_v48 = vshrl.u32 %v4603_v62, %v951_v42  ;;  %v960_v51 = vshrl.u32 %v4604_v1, %v951_v42  ;;  %v963_v61 = vshrl.u32 %v4605_v3, %v951_v42 }
 0x10d   : > { %v893_v63 = vadd.s32 %v892_v47, %v888_v54  ;;  %v965_v4 = vshll.u32 %v4605_v3, %v950_v31  ;;  %v966_v5 = vshrl.u32 %v4606_v10, %v951_v42  ;;  %v796_v6 = vsub.s32 0, %v4905_v33 }
 0x10e   : > { %v955_v56 = vor.u32 %v954_v38, %v953_v43  ;;  %v958_v58 = vor.u32 %v957_v48, %v956_v44  ;;  %v961_v2 = vor.u32 %v960_v51, %v959_v50  ;;  %v964_v53 = vor.u32 %v963_v61, %v962_v59 }
 0x10f   : > { %v984_v7 = vshll.u32 %v944_v39, 8  ;;  %v967_v8 = vor.u32 %v966_v5, %v965_v4  ;;  %vm968_vm14 = vcmp.lt.s32.totalorder %v949_v49, 1  ;;  %vm971_vm15 = vcmp.lt.s32.totalorder %v949_v49, 4 }
 0x110   : > { %v1043_v9 = vshrl.u32 %v1042_v45, 23  ;;  %v952_v11 = vshrl.u32 %v4601_v57, %v951_v42  ;;  %vm970_vm1 = vcmp.lt.s32.totalorder %v949_v49, 3  ;;  %v976_v12 = vsel %vm968_vm14, %v955_v56, %v958_v58 }
 0x111   : > { %v977_v13 = vsel %vm971_vm15, %v964_v53, 920167782  ;;  %v894_v15 = vadd.s32 536870912, %v893_v63  ;;  %vm969_vm2 = vcmp.lt.s32.totalorder %v949_v49, 2  ;;  %v973_v16 = vsel %vm971_vm15, %v961_v2, 2102212464 }
 0x112   : > { %v978_v17 = vsel %vm970_vm1, %v961_v2, %v977_v13  ;;  %v3890_v18 = vmin.u32 %v796_v6, %v4905_v33  ;;  %v980_v20 = vsel %vm968_vm14, %v958_v58, %v961_v2  ;;  %v981_v21 = vsel %vm971_vm15, %v967_v8, 1326507024 }
 0x113   : > { %v979_v19 = vsel %vm969_vm2, %v976_v12, %v978_v17  ;;  %v972_v24 = vsel %vm968_vm14, %v952_v11, %v955_v56  ;;  %v982_v26 = vsel %vm970_vm1, %v964_v53, %v981_v21  ;;  %v684_v30 = vadd.f32 %v683_v14, %v4920_v52 }
 0x114   : > { %v974_v31 = vsel %vm970_vm1, %v958_v58, %v973_v16  ;;  %v983_v34 = vsel %vm969_vm2, %v980_v20, %v982_v26  ;;  %v4931_v36 = vmul.u32.u64.low %v984_v7, %v979_v19  ;;  %v4932_v37 = vmul.u32.u64.high %v984_v7, %v979_v19, %v4931_v36 }
 0x115   : > { %v4935_v39 = vshrl.u32 %v894_v15, 30  ;;  %v798_v42 = vclz %v3890_v18  ;;  %v4937_v43 = vmul.u32.u64.low %v984_v7, %v983_v34  ;;  %v4938_v44 = vmul.u32.u64.high %v984_v7, %v983_v34, %v4937_v43 }
 0x116   : > { %v3901_v45 = vadd.s32 4294967169, %v1043_v9  ;;  %v975_v47 = vsel %vm969_vm2, %v972_v24, %v974_v31  ;;  %v4941_v38 = vmax.f32 %v684_v30, 0.0  ;;  %v994_v48 = vadd.s32 1, %v4932_v37 }
 0x117   : > { %v896_v50 = vshll.u32 %v4935_v39, 30  ;;  %v6499_v51 = vand.u32 2147483647, %v4838_v55  ;;  %v3891_v56 = vadd.s32 4294967294, %v798_v42  ;;  %v991_v58 = vmul.u32 %v984_v7, %v975_v47 }
 0x118   : > { %v1049_v54 = vadd.s32 1, %v3901_v45  ;;  %vm993_vm3 = vc.u32 %v4938_v44, %v4931_v36  ;;  %v1569_v49 = vand.u32 2139095040, %v4941_v38 }
 0x119   : > { %v995_v59 = vsel %vm993_vm3, %v994_v48, %v4932_v37  ;;  %v4950_v4 = vsub.s32 %v893_v63, %v896_v50  ;;  %v1046_v5 = vand.u32 8388607, %v6499_v51  ;;  %vm3892_vm5 = vcmp.lt.s32.totalorder %v3891_v56, 0 }
 0x11a   : > { %vm1050_vm4 = vcmp.gt.s32.totalorder %v1049_v54, 0  ;;  %v996_v61 = vadd.s32 %v995_v59, %v991_v58  ;;  %v1570_v8 = vshrl.u32 %v1569_v49, 23  ;;  %v4956_v11 = vsel %vm3892_vm5, 0, %v3891_v56  ;;  %v685_v49 = vpop.f32.mrf.mxu0 }
 0x11b   : > { %v1051_v2 = vsel %vm1050_vm4, %v1049_v54, 0  ;;  %v899_v12 = vsub.s32 0, %v4950_v4  ;;  %v1047_v13 = vor.u32 8388608, %v1046_v5  ;;  %v806_v42 = vsub.s32 4294967266, %v4956_v11 }
 0x11c   : > { %v1053_v6 = vand.u32 31, %v1051_v2  ;;  %v997_v53 = vadd.s32 536870912, %v996_v61  ;;  %v3921_v20 = vadd.s32 4294967169, %v1570_v8  ;;  %v1052_v24 = vshrl.u32 %v1051_v2, 5 }
 0x11d   : > { %v1087_v47 = vshll.u32 %v1047_v13, 8  ;;  %v3894_v48 = vmin.u32 %v899_v12, %v4950_v4  ;;  %v6498_v8 = vand.u32 2147483647, %v4941_v38 }
 0x11e   : > { %v4954_v7 = vshrl.u32 %v997_v53, 30  ;;  %v1054_v9 = vsub.s32 32, %v1053_v6  ;;  %v1056_v63 = vshll.u32 %v4601_v57, %v1053_v6  ;;  %v1059_v17 = vshll.u32 %v4602_v60, %v1053_v6 }
 0x11f   : > { %v1062_v18 = vshll.u32 %v4603_v62, %v1053_v6  ;;  %v1065_v34 = vshll.u32 %v4604_v1, %v1053_v6  ;;  %v1068_v43 = vshll.u32 %v4605_v3, %v1053_v6  ;;  %v1576_v56 = vadd.s32 1, %v3921_v20 }
 0x120   : > { %v999_v14 = vshll.u32 %v4954_v7, 30  ;;  %v1057_v15 = vshrl.u32 %v4602_v60, %v1054_v9  ;;  %v1060_v16 = vshrl.u32 %v4603_v62, %v1054_v9  ;;  %v1063_v19 = vshrl.u32 %v4604_v1, %v1054_v9 }
 0x121   : > { %v1066_v37 = vshrl.u32 %v4605_v3, %v1054_v9  ;;  %v1069_v45 = vshrl.u32 %v4606_v10, %v1054_v9  ;;  %v1055_v58 = vshrl.u32 %v4601_v57, %v1054_v9  ;;  %vm1071_vm6 = vcmp.lt.s32.totalorder %v1052_v24, 1 }
 0x122   : > { %v4966_v21 = vsub.s32 %v996_v61, %v999_v14  ;;  %v1058_v26 = vor.u32 %v1057_v15, %v1056_v63  ;;  %v1061_v30 = vor.u32 %v1060_v16, %v1059_v17  ;;  %v1064_v31 = vor.u32 %v1063_v19, %v1062_v18  ;;  %v4983_v18 = vpop.permute.xlu1 %565  ;;  %v687_v19 = vpop.f32.mrf.mxu0 }
 0x123   : > { %v1067_v50 = vor.u32 %v1066_v37, %v1065_v34  ;;  %v1070_v59 = vor.u32 %v1069_v45, %v1068_v43  ;;  %vm1074_vm7 = vcmp.lt.s32.totalorder %v1052_v24, 4  ;;  %vm1073_vm8 = vcmp.lt.s32.totalorder %v1052_v24, 3 }
 0x124   : > { %v1002_v54 = vsub.s32 0, %v4966_v21  ;;  %v1076_v61 = vsel %vm1074_vm7, %v1064_v31, 2102212464  ;;  %v1079_v2 = vsel %vm1071_vm6, %v1058_v26, %v1061_v30  ;;  %vm1072_vm9 = vcmp.lt.s32.totalorder %v1052_v24, 2  ;;  %v689_v0 = vpop.f32.mrf.mxu0 }
 0x125   : > { %v1080_v5 = vsel %vm1074_vm7, %v1067_v50, 920167782  ;;  %v1083_v53 = vsel %vm1071_vm6, %v1061_v30, %v1064_v31  ;;  %v1075_v13 = vsel %vm1071_vm6, %v1055_v58, %v1058_v26  ;;  %v1084_v63 = vsel %vm1074_vm7, %v1070_v59, 1326507024 }
 0x126   : > { %v1081_v6 = vsel %vm1073_vm8, %v1064_v31, %v1080_v5  ;;  %v3898_v12 = vmin.u32 %v1002_v54, %v4966_v21  ;;  %v1077_v9 = vsel %vm1073_vm8, %v1061_v30, %v1076_v61  ;;  %v1085_v15 = vsel %vm1073_vm8, %v1067_v50, %v1084_v63 }
 0x127   : > { %v1082_v14 = vsel %vm1072_vm9, %v1079_v2, %v1081_v6  ;;  %v4987_v20 = vadd.s32 %v4863_v41, %v4860_v40  ;;  %v4989_v31 = vadd.s32 127, %v806_v42  ;;  %v1086_v26 = vsel %vm1072_vm9, %v1083_v53, %v1085_v15 }
 0x128   : > { %v4979_v16 = vmul.u32.u64.low %v1087_v47, %v1082_v14  ;;  %v4980_v17 = vmul.u32.u64.high %v1087_v47, %v1082_v14, %v4979_v16  ;;  %vm1577_vm10 = vcmp.gt.s32.totalorder %v1576_v56, 0  ;;  %v901_v34 = vclz %v3894_v48 }
 0x129   : > { %v4992_v37 = vmul.u32.u64.low %v1087_v47, %v1086_v26  ;;  %v4993_v30 = vmul.u32.u64.high %v1087_v47, %v1086_v26, %v4992_v37  ;;  %v1578_v43 = vsel %vm1577_vm10, %v1576_v56, 0  ;;  %v1078_v45 = vsel %vm1072_vm9, %v1075_v13, %v1077_v9 }
 0x12a   : > { %v1580_v54 = vand.u32 31, %v1578_v43  ;;  %v686_v50 = vadd.f32 %v685_v49, %v4920_v52  ;;  %v4998_v58 = vadd.f32 %v687_v19, %v4983_v18  ;;  %v802_v40 = vsub.s32 32, %v4956_v11 }
 0x12b   : > { %v1004_v41 = vclz %v3898_v12  ;;  %v1097_v42 = vadd.s32 1, %v4980_v17  ;;  %v1573_v48 = vand.u32 8388607, %v6498_v8  ;;  %v808_v59 = vshll.u32 %v4989_v31, 23 }
 0x12c   : > { %v1581_v61 = vsub.s32 32, %v1580_v54  ;;  %v1583_v24 = vshll.u32 %v4601_v57, %v1580_v54  ;;  %v1586_v56 = vshll.u32 %v4602_v60, %v1580_v54  ;;  %v3895_v2 = vadd.s32 4294967294, %v901_v34 }
 0x12d   : > { %v1094_v52 = vmul.u32 %v1087_v47, %v1078_v45  ;;  %vm1096_vm11 = vc.u32 %v4993_v30, %v4979_v16  ;;  %v1589_v49 = vshll.u32 %v4603_v62, %v1580_v54  ;;  %v1579_v6 = vshrl.u32 %v1578_v43, 5 }
 0x12e   : > { %v1098_v5 = vsel %vm1096_vm11, %v1097_v42, %v4980_v17  ;;  %v1584_v53 = vshrl.u32 %v4602_v60, %v1581_v61  ;;  %v1587_v12 = vshrl.u32 %v4603_v62, %v1581_v61  ;;  %v3899_v13 = vadd.s32 4294967294, %v1004_v41 }
 0x12f   : > { %v1099_v14 = vadd.s32 %v1098_v5, %v1094_v52  ;;  %v1574_v63 = vor.u32 8388608, %v1573_v48  ;;  %v1590_v9 = vshrl.u32 %v4604_v1, %v1581_v61  ;;  %v1592_v47 = vshll.u32 %v4604_v1, %v1580_v54 }
 0x130   : > { %v1585_v15 = vor.u32 %v1584_v53, %v1583_v24  ;;  %v1588_v19 = vor.u32 %v1587_v12, %v1586_v56  ;;  %v1593_v31 = vshrl.u32 %v4605_v3, %v1581_v61  ;;  %vm3896_vm12 = vcmp.lt.s32.totalorder %v3895_v2, 0 }
 0x131   : > { %v1100_v26 = vadd.s32 536870912, %v1099_v14  ;;  %v1582_v17 = vshrl.u32 %v4601_v57, %v1581_v61  ;;  %v1591_v34 = vor.u32 %v1590_v9, %v1589_v49  ;;  %v1595_v43 = vshll.u32 %v4605_v3, %v1580_v54 }
 0x132   : > { %v1594_v37 = vor.u32 %v1593_v31, %v1592_v47  ;;  %v1596_v45 = vshrl.u32 %v4606_v10, %v1581_v61  ;;  %vm1598_vm13 = vcmp.lt.s32.totalorder %v1579_v6, 1  ;;  %vm3900_vm14 = vcmp.lt.s32.totalorder %v3899_v13, 0 }
 0x133   : > { %v5019_v41 = vshrl.u32 %v1100_v26, 30  ;;  %vm1600_vm15 = vcmp.lt.s32.totalorder %v1579_v6, 3  ;;  %v1614_v42 = vshll.u32 %v1574_v63, 8  ;;  %vm1599_vm1 = vcmp.lt.s32.totalorder %v1579_v6, 2 }
 0x134   : > { %v1597_v48 = vor.u32 %v1596_v45, %v1595_v43  ;;  %vm1601_vm2 = vcmp.lt.s32.totalorder %v1579_v6, 4  ;;  %v1606_v24 = vsel %vm1598_vm13, %v1585_v15, %v1588_v19  ;;  %v1602_v52 = vsel %vm1598_vm13, %v1582_v17, %v1585_v15 }
 0x135   : > { %v1102_v56 = vshll.u32 %v5019_v41, 30  ;;  %v1603_v5 = vsel %vm1601_vm2, %v1591_v34, 2102212464  ;;  %v1607_v49 = vsel %vm1601_vm2, %v1594_v37, 920167782  ;;  %v1610_v61 = vsel %vm1598_vm13, %v1588_v19, %v1591_v34 }
 0x136   : > { %v1604_v53 = vsel %vm1600_vm15, %v1588_v19, %v1603_v5  ;;  %v1608_v54 = vsel %vm1600_vm15, %v1591_v34, %v1607_v49  ;;  %v1611_v12 = vsel %vm1601_vm2, %v1597_v48, 1326507024  ;;  %v803_v9 = vshll.u32 %v4905_v33, %v4956_v11 }
 0x137   : > { %v904_v63 = vsel %vm3896_vm12, 0, %v3895_v2  ;;  %v1609_v47 = vsel %vm1599_vm1, %v1606_v24, %v1608_v54  ;;  %v5028_v31 = vmax.f32 %v686_v50, 0.0  ;;  %v804_v26 = vshrl.u32 %v4987_v20, %v802_v40 }
 0x138   : > { %v1612_v15 = vsel %vm1600_vm15, %v1594_v37, %v1611_v12  ;;  %v5032_v17 = vmul.u32.u64.low %v1614_v42, %v1609_v47  ;;  %v5033_v43 = vmul.u32.u64.high %v1614_v42, %v1609_v47, %v5032_v17  ;;  %v1007_v19 = vsel %vm3900_vm14, 0, %v3899_v13 }
 0x139   : > { %v5037_v34 = vsub.s32 %v1099_v14, %v1102_v56  ;;  %v1605_v33 = vsel %vm1599_vm1, %v1602_v52, %v1604_v53  ;;  %v1613_v11 = vsel %vm1599_vm1, %v1610_v61, %v1612_v15  ;;  %v809_v2 = vor.u32 4788187, %v808_v59 }
 0x13a   : > { %v909_v45 = vsub.s32 4294967266, %v904_v63  ;;  %v5041_v50 = vmul.u32.u64.low %v1614_v42, %v1613_v11  ;;  %v5042_v48 = vmul.u32.u64.high %v1614_v42, %v1613_v11, %v5041_v50  ;;  %v1672_v20 = vand.u32 2139095040, %v5028_v31 }
 0x13b   : > { %v805_v40 = vor.u32 %v804_v26, %v803_v9  ;;  %v1012_v37 = vsub.s32 4294967266, %v1007_v19  ;;  %v1621_v24 = vmul.u32 %v1614_v42, %v1605_v33  ;;  %v1624_v5 = vadd.s32 1, %v5033_v43 }
 0x13c   : > { %v1105_v13 = vsub.s32 0, %v5037_v34  ;;  %v1673_v14 = vshrl.u32 %v1672_v20, 23  ;;  %v5048_v56 = vmax.f32 %v4998_v58, 0.0  ;;  %v810_v6 = vand.u32 2147483647, %v809_v2 }
 0x13d   : > { %v905_v52 = vsub.s32 32, %v904_v63  ;;  %v910_v59 = vadd.s32 127, %v909_v45  ;;  %vm1623_vm3 = vc.u32 %v5042_v48, %v5032_v17  ;;  %v1008_v49 = vsub.s32 32, %v1007_v19 }
 0x13e   : > { %v1625_v53 = vsel %vm1623_vm3, %v1624_v5, %v5033_v43  ;;  %v3925_v54 = vadd.s32 4294967169, %v1673_v14  ;;  %v812_v61 = vcvt.s32.f32 %v805_v40  ;;  %v889_v42 = vadd.s32 %v4886_v22, %v4894_v28 }
 0x13f   : > { %v1013_v12 = vadd.s32 127, %v1012_v37  ;;  %v1626_v9 = vadd.s32 %v1625_v53, %v1621_v24  ;;  %v992_v58 = vadd.s32 %v4931_v36, %v4938_v44  ;;  %v3902_v47 = vmin.u32 %v1105_v13, %v5037_v34 }
 0x140   : > { %v1679_v26 = vadd.s32 1, %v3925_v54  ;;  %v1775_v15 = vand.u32 2139095040, %v5048_v56  ;;  %v5059_v33 = vmul.f32 %v812_v61, %v810_v6  ;;  %v907_v11 = vshrl.u32 %v889_v42, %v905_v52 }
 0x141   : > { %v911_v2 = vshll.u32 %v910_v59, 23  ;;  %v1627_v43 = vadd.s32 536870912, %v1626_v9  ;;  %v1010_v45 = vshrl.u32 %v992_v58, %v1008_v49  ;;  %v6496_v50 = vand.u32 2147483647, %v5028_v31 }
 0x142   : > { %vm1680_vm4 = vcmp.gt.s32.totalorder %v1679_v26, 0  ;;  %v906_v22 = vshll.u32 %v4950_v4, %v904_v63  ;;  %v1014_v28 = vshll.u32 %v1013_v12, 23  ;;  %v1009_v36 = vshll.u32 %v4966_v21, %v1007_v19 }
 0x143   : > { %v1681_v20 = vsel %vm1680_vm4, %v1679_v26, 0  ;;  %v1107_v44 = vclz %v3902_v47  ;;  %v1776_v37 = vshrl.u32 %v1775_v15, 23  ;;  %v814_v24 = vxor.u32 2147483648, %v5059_v33 }
 0x144   : > { %v1683_v40 = vand.u32 31, %v1681_v20  ;;  %v5065_v5 = vor.u32 %v907_v11, %v906_v22  ;;  %v5067_v13 = vor.u32 4788187, %v911_v2  ;;  %v5069_v14 = vshrl.u32 %v1627_v43, 30 }
 0x145   : > { %v5071_v6 = vor.u32 %v1010_v45, %v1009_v36  ;;  %v1676_v4 = vand.u32 8388607, %v6496_v50  ;;  %v5076_v21 = vor.u32 4788187, %v1014_v28  ;;  %v3903_v53 = vadd.s32 4294967294, %v1107_v44 }
 0x146   : > { %v1684_v63 = vsub.s32 32, %v1683_v40  ;;  %v1686_v52 = vshll.u32 %v4601_v57, %v1683_v40  ;;  %v1689_v19 = vshll.u32 %v4602_v60, %v1683_v40  ;;  %v1692_v59 = vshll.u32 %v4603_v62, %v1683_v40 }
 0x147   : > { %v1695_v49 = vshll.u32 %v4604_v1, %v1683_v40  ;;  %v1682_v54 = vshrl.u32 %v1681_v20, 5  ;;  %v3929_v42 = vadd.s32 4294967169, %v1776_v37  ;;  %v1629_v12 = vshll.u32 %v5069_v14, 30 }
 0x148   : > { %v1687_v61 = vshrl.u32 %v4602_v60, %v1684_v63  ;;  %v1690_v58 = vshrl.u32 %v4603_v62, %v1684_v63  ;;  %v1693_v47 = vshrl.u32 %v4604_v1, %v1684_v63  ;;  %v1696_v26 = vshrl.u32 %v4605_v3, %v1684_v63 }
 0x149   : > { %v1677_v15 = vor.u32 8388608, %v1676_v4  ;;  %v1698_v2 = vshll.u32 %v4605_v3, %v1683_v40  ;;  %v1699_v43 = vshrl.u32 %v4606_v10, %v1684_v63  ;;  %v6497_v20 = vand.u32 2147483647, %v5048_v56 }
 0x14a   : > { %v1688_v11 = vor.u32 %v1687_v61, %v1686_v52  ;;  %v1691_v45 = vor.u32 %v1690_v58, %v1689_v19  ;;  %v1694_v22 = vor.u32 %v1693_v47, %v1692_v59  ;;  %v1697_v28 = vor.u32 %v1696_v26, %v1695_v49 }
 0x14b   : > { %vm3904_vm5 = vcmp.lt.s32.totalorder %v3903_v53, 0  ;;  %v1685_v36 = vshrl.u32 %v4601_v57, %v1684_v63  ;;  %v1700_v44 = vor.u32 %v1699_v43, %v1698_v2  ;;  %vm1701_vm6 = vcmp.lt.s32.totalorder %v1682_v54, 1 }
 0x14c   : > { %v5090_v37 = vsub.s32 %v1626_v9, %v1629_v12  ;;  %vm1703_vm7 = vcmp.lt.s32.totalorder %v1682_v54, 3  ;;  %vm1704_vm8 = vcmp.lt.s32.totalorder %v1682_v54, 4  ;;  %v1782_v4 = vadd.s32 1, %v3929_v42 }
 0x14d   : > { %vm1702_vm9 = vcmp.lt.s32.totalorder %v1682_v54, 2  ;;  %v1706_v52 = vsel %vm1704_vm8, %v1694_v22, 2102212464  ;;  %v1709_v40 = vsel %vm1701_vm6, %v1688_v11, %v1691_v45  ;;  %v1710_v61 = vsel %vm1704_vm8, %v1697_v28, 920167782 }
 0x14e   : > { %v1711_v19 = vsel %vm1703_vm7, %v1694_v22, %v1710_v61  ;;  %v1713_v59 = vsel %vm1701_vm6, %v1691_v45, %v1694_v22  ;;  %v1717_v49 = vshll.u32 %v1677_v15, 8  ;;  %v1779_v58 = vand.u32 8388607, %v6497_v20 }
 0x14f   : > { %v5096_v63 = vsel %vm3904_vm5, 0, %v3903_v53  ;;  %v1705_v9 = vsel %vm1701_vm6, %v1685_v36, %v1688_v11  ;;  %v1707_v12 = vsel %vm1703_vm7, %v1691_v45, %v1706_v52  ;;  %v1714_v47 = vsel %vm1704_vm8, %v1700_v44, 1326507024  ;;  %v4473_v53 = vld [vmem:[%s6474_s2 + $0x20] sm:$0xff]  }
 0x150   : > { %v1632_v42 = vsub.s32 0, %v5090_v37  ;;  %v1712_v26 = vsel %vm1702_vm9, %v1709_v40, %v1711_v19  ;;  %v1715_v2 = vsel %vm1703_vm7, %v1697_v28, %v1714_v47  ;;  %v690_v43 = vadd.f32 %v689_v0, %v4983_v18  ;;  %3888 = vmatmul.mubr.msk.bf16.gmra.mxu0 %vm6502_vm0, %v4473_v53 }
 0x151   : > { %v1016_v15 = vand.u32 2147483647, %v5076_v21  ;;  %v1018_v22 = vcvt.s32.f32 %v5071_v6  ;;  %v1716_v61 = vsel %vm1702_vm9, %v1713_v59, %v1715_v2  ;;  %vm1783_vm10 = vcmp.gt.s32.totalorder %v1782_v4, 0 }
 0x152   : > { %v1111_v11 = vsub.s32 32, %v5096_v63  ;;  %v1115_v45 = vsub.s32 4294967266, %v5096_v63  ;;  %v1708_v36 = vsel %vm1702_vm9, %v1705_v9, %v1707_v12  ;;  %v1780_v28 = vor.u32 8388608, %v1779_v58 }
 0x153   : > { %v5112_v44 = vmul.u32.u64.low %v1717_v49, %v1716_v61  ;;  %v5113_v0 = vmul.u32.u64.high %v1717_v49, %v1716_v61, %v5112_v44  ;;  %v5115_v18 = vmul.u32.u64.low %v1717_v49, %v1712_v26  ;;  %v5116_v21 = vmul.u32.u64.high %v1717_v49, %v1712_v26, %v5115_v18 }
 0x154   : > { %v1095_v6 = vadd.s32 %v4979_v16, %v4993_v30  ;;  %v3922_v52 = vmin.u32 %v1632_v42, %v5090_v37  ;;  %v1784_v40 = vsel %vm1783_vm10, %v1782_v4, 0  ;;  %v5123_v19 = vmax.f32 %v690_v43, 0.0 }
 0x155   : > { %v913_v54 = vand.u32 2147483647, %v5067_v13  ;;  %v915_v59 = vcvt.s32.f32 %v5065_v5  ;;  %v5127_v58 = vmul.f32 %v1018_v22, %v1016_v15  ;;  %v1786_v9 = vand.u32 31, %v1784_v40 }
 0x156   : > { %v1112_v12 = vshll.u32 %v5037_v34, %v5096_v63  ;;  %v1113_v47 = vshrl.u32 %v1095_v6, %v1111_v11  ;;  %v1724_v26 = vmul.u32 %v1717_v49, %v1708_v36  ;;  %v5131_v2 = vshll.u32 %v1780_v28, 8 }
 0x157   : > { %v1116_v16 = vadd.s32 127, %v1115_v45  ;;  %vm1726_vm11 = vc.u32 %v5113_v0, %v5115_v18  ;;  %v1727_v30 = vadd.s32 1, %v5116_v21  ;;  %v1787_v4 = vsub.s32 32, %v1786_v9 }
 0x158   : > { %v1634_v42 = vclz %v3922_v52  ;;  %v1789_v43 = vshll.u32 %v4601_v57, %v1786_v9  ;;  %v1792_v15 = vshll.u32 %v4602_v60, %v1786_v9  ;;  %v1878_v22 = vand.u32 2139095040, %v5123_v19 }
 0x159   : > { %v1728_v34 = vsel %vm1726_vm11, %v1727_v30, %v5116_v21  ;;  %v1785_v63 = vshrl.u32 %v1784_v40, 5  ;;  %v1790_v49 = vshrl.u32 %v4602_v60, %v1787_v4  ;;  %v1793_v61 = vshrl.u32 %v4603_v62, %v1787_v4 }
 0x15a   : > { %v1729_v53 = vadd.s32 %v1728_v34, %v1724_v26  ;;  %v1788_v11 = vshrl.u32 %v4601_v57, %v1787_v4  ;;  %v1795_v45 = vshll.u32 %v4603_v62, %v1786_v9  ;;  %v1796_v36 = vshrl.u32 %v4604_v1, %v1787_v4 }
 0x15b   : > { %v1791_v28 = vor.u32 %v1790_v49, %v1789_v43  ;;  %v1794_v44 = vor.u32 %v1793_v61, %v1792_v15  ;;  %v1798_v6 = vshll.u32 %v4604_v1, %v1786_v9  ;;  %v1799_v52 = vshrl.u32 %v4605_v3, %v1787_v4 }
 0x15c   : > { %vm732_vm12 = vcmp.lt.s32.totalorder %v4814_v23, 0  ;;  %v3923_v21 = vadd.s32 4294967294, %v1634_v42  ;;  %v1730_v40 = vadd.s32 536870912, %v1729_v53  ;;  %v1801_v30 = vshll.u32 %v4605_v3, %v1786_v9 }
 0x15d   : > { %v1879_v50 = vshrl.u32 %v1878_v22, 23  ;;  %v1797_v26 = vor.u32 %v1796_v36, %v1795_v45  ;;  %v1800_v34 = vor.u32 %v1799_v52, %v1798_v6  ;;  %v1802_v20 = vshrl.u32 %v4606_v10, %v1787_v4 }
 0x15e   : > { %vm1804_vm13 = vcmp.lt.s32.totalorder %v1785_v63, 1  ;;  %v5150_v8 = vshrl.u32 %v1730_v40, 30  ;;  %vm1805_vm14 = vcmp.lt.s32.totalorder %v1785_v63, 2  ;;  %vm1806_vm15 = vcmp.lt.s32.totalorder %v1785_v63, 3 }
 0x15f   : > { %vm1807_vm1 = vcmp.lt.s32.totalorder %v1785_v63, 4  ;;  %v1803_v43 = vor.u32 %v1802_v20, %v1801_v30  ;;  %v1808_v15 = vsel %vm1804_vm13, %v1788_v11, %v1791_v28  ;;  %v1812_v61 = vsel %vm1804_vm13, %v1791_v28, %v1794_v44 }
 0x160   : > { %v1809_v49 = vsel %vm1807_vm1, %v1797_v26, 2102212464  ;;  %v1117_v51 = vshll.u32 %v1116_v16, 23  ;;  %v1732_v42 = vshll.u32 %v5150_v8, 30  ;;  %v1813_v22 = vsel %vm1807_vm1, %v1800_v34, 920167782 }
 0x161   : > { %v1810_v9 = vsel %vm1806_vm15, %v1794_v44, %v1809_v49  ;;  %vm3924_vm2 = vcmp.lt.s32.totalorder %v3923_v21, 0  ;;  %v1814_v45 = vsel %vm1806_vm15, %v1797_v26, %v1813_v22  ;;  %v1816_v4 = vsel %vm1804_vm13, %v1794_v44, %v1797_v26 }
 0x162   : > { %v1817_v36 = vsel %vm1807_vm1, %v1803_v43, 1326507024  ;;  %v5155_v6 = vsub.s32 %v1729_v53, %v1732_v42  ;;  %v1811_v52 = vsel %vm1805_vm14, %v1808_v15, %v1810_v9  ;;  %v1815_v20 = vsel %vm1805_vm14, %v1812_v61, %v1814_v45 }
 0x163   : > { %v1818_v11 = vsel %vm1806_vm15, %v1800_v34, %v1817_v36  ;;  %v5162_v28 = vmul.u32.u64.low %v5131_v2, %v1815_v20  ;;  %v5163_v40 = vmul.u32.u64.high %v5131_v2, %v1815_v20, %v5162_v28  ;;  %v3933_v30 = vadd.s32 4294967169, %v1879_v50 }
 0x164   : > { %v1819_v16 = vsel %vm1805_vm14, %v1816_v4, %v1818_v11  ;;  %v5166_v49 = vsel %vm3924_vm2, 0, %v3923_v21  ;;  %v1735_v44 = vsub.s32 0, %v5155_v6  ;;  %v815_v63 = vsel %vm732_vm12, %v814_v24, %v5059_v33 }
 0x165   : > { %v5170_v53 = vmul.u32.u64.low %v5131_v2, %v1819_v16  ;;  %v5171_v26 = vmul.u32.u64.high %v5131_v2, %v1819_v16, %v5170_v53  ;;  %v5182_v34 = vmul.f32 %v915_v59, %v913_v54  ;;  %v5184_v50 = vor.u32 %v1113_v47, %v1112_v12 }
 0x166   : > { %v1885_v21 = vadd.s32 1, %v3933_v30  ;;  %v5186_v43 = vor.u32 4788187, %v1117_v51  ;;  %v3926_v15 = vmin.u32 %v1735_v44, %v5155_v6  ;;  %v1827_v61 = vmul.u32 %v5131_v2, %v1811_v52 }
 0x167   : > { %v6500_v42 = vand.u32 2147483647, %v5123_v19  ;;  %v1020_v9 = vxor.u32 2147483648, %v5127_v58  ;;  %v1642_v33 = vsub.s32 4294967266, %v5166_v49  ;;  %v1830_v24 = vadd.s32 1, %v5163_v40 }
 0x168   : > { %vm1886_vm3 = vcmp.gt.s32.totalorder %v1885_v21, 0  ;;  %v1622_v5 = vadd.s32 %v5032_v17, %v5042_v48  ;;  %v1737_v13 = vclz %v3926_v15  ;;  %vm1829_vm4 = vc.u32 %v5171_v26, %v5162_v28 }
 0x169   : > { %v1887_v51 = vsel %vm1886_vm3, %v1885_v21, 0  ;;  %v1121_v54 = vcvt.s32.f32 %v5184_v50  ;;  %v1831_v59 = vsel %vm1829_vm4, %v1830_v24, %v5163_v40  ;;  %vm5202_vm5 = vcmp.le.f32.partialorder %v730_v27, 0.7853982 }
 0x16a   : > { %v1889_v12 = vand.u32 31, %v1887_v51  ;;  %v816_v2 = vsub.s32 4, %v4890_v25  ;;  %v1119_v17 = vand.u32 2147483647, %v5186_v43  ;;  %v3927_v48 = vadd.s32 4294967294, %v1737_v13 }
 0x16b   : > { %v1832_v22 = vadd.s32 %v1831_v59, %v1827_v61  ;;  %v1882_v45 = vand.u32 8388607, %v6500_v42  ;;  %v1638_v4 = vsub.s32 32, %v5166_v49  ;;  %v1643_v36 = vadd.s32 127, %v1642_v33 }
 0x16c   : > { %v1888_v52 = vshrl.u32 %v1887_v51, 5  ;;  %v1890_v20 = vsub.s32 32, %v1889_v12  ;;  %vm3928_vm6 = vcmp.lt.s32.totalorder %v3927_v48, 0  ;;  %v1892_v27 = vshll.u32 %v4601_v57, %v1889_v12 }
 0x16d   : > { %v1833_v11 = vadd.s32 536870912, %v1832_v22  ;;  %v1895_v16 = vshll.u32 %v4602_v60, %v1889_v12  ;;  %v1898_v44 = vshll.u32 %v4603_v62, %v1889_v12  ;;  %v1901_v53 = vshll.u32 %v4604_v1, %v1889_v12 }
 0x16e   : > { %v1893_v40 = vshrl.u32 %v4602_v60, %v1890_v20  ;;  %v1896_v30 = vshrl.u32 %v4603_v62, %v1890_v20  ;;  %v1639_v21 = vshll.u32 %v5090_v37, %v5166_v49  ;;  %v1883_v61 = vor.u32 8388608, %v1882_v45 }
 0x16f   : > { %v5219_v15 = vshrl.u32 %v1833_v11, 30  ;;  %v1904_v33 = vshll.u32 %v4605_v3, %v1889_v12  ;;  %v5222_v24 = vsel %vm3928_vm6, 0, %v3927_v48  ;;  %v1891_v13 = vshrl.u32 %v4601_v57, %v1890_v20 }
 0x170   : > { %v1899_v60 = vshrl.u32 %v4604_v1, %v1890_v20  ;;  %v1902_v51 = vshrl.u32 %v4605_v3, %v1890_v20  ;;  %v1894_v59 = vor.u32 %v1893_v40, %v1892_v27  ;;  %v1897_v42 = vor.u32 %v1896_v30, %v1895_v16 }
 0x171   : > { %v1835_v62 = vshll.u32 %v5219_v15, 30  ;;  %v1905_v32 = vshrl.u32 %v4606_v10, %v1890_v20  ;;  %v1644_v37 = vshll.u32 %v1643_v36, 23  ;;  %vm1907_vm7 = vcmp.lt.s32.totalorder %v1888_v52, 1 }
 0x172   : > { %v1900_v49 = vor.u32 %v1899_v60, %v1898_v44  ;;  %v1903_v11 = vor.u32 %v1902_v51, %v1901_v53  ;;  %v1923_v48 = vshll.u32 %v1883_v61, 8  ;;  %v818_v57 = vsel %vm5202_vm5, %v4814_v23, %v815_v63 }
 0x173   : > { %v5229_v45 = vsub.s32 %v1832_v22, %v1835_v62  ;;  %v1906_v12 = vor.u32 %v1905_v32, %v1904_v33  ;;  %v1745_v1 = vsub.s32 4294967266, %v5222_v24  ;;  %vm1908_vm8 = vcmp.lt.s32.totalorder %v1888_v52, 2 }
 0x174   : > { %vm1909_vm9 = vcmp.lt.s32.totalorder %v1888_v52, 3  ;;  %vm1910_vm10 = vcmp.lt.s32.totalorder %v1888_v52, 4  ;;  %v1911_v10 = vsel %vm1907_vm7, %v1891_v13, %v1894_v59  ;;  %v1915_v20 = vsel %vm1907_vm7, %v1894_v59, %v1897_v42 }
 0x175   : > { %v1838_v3 = vsub.s32 0, %v5229_v45  ;;  %v1912_v36 = vsel %vm1910_vm10, %v1900_v49, 2102212464  ;;  %v1916_v22 = vsel %vm1910_vm10, %v1903_v11, 920167782  ;;  %v1919_v16 = vsel %vm1907_vm7, %v1897_v42, %v1900_v49 }
 0x176   : > { %v1913_v27 = vsel %vm1909_vm9, %v1897_v42, %v1912_v36  ;;  %v1920_v32 = vsel %vm1910_vm10, %v1906_v12, 1326507024  ;;  %vm835_vm11 = vcmp.lt.s32.totalorder %v4818_v29, 0  ;;  %v1640_v40 = vshrl.u32 %v1622_v5, %v1638_v4 }
 0x177   : > { %v3930_v63 = vmin.u32 %v1838_v3, %v5229_v45  ;;  %v1917_v30 = vsel %vm1909_vm9, %v1900_v49, %v1916_v22  ;;  %4486 = vcosq.f32 %v818_v57  ;;  %v1645_v44 = vor.u32 4788187, %v1644_v37 }
 0x178   : > { %v1918_v53 = vsel %vm1908_vm8, %v1915_v20, %v1917_v30  ;;  %v1921_v61 = vsel %vm1909_vm9, %v1903_v11, %v1920_v32  ;;  %4488 = vsinq.f32 %v818_v57  ;;  %v1746_v33 = vadd.s32 127, %v1745_v1 }
 0x179   : > { %v1840_v13 = vclz %v3930_v63  ;;  %v1914_v60 = vsel %vm1908_vm8, %v1911_v10, %v1913_v27  ;;  %v1922_v42 = vsel %vm1908_vm8, %v1919_v16, %v1921_v61  ;;  %v917_v59 = vxor.u32 2147483648, %v5182_v34 }
 0x17a   : > { %v5244_v51 = vmul.u32.u64.low %v1923_v48, %v1922_v42  ;;  %v5245_v62 = vmul.u32.u64.high %v1923_v48, %v1922_v42, %v5244_v51  ;;  %v5247_v5 = vmul.u32.u64.low %v1923_v48, %v1918_v53  ;;  %v5248_v4 = vmul.u32.u64.high %v1923_v48, %v1918_v53, %v5247_v5 }
 0x17b   : > { %vm938_vm13 = vcmp.lt.s32.totalorder %v4824_v35, 0  ;;  %v1641_v37 = vor.u32 %v1640_v40, %v1639_v21  ;;  %v3931_v49 = vadd.s32 4294967294, %v1840_v13  ;;  %v1122_v11 = vmul.f32 %v1121_v54, %v1119_v17  ;;  %v693_v13 = vpop.f32.mrf.mxu0 }
 0x17c   : > { %v1021_v52 = vsel %vm938_vm13, %v1020_v9, %v5127_v58  ;;  %v1741_v12 = vsub.s32 32, %v5222_v24  ;;  %v817_v21 = vsel %vm732_vm12, %v816_v2, %v4890_v25  ;;  %v1646_v57 = vand.u32 2147483647, %v1645_v44 }
 0x17d   : > { %v1725_v1 = vadd.s32 %v5115_v18, %v5113_v0  ;;  %vm3932_vm14 = vcmp.lt.s32.totalorder %v3931_v49, 0  ;;  %v1930_v3 = vmul.u32 %v1923_v48, %v1914_v60  ;;  %v1747_v58 = vshll.u32 %v1746_v33, 23 }
 0x17e   : > { %v5270_v9 = vsel %vm3932_vm14, 0, %v3931_v49  ;;  %vm1932_vm15 = vc.u32 %v5245_v62, %v5247_v5  ;;  %v1933_v50 = vadd.s32 1, %v5248_v4  ;;  %vm5277_vm1 = vcmp.le.f32.partialorder %v936_v46, 0.7853982 }
 0x17f   : > { %vm1041_vm12 = vcmp.lt.s32.totalorder %v4838_v55, 0  ;;  %v1648_v25 = vcvt.s32.f32 %v1641_v37  ;;  %v1848_v0 = vsub.s32 4294967266, %v5270_v9  ;;  %v918_v18 = vsel %vm835_vm11, %v917_v59, %v5182_v34 }
 0x180   : > { %v1024_v54 = vsel %vm5277_vm1, %v4824_v35, %v1021_v52  ;;  %v1743_v2 = vshrl.u32 %v1725_v1, %v1741_v12  ;;  %v1934_v17 = vsel %vm1932_vm15, %v1933_v50, %v5248_v4  ;;  %v1123_v46 = vxor.u32 2147483648, %v1122_v11  ;;  %v571_v52 = vpop.permute.xlu0 %570 }
 0x181   : > { %v1649_v48 = vmul.f32 %v1648_v25, %v1646_v57  ;;  %v1935_v10 = vadd.s32 %v1934_v17, %v1930_v3  ;;  %v819_v36 = vsel %vm5202_vm5, 0, %v817_v21  ;;  %v1742_v20 = vshll.u32 %v5155_v6, %v5222_v24 }
 0x182   : > { %v1748_v27 = vor.u32 4788187, %v1747_v58  ;;  %v1849_v22 = vadd.s32 127, %v1848_v0  ;;  %v6518_v34 = vand.u32 2147483647, %v4818_v29  ;;  %4490 = vcosq.f32 %v1024_v54  ;;  %v695_v58 = vpop.f32.mrf.mxu0 }
 0x183   : > { %v6521_v32 = vand.u32 2147483647, %v4838_v55  ;;  %v1936_v47 = vadd.s32 536870912, %v1935_v10  ;;  %4492 = vsinq.f32 %v1024_v54  ;;  %vm1568_vm4 = vcmp.lt.s32.totalorder %v4941_v38, 0 }
 0x184   : > { %vm5296_vm2 = vcmp.le.f32.partialorder %v6518_v34, 0.7853982  ;;  %v4487_v24 = vpop.eup %4486  ;;  %v1744_v63 = vor.u32 %v1743_v2, %v1742_v20  ;;  %v1844_v30 = vsub.s32 32, %v5270_v9  ;;  %v1124_v53 = vsel %vm1041_vm12, %v1123_v46, %v1122_v11 }
 0x185   : > { %vm5302_vm3 = vcmp.le.f32.partialorder %v6521_v32, 0.7853982  ;;  %v921_v6 = vsel %vm5296_vm2, %v4818_v29, %v918_v18  ;;  %v4489_v44 = vpop.eup %4488  ;;  %v1650_v61 = vxor.u32 2147483648, %v1649_v48  ;;  %v5313_v33 = vshrl.u32 %v1936_v47, 30 }
 0x186   : > { %v823_v60 = vand.u32 3, %v819_v36  ;;  %v1749_v42 = vand.u32 2147483647, %v1748_v27  ;;  %v1828_v51 = vadd.s32 %v5162_v28, %v5171_v26  ;;  %v1850_v4 = vshll.u32 %v1849_v22, 23 }
 0x187   : > { %4494 = vcosq.f32 %v921_v6  ;;  %v1938_v59 = vshll.u32 %v5313_v33, 30  ;;  %v1239_v37 = vadd.s32 3, %v819_v36  ;;  %v919_v49 = vsub.s32 4, %v4935_v39 }
 0x188   : > { %4496 = vsinq.f32 %v921_v6  ;;  %v1751_v12 = vcvt.s32.f32 %v1744_v63  ;;  %v1846_v11 = vshrl.u32 %v1828_v51, %v1844_v30  ;;  %v826_v21 = vxor.u32 2147483648, %v4489_v44 }
 0x189   : > { %v829_v57 = vxor.u32 2147483648, %v4487_v24  ;;  %v1127_v1 = vsel %vm5302_vm3, %v4838_v55, %v1124_v53  ;;  %v1651_v28 = vsel %vm1568_vm4, %v1650_v61, %v1649_v48  ;;  %vm1671_vm5 = vcmp.lt.s32.totalorder %v5028_v31, 0 }
 0x18a   : > { %v5325_v26 = vsub.s32 %v1935_v10, %v1938_v59  ;;  %v5327_v3 = vadd.f32 %v693_v13, %v571_v52  ;;  %v1752_v50 = vmul.f32 %v1751_v12, %v1749_v42  ;;  %v1845_v25 = vshll.u32 %v5229_v45, %v5270_v9  ;;  %v5337_v45 = vpop.f32.mrf.mxu0 }
 0x18b   : > { %v1851_v0 = vor.u32 4788187, %v1850_v4  ;;  %vm822_vm6 = vweird.f32 %v4814_v23  ;;  %vm825_vm7 = vcmp.eq.s32.totalorder %v823_v60, 0  ;;  %vm828_vm8 = vcmp.eq.s32.totalorder %v823_v60, 2 }
 0x18c   : > { %v1941_v18 = vsub.s32 0, %v5325_v26  ;;  %v1240_v54 = vand.u32 3, %v1239_v37  ;;  %v920_v2 = vsel %vm835_vm11, %v919_v49, %v4935_v39  ;;  %4498 = vcosq.f32 %v1127_v1 }
 0x18d   : > { %v1847_v17 = vor.u32 %v1846_v11, %v1845_v25  ;;  %v827_v46 = vsel %vm825_vm7, %v4487_v24, %v826_v21  ;;  %v830_v48 = vsel %vm828_vm8, %v829_v57, %v4489_v44  ;;  %4500 = vsinq.f32 %v1127_v1 }
 0x18e   : > { %v3934_v10 = vmin.u32 %v1941_v18, %v5325_v26  ;;  %vm824_vm9 = vcmp.lt.s32.totalorder %v823_v60, 2  ;;  %v6524_v9 = vand.u32 2147483647, %v4941_v38  ;;  %v1753_v20 = vxor.u32 2147483648, %v1752_v50  ;;  %v5356_v60 = vpop.f32.mrf.mxu0 }
 0x18f   : > { %v1852_v27 = vand.u32 2147483647, %v1851_v0  ;;  %v922_v39 = vsel %vm5296_vm2, 0, %v920_v2  ;;  %v831_v32 = vsel %vm824_vm9, %v827_v46, %v830_v48  ;;  %vm1242_vm11 = vcmp.eq.s32.totalorder %v1240_v54, 0  ;;  %v5350_v47 = vpop.eup %4490 }
 0x190   : > { %vm5341_vm10 = vcmp.le.f32.partialorder %v6524_v9, 0.7853982  ;;  %v1943_v34 = vclz %v3934_v10  ;;  %vm1245_vm14 = vcmp.eq.s32.totalorder %v1240_v54, 2  ;;  %v1854_v6 = vcvt.s32.f32 %v1847_v17  ;;  %v5353_v61 = vpop.eup %4492  ;;  %v703_v25 = vpop.f32.mrf.mxu0 }
 0x191   : > { %v1654_v22 = vsel %vm5341_vm10, %v4941_v38, %v1651_v28  ;;  %v1244_v63 = vsel %vm1242_vm11, %v4487_v24, %v826_v21  ;;  %v1247_v30 = vsel %vm1245_vm14, %v829_v57, %v4489_v44  ;;  %v1652_v53 = vsub.s32 4, %v5069_v14  ;;  %v5389_v17 = vpop.permute.xlu0 %580 }
 0x192   : > { %vm1774_vm15 = vcmp.lt.s32.totalorder %v5048_v56, 0  ;;  %v3935_v16 = vadd.s32 4294967294, %v1943_v34  ;;  %v1343_v13 = vadd.s32 3, %v922_v39  ;;  %4502 = vcosq.f32 %v1654_v22 }
 0x193   : > { %v1754_v42 = vsel %vm1671_vm5, %v1753_v20, %v1752_v50  ;;  %v1855_v51 = vmul.f32 %v1854_v6, %v1852_v27  ;;  %vm1241_vm2 = vcmp.lt.s32.totalorder %v1240_v54, 2  ;;  %4504 = vsinq.f32 %v1654_v22 }
 0x194   : > { %v4495_v4 = vpop.eup %4494  ;;  %vm3936_vm7 = vcmp.lt.s32.totalorder %v3935_v16, 0  ;;  %v832_v24 = vsel %vm822_vm6, nan, %v831_v32  ;;  %v1248_v44 = vsel %vm1241_vm2, %v1244_v63, %v1247_v30  ;;  %v5362_v59 = vadd.f32 %v695_v58, %v571_v52 }
 0x195   : > { %v4497_v37 = vpop.eup %4496  ;;  %v6527_v49 = vand.u32 2147483647, %v5048_v56  ;;  %v1946_v11 = vsel %vm3936_vm7, 0, %v3935_v16  ;;  %v926_v21 = vand.u32 3, %v922_v39  ;;  %v1653_v57 = vsel %vm1568_vm4, %v1652_v53, %v5069_v14 }
 0x196   : > { %v6530_v1 = vand.u32 2147483647, %v5028_v31  ;;  %v1931_v52 = vadd.s32 %v5247_v5, %v5245_v62  ;;  %v1951_v58 = vsub.s32 4294967266, %v1946_v11  ;;  %v1344_v50 = vand.u32 3, %v1343_v13 }
 0x197   : > { %vm5366_vm8 = vcmp.le.f32.partialorder %v6527_v49, 0.7853982  ;;  %v1856_v18 = vxor.u32 2147483648, %v1855_v51  ;;  %v1947_v54 = vsub.s32 32, %v1946_v11  ;;  %v5385_v14 = vmul.f32 %v832_v24, %v5327_v3 }
 0x198   : > { %vm5375_vm9 = vcmp.le.f32.partialorder %v6530_v1, 0.7853982  ;;  %v1249_v2 = vsel %vm822_vm6, nan, %v1248_v44  ;;  %v1952_v46 = vadd.s32 127, %v1951_v58  ;;  %v929_v48 = vxor.u32 2147483648, %v4497_v37 }
 0x199   : > { %v1757_v0 = vsel %vm5375_vm9, %v5028_v31, %v1754_v42  ;;  %v932_v62 = vxor.u32 2147483648, %v4495_v4  ;;  %v1655_v5 = vsel %vm5341_vm10, 0, %v1653_v57  ;;  %vm925_vm4 = vweird.f32 %v4818_v29  ;;  %v5398_v20 = vpop.eup %4498 }
 0x19a   : > { %vm928_vm11 = vcmp.eq.s32.totalorder %v926_v21, 0  ;;  %v5395_v10 = vadd.f32 %v703_v25, %v5389_v17  ;;  %v1755_v9 = vsub.s32 4, %v5150_v8  ;;  %4506 = vcosq.f32 %v1757_v0  ;;  %v5400_v27 = vpop.eup %4500 }
 0x19b   : > { %v1953_v23 = vshll.u32 %v1952_v46, 23  ;;  %vm931_vm6 = vcmp.eq.s32.totalorder %v926_v21, 2  ;;  %vm1346_vm14 = vcmp.eq.s32.totalorder %v1344_v50, 0  ;;  %4508 = vsinq.f32 %v1757_v0 }
 0x19c   : > { %v1857_v36 = vsel %vm1774_vm15, %v1856_v18, %v1855_v51  ;;  %v1949_v39 = vshrl.u32 %v1931_v52, %v1947_v54  ;;  %vm1349_vm10 = vcmp.eq.s32.totalorder %v1344_v50, 2  ;;  %v2075_v22 = vadd.s32 3, %v1655_v5 }
 0x19d   : > { %v930_v34 = vsel %vm928_vm11, %v4495_v4, %v929_v48  ;;  %v933_v32 = vsel %vm931_vm6, %v932_v62, %v4497_v37  ;;  %v1348_v6 = vsel %vm1346_vm14, %v4495_v4, %v929_v48  ;;  %v1351_v63 = vsel %vm1349_vm10, %v932_v62, %v4497_v37  ;;  %v576_v62 = vpop.permute.xlu1 %575 }
 0x19e   : > { %v1948_v30 = vshll.u32 %v5325_v26, %v1946_v11  ;;  %v1954_v53 = vor.u32 4788187, %v1953_v23  ;;  %v5405_v16 = vand.u32 3, %v1655_v5  ;;  %v1756_v13 = vsel %vm1671_vm5, %v1755_v9, %v5150_v8 }
 0x19f   : > { %v1860_v42 = vsel %vm5366_vm8, %v5048_v56, %v1857_v36  ;;  %vm927_vm2 = vcmp.lt.s32.totalorder %v926_v21, 2  ;;  %vm1345_vm7 = vcmp.lt.s32.totalorder %v1344_v50, 2  ;;  %v1022_v51 = vsub.s32 4, %v4954_v7  ;;  %v5414_v24 = vpop.eup %4502 }
 0x1a0   : > { %v1950_v4 = vor.u32 %v1949_v39, %v1948_v30  ;;  %v934_v44 = vsel %vm927_vm2, %v930_v34, %v933_v32  ;;  %v1352_v26 = vsel %vm1345_vm7, %v1348_v6, %v1351_v63  ;;  %v1125_v37 = vsub.s32 4, %v5019_v41  ;;  %v5417_v49 = vpop.eup %4504 }
 0x1a1   : > { %v5420_v11 = vmul.f32 %v1249_v2, %v5327_v3  ;;  %v5422_v8 = vand.u32 3, %v2075_v22  ;;  %v1758_v21 = vsel %vm5375_vm9, 0, %v1756_v13  ;;  %v1023_v57 = vsel %vm938_vm13, %v1022_v51, %v4954_v7 }
 0x1a2   : > { %v1955_v1 = vand.u32 2147483647, %v1954_v53  ;;  %vm1661_vm5 = vcmp.eq.s32.totalorder %v5405_v16, 0  ;;  %v1025_v52 = vsel %vm5277_vm1, 0, %v1023_v57  ;;  %v1126_v3 = vsel %vm1041_vm12, %v1125_v37, %v5019_v41 }
 0x1a3   : > { %4510 = vcosq.f32 %v1860_v42  ;;  %v935_v58 = vsel %vm925_vm4, nan, %v934_v44  ;;  %v1353_v28 = vsel %vm925_vm4, nan, %v1352_v26  ;;  %v1665_v50 = vxor.u32 2147483648, %v5414_v24 }
 0x1a4   : > { %v1957_v7 = vcvt.s32.f32 %v1950_v4  ;;  %v1662_v25 = vxor.u32 2147483648, %v5417_v49  ;;  %v2179_v0 = vadd.s32 3, %v1758_v21  ;;  %v1128_v43 = vsel %vm5302_vm3, 0, %v1126_v3 }
 0x1a5   : > { %4512 = vsinq.f32 %v1860_v42  ;;  %vm1664_vm13 = vcmp.eq.s32.totalorder %v5405_v16, 2  ;;  %vm2081_vm1 = vcmp.eq.s32.totalorder %v5422_v8, 2  ;;  %v1447_v41 = vadd.s32 3, %v1025_v52 }
 0x1a6   : > { %v1958_v18 = vmul.f32 %v1957_v7, %v1955_v1  ;;  %v5446_v54 = vmul.f32 %v935_v58, %v5362_v59  ;;  %v5449_v29 = vmul.f32 %v1353_v28, %v5362_v59  ;;  %v5451_v2 = vand.u32 3, %v1758_v21 }
 0x1a7   : > { %v5453_v46 = vpop.eup %4506  ;;  %v5456_v40 = vsel %vm1664_vm13, %v1665_v50, %v5417_v49  ;;  %v5459_v48 = vsel %vm2081_vm1, %v1665_v50, %v5417_v49  ;;  %v1029_v5 = vand.u32 3, %v1025_v52  ;;  %v1132_v9 = vand.u32 3, %v1128_v43 }
 0x1a8   : > { %v5461_v23 = vpop.eup %4508  ;;  %vm1877_vm12 = vcmp.lt.s32.totalorder %v5123_v19, 0  ;;  %v5469_v59 = vsel %vm1661_vm5, %v5414_v24, %v1662_v25  ;;  %v5471_v36 = vand.u32 3, %v2179_v0  ;;  %v5474_v39 = vadd.f32 %v5337_v45, %v576_v62 }
 0x1a9   : > { %v5477_v22 = vadd.f32 %v5356_v60, %v576_v62  ;;  %v1032_v34 = vxor.u32 2147483648, %v5353_v61  ;;  %v1035_v32 = vxor.u32 2147483648, %v5350_v47  ;;  %v1135_v6 = vxor.u32 2147483648, %v5400_v27 }
 0x1aa   : > { %v1448_v63 = vand.u32 3, %v1447_v41  ;;  %v1959_v30 = vxor.u32 2147483648, %v1958_v18  ;;  %v1768_v53 = vxor.u32 2147483648, %v5453_v46  ;;  %v1138_v13 = vxor.u32 2147483648, %v5398_v20 }
 0x1ab   : > { %v1551_v42 = vadd.s32 3, %v1128_v43  ;;  %vm1764_vm3 = vcmp.eq.s32.totalorder %v5451_v2, 0  ;;  %v1765_v45 = vxor.u32 2147483648, %v5461_v23  ;;  %vm1031_vm4 = vcmp.eq.s32.totalorder %v1029_v5, 0 }
 0x1ac   : > { %vm1034_vm11 = vcmp.eq.s32.totalorder %v1029_v5, 2  ;;  %vm1134_vm6 = vcmp.eq.s32.totalorder %v1132_v9, 0  ;;  %vm1137_vm14 = vcmp.eq.s32.totalorder %v1132_v9, 2  ;;  %vm1450_vm10 = vcmp.eq.s32.totalorder %v1448_v63, 0 }
 0x1ad   : > { %vm1453_vm2 = vcmp.eq.s32.totalorder %v1448_v63, 2  ;;  %v1552_v60 = vand.u32 3, %v1551_v42  ;;  %v1136_v51 = vsel %vm1134_vm6, %v5398_v20, %v1135_v6  ;;  %v1452_v4 = vsel %vm1450_vm10, %v5350_v47, %v1032_v34 }
 0x1ae   : > { %v1455_v44 = vsel %vm1453_vm2, %v1035_v32, %v5353_v61  ;;  %v1858_v26 = vsub.s32 4, %v5219_v15  ;;  %vm2078_vm7 = vcmp.eq.s32.totalorder %v5422_v8, 0  ;;  %vm1763_vm5 = vcmp.lt.s32.totalorder %v5451_v2, 2 }
 0x1af   : > { %v1139_v37 = vsel %vm1137_vm14, %v1138_v13, %v5400_v27  ;;  %vm1449_vm13 = vcmp.lt.s32.totalorder %v1448_v63, 2  ;;  %vm1554_vm1 = vcmp.eq.s32.totalorder %v1552_v60, 0  ;;  %vm1557_vm0 = vcmp.eq.s32.totalorder %v1552_v60, 2 }
 0x1b0   : > { %vm1553_vm9 = vcmp.lt.s32.totalorder %v1552_v60, 2  ;;  %v1556_v21 = vsel %vm1554_vm1, %v5398_v20, %v1135_v6  ;;  %v1559_v57 = vsel %vm1557_vm0, %v1138_v13, %v5400_v27  ;;  %v1859_v1 = vsel %vm1774_vm15, %v1858_v26, %v5219_v15  ;;  %v5499_v52 = vpop.eup %4510 }
 0x1b1   : > { %vm1660_vm6 = vcmp.lt.s32.totalorder %v5405_v16, 2  ;;  %v1033_v3 = vsel %vm1031_vm4, %v5350_v47, %v1032_v34  ;;  %v1036_v58 = vsel %vm1034_vm11, %v1035_v32, %v5353_v61  ;;  %v1456_v28 = vsel %vm1449_vm13, %v1452_v4, %v1455_v44 }
 0x1b2   : > { %v1560_v50 = vsel %vm1553_vm9, %v1556_v21, %v1559_v57  ;;  %v1960_v20 = vsel %vm1877_vm12, %v1959_v30, %v1958_v18  ;;  %vm2185_vm0 = vcmp.eq.s32.totalorder %v5471_v36, 2  ;;  %vm1028_vm14 = vweird.f32 %v4824_v35  ;;  %v5510_v15 = vpop.eup %4512 }
 0x1b3   : > { %vm1133_vm15 = vcmp.lt.s32.totalorder %v1132_v9, 2  ;;  %vm2077_vm10 = vcmp.lt.s32.totalorder %v5422_v8, 2  ;;  %vm1761_vm2 = vweird.f32 %v5028_v31  ;;  %vm1030_vm4 = vcmp.lt.s32.totalorder %v1029_v5, 2 }
 0x1b4   : > { %vm1131_vm1 = vweird.f32 %v4838_v55  ;;  %v1140_v47 = vsel %vm1133_vm15, %v1136_v51, %v1139_v37  ;;  %v1861_v61 = vsel %vm5366_vm8, 0, %v1859_v1  ;;  %v1037_v27 = vsel %vm1030_vm4, %v1033_v3, %v1036_v58  ;;  %v586_v3 = vpop.permute.xlu1 %585 }
 0x1b5   : > { %v1457_v7 = vsel %vm1028_vm14, nan, %v1456_v28  ;;  %v1561_v0 = vsel %vm1131_vm1, nan, %v1560_v50  ;;  %v6533_v43 = vand.u32 2147483647, %v5123_v19  ;;  %vm1658_vm11 = vweird.f32 %v4941_v38 }
 0x1b6   : > { %v1766_v55 = vsel %vm1764_vm3, %v5453_v46, %v1765_v45  ;;  %vm6536_vm8 = vcmp.eq.s32.totalorder %v5451_v2, 2  ;;  %v1961_v18 = vsub.s32 4, %v5313_v33  ;;  %vm2182_vm13 = vcmp.eq.s32.totalorder %v5471_v36, 0 }
 0x1b7   : > { %vm5521_vm9 = vcmp.le.f32.partialorder %v6533_v43, 0.7853982  ;;  %v1769_v12 = vsel %vm6536_vm8, %v1768_v53, %v5461_v23  ;;  %v2187_v5 = vsel %vm2185_vm0, %v1768_v53, %v5461_v23  ;;  %v1141_v9 = vsel %vm1131_vm1, nan, %v1140_v47 }
 0x1b8   : > { %v1963_v62 = vsel %vm5521_vm9, %v5123_v19, %v1960_v20  ;;  %v2283_v34 = vadd.s32 3, %v1861_v61  ;;  %v2184_v32 = vsel %vm2182_vm13, %v5453_v46, %v1765_v45  ;;  %v1038_v6 = vsel %vm1028_vm14, nan, %v1037_v27 }
 0x1b9   : > { %v5544_v63 = vmul.f32 %v1457_v7, %v5474_v39  ;;  %v5547_v30 = vmul.f32 %v1561_v0, %v5477_v22  ;;  %v2080_v13 = vsel %vm2078_vm7, %v5414_v24, %v1662_v25  ;;  %v1770_v23 = vsel %vm1763_vm5, %v1766_v55, %v1769_v12 }
 0x1ba   : > { %vm2181_vm3 = vcmp.lt.s32.totalorder %v5471_v36, 2  ;;  %4514 = vcosq.f32 %v1963_v62  ;;  %v5558_v35 = vmul.f32 %v1141_v9, %v5477_v22  ;;  %v1962_v46 = vsel %vm1877_vm12, %v1961_v18, %v5313_v33  ;;  %v705_v22 = vpop.f32.mrf.mxu0 }
 0x1bb   : > { %4516 = vsinq.f32 %v1963_v62  ;;  %v5565_v49 = vpack.i.bf16 %v5449_v29, %v5420_v11  ;;  %v1667_v24 = vsel %vm1660_vm6, %v5469_v59, %v5456_v40  ;;  %v2188_v25 = vsel %vm2181_vm3, %v2184_v32, %v2187_v5 }
 0x1bc   : > { %v5572_v2 = vmul.f32 %v1038_v6, %v5474_v39  ;;  %v2284_v36 = vand.u32 3, %v2283_v34  ;;  %v1868_v53 = vxor.u32 2147483648, %v5510_v15  ;;  %v1871_v33 = vxor.u32 2147483648, %v5499_v52 }
 0x1bd   : > { %4230 = vrot.lane.b32.xlu0 %v5565_v49, %s4607_s30  ;;  %v5580_v42 = vpack.i.bf16 %v5544_v63, %v5420_v11  ;;  %v2968_v16 = vpack.c.bf16 %v5547_v30, %v5449_v29  ;;  %v2084_v40 = vsel %vm2077_vm10, %v2080_v13, %v5459_v48  ;;  %v1771_v59 = vsel %vm1761_vm2, nan, %v1770_v23 }
 0x1be   : > { %v1964_v39 = vsel %vm5521_vm9, 0, %v1962_v46  ;;  %v2967_v45 = vpack.c.bf16 %v5544_v63, %v5420_v11  ;;  %v2189_v60 = vsel %vm1761_vm2, nan, %v2188_v25  ;;  %v1865_v51 = vand.u32 3, %v1861_v61 }
 0x1bf   : > { %4260 = vrot.lane.b32.xlu1 %v5580_v42, %s4608_s19  ;;  %2993 = vmatprep.subr.bf16.mxu1 %v2968_v16  ;;  %v5599_v8 = vpack.i.bf16 %v5446_v54, %v5385_v14  ;;  %v2966_v48 = vpack.c.bf16 %v5558_v35, %v5446_v54  ;;  %v1668_v4 = vsel %vm1658_vm11, nan, %v1667_v24  ;;  %v706_v11 = vadd.f32 %v705_v22, %v5389_v17 }
 0x1c0   : > { %vm2286_vm12 = vcmp.eq.s32.totalorder %v2284_v36, 0  ;;  %vm2289_vm7 = vcmp.eq.s32.totalorder %v2284_v36, 2  ;;  %2994 = vmatpush1.bf16.msra.mxu1 %v2967_v45  ;;  %v2387_v26 = vadd.s32 3, %v1964_v39  ;;  %v5612_v37 = vpack.i.bf16 %v5572_v2, %v5385_v14 }
 0x1c1   : > { %v2288_v31 = vsel %vm2286_vm12, %v5499_v52, %v1868_v53  ;;  %v2291_v44 = vsel %vm2289_vm7, %v1871_v33, %v5510_v15  ;;  %4235 = vrot.lane.b32.xlu0 %v5599_v8, %s4607_s30  ;;  %2995 = vmatprep.subr.bf16.mxu1 %v2966_v48  ;;  %v2085_v21 = vsel %vm1658_vm11, nan, %v2084_v40  ;;  %v5616_v17 = vmul.f32 %v1771_v59, %v706_v11 }
 0x1c2   : > { %v5618_v57 = vmul.f32 %v2189_v60, %v706_v11  ;;  %v2965_v1 = vpack.c.bf16 %v5572_v2, %v5385_v14  ;;  %vm1867_vm5 = vcmp.eq.s32.totalorder %v1865_v51, 0  ;;  %vm1870_vm6 = vcmp.eq.s32.totalorder %v1865_v51, 2  ;;  %v707_v14 = vpop.f32.mrf.mxu0 }
 0x1c3   : > { %vm2285_vm0 = vcmp.lt.s32.totalorder %v2284_v36, 2  ;;  %4265 = vrot.lane.b32.xlu1 %v5612_v37, %s4608_s19  ;;  %v1869_v58 = vsel %vm1867_vm5, %v5499_v52, %v1868_v53  ;;  %v1872_v28 = vsel %vm1870_vm6, %v1871_v33, %v5510_v15  ;;  %v1968_v50 = vand.u32 3, %v1964_v39  ;;  %v525_v39 = vld [vmem:[%s6473_s1] sm:$0x3] }
 0x1c4   : > { %v2292_v38 = vsel %vm2285_vm0, %v2288_v31, %v2291_v44  ;;  %2996 = vmatpush1.bf16.msra.mxu1 %v2965_v1  ;;  %v5627_v20 = vmul.f32 %v1668_v4, %v5395_v10  ;;  %v2398_v47 = vmul.f32 %v2085_v21, %v5395_v10  ;;  %v2388_v61 = vand.u32 3, %v2387_v26  ;;  %v709_v55 = vpop.f32.mrf.mxu0 }
 0x1c5   : > { %4240 = vrot.lane.b32.xlu0 %v5565_v49, %s4609_s20  ;;  %vm1864_vm14 = vweird.f32 %v5048_v56  ;;  %vm1866_vm15 = vcmp.lt.s32.totalorder %v1865_v51, 2  ;;  %v5635_v52 = vpack.i.bf16 %v5558_v35, %v5446_v54  ;;  %v708_v27 = vadd.f32 %v707_v14, %v586_v3 }
 0x1c6   : > { %v1873_v7 = vsel %vm1866_vm15, %v1869_v58, %v1872_v28  ;;  %v2293_v0 = vsel %vm1864_vm14, nan, %v2292_v38  ;;  %vm1969_vm10 = vcmp.lt.s32.totalorder %v1968_v50, 2  ;;  %v5642_v41 = vpack.i.bf16 %v5618_v57, %v2398_v47 }
 0x1c7   : > { %v4515_v15 = vpop.eup %4514  ;;  %4270 = vrot.lane.b32.xlu1 %v5580_v42, %s4610_s26  ;;  %v5646_v54 = vpack.i.bf16 %v5616_v17, %v5627_v20  ;;  %vm1973_vm2 = vcmp.eq.s32.totalorder %v1968_v50, 2  ;;  %vm2393_vm4 = vcmp.eq.s32.totalorder %v2388_v61, 2  ;;  %vm1970_vm1 = vcmp.eq.s32.totalorder %v1968_v50, 0 }
 0x1c8   : > { %v4517_v10 = vpop.eup %4516  ;;  %v1974_v43 = vxor.u32 2147483648, %v4515_v15  ;;  %vm2390_vm9 = vcmp.eq.s32.totalorder %v2388_v61, 0  ;;  %vm2389_vm11 = vcmp.lt.s32.totalorder %v2388_v61, 2  ;;  %v710_v34 = vadd.f32 %v709_v55, %v586_v3 }
 0x1c9   : > { %v1971_v12 = vxor.u32 2147483648, %v4517_v10  ;;  %4245 = vrot.lane.b32.xlu0 %v5599_v8, %s4609_s20  ;;  %vm1967_vm8 = vweird.f32 %v5123_v19  ;;  %v2400_v13 = vmul.f32 %v2293_v0, %v708_v27  ;;  %v1874_v24 = vsel %vm1864_vm14, nan, %v1873_v7 }
 0x1ca   : > { %v1975_v18 = vsel %vm1973_vm2, %v1974_v43, %v4517_v10  ;;  %v2395_v62 = vsel %vm2393_vm4, %v1974_v43, %v4517_v10  ;;  %v1980_v22 = vmul.f32 %v1874_v24, %v708_v27  ;;  %v4284_v33 = vpack.i.bf16 %v5547_v30, %v5544_v63  ;;  %v4479_v63 = vld [vmem:[%s6477_s5 + $0x4] ss:$8 sps:$4 sm:$0xff]  }
 0x1cb   : > { %v1972_v5 = vsel %vm1970_vm1, %v4515_v15, %v1971_v12  ;;  %v2392_v9 = vsel %vm2390_vm9, %v4515_v15, %v1971_v12  ;;  %4275 = vrot.lane.b32.xlu1 %v5612_v37, %s4610_s26  ;;  %v3052_v53 = vpack.c.bf16 %v2400_v13, %v2398_v47  ;;  %v4289_v59 = vpack.i.bf16 %v5558_v35, %v5572_v2  ;;  %v546_v35 = vld [vmem:[%s6475_s3 + $0x40] sm:$0xff] }
 0x1cc   : > { %v1976_v32 = vsel %vm1969_vm10, %v1972_v5, %v1975_v18  ;;  %v2396_v6 = vsel %vm2389_vm11, %v2392_v9, %v2395_v62  ;;  %v3050_v40 = vpack.c.bf16 %v1980_v22, %v5627_v20  ;;  %vm6503_vm13 = vcmask 785408  }
 0x1cd   : > { %v1977_v23 = vsel %vm1967_vm8, nan, %v1976_v32  ;;  %v2397_v46 = vsel %vm1967_vm8, nan, %v2396_v6  ;;  %4250 = vrot.lane.b32.xlu0 %v5565_v49, %s4611_s27  ;;  %v4314_v49 = vpack.i.bf16 %v5547_v30, %v5449_v29  ;;  %v4476_v29 = vld [vmem:[%s6476_s4 + $0x4] ss:$8 sps:$4 sm:$0xff]   ;;  %4078 = vmatprep.mubr.msk.bf16.mxu0 %vm6503_vm13, %v4479_v63  ;;  %v2555_v60 = vadd.s32 4294967295, %v525_v39 }
 0x1ce   : > { %v1981_v25 = vmul.f32 %v1977_v23, %v710_v34  ;;  %v2401_v36 = vmul.f32 %v2397_v46, %v710_v34  ;;  %4027 = vmatprep.mubr.msk.bf16.mxu1 %vm6503_vm13, %v4476_v29  ;;  %v547_v30 = vld [vmem:[%s6475_s3 + $0x48] sm:$0xff]  ;;  %v2499_v31 = vadd.s32 4294967294, %v525_v39  ;;  %v6537_v21 = vmov 0  }
 0x1cf   : > { %4280 = vrot.lane.b32.xlu1 %v5580_v42, %s4612_s17  ;;  %vm2556_vm3 = vcmp.ge.s32.totalorder %v2555_v60, 0  ;;  %vm2557_vm12 = vcmp.lt.s32.totalorder %v2555_v60, 16  ;;  %v2443_v3 = vadd.s32 4294967293, %v525_v39  ;;  %v2723_v20 = vadd.s32 3, %v525_v39 }
 0x1d0   : > { %v3053_v19 = vpack.c.bf16 %v2401_v36, %v5618_v57  ;;  %v3051_v56 = vpack.c.bf16 %v1981_v25, %v5616_v17  ;;  %v4459_v42 = vpack.i.bf16 %v2401_v36, %v2400_v13  ;;  %v4464_v16 = vpack.i.bf16 %v1981_v25, %v1980_v22  ;;  %vm2558_vm7 = vmand %vm2556_vm3, %vm2557_vm12 }
 0x1d1   : > { %4255 = vrot.lane.b32.xlu0 %v5599_v8, %s4611_s27  ;;  %v2448_v8 = vlaneseq  ;;  %v2559_v17 = vsel %vm2558_vm7, 1, %v6537_v21  ;;  %vm2500_vm5 = vcmp.ge.s32.totalorder %v2499_v31, 0  ;;  %vm2501_vm6 = vcmp.lt.s32.totalorder %v2499_v31, 16 }
 0x1d2   : > { %3078 = vmatprep.subr.bf16.mxu0 %v3053_v19  ;;  %vm2502_vm0 = vmand %vm2500_vm5, %vm2501_vm6  ;;  %vm2444_vm14 = vcmp.ge.s32.totalorder %v2443_v3, 0  ;;  %vm2445_vm15 = vcmp.lt.s32.totalorder %v2443_v3, 16  ;;  %v2667_v14 = vadd.s32 2, %v525_v39  ;;  %vm2538_vm2 = vcmask 7168  }
 0x1d3   : > { %3079 = vmatpush1.bf16.msra.mxu0 %v3052_v53  ;;  %4285 = vrot.lane.b32.xlu1 %v4284_v33, %s4607_s30  ;;  %v2449_v11 = vshrl.u32 %v2448_v8, 7  ;;  %v2503_v47 = vsel %vm2502_vm0, 1, %v6537_v21  ;;  %vm5757_vm1 = vmand %vm2444_vm14, %vm2445_vm15  ;;  %vm2724_vm9 = vcmp.ge.s32.totalorder %v2723_v20, 0  ;;  %vm2725_vm11 = vcmp.lt.s32.totalorder %v2723_v20, 16 }
 0x1d4   : > { %3080 = vmatprep.subr.bf16.mxu0 %v3051_v56  ;;  %vm2668_vm3 = vcmp.ge.s32.totalorder %v2667_v14, 0  ;;  %vm2669_vm12 = vcmp.lt.s32.totalorder %v2667_v14, 16  ;;  %v2447_v9 = vsel %vm5757_vm1, 1, %v6537_v21  ;;  %vm2726_vm5 = vmand %vm2724_vm9, %vm2725_vm11  ;;  %vm2482_vm15 = vcmask 15360  }
 0x1d5   : > { %4315 = vrot.lane.b32.xlu0 %v4314_v49, %s4608_s19  ;;  %v5736_v57 = vsub.s32 0, %v2449_v11  ;;  %vm5784_vm6 = vmand %vm2668_vm3, %vm2669_vm12  ;;  %vm2426_vm3 = vcmask 23552  }
 0x1d7   : > { %3081 = vmatpush1.bf16.msra.mxu0 %v3050_v40  ;;  %4290 = vrot.lane.b32.xlu1 %v4289_v59, %s4607_s30  ;;  %s4617_s30 = smov 96   ;;  %v2563_v38 = vrot.slane %v2559_v17, %v5736_v57  ;;  %v2507_v5 = vrot.slane %v2503_v47, %v5736_v57  ;;  %v2451_v56 = vrot.slane %v2447_v9, %v5736_v57 }
 0x1d9   : > { %4320 = vrot.lane.b32.xlu0 %v5635_v52, %s4608_s19  ;;  %vm5753_vm4 = vcmp.eq.s32.totalorder %v2563_v38, 1  ;;  %vm5811_vm9 = vcmp.eq.s32.totalorder %v2507_v5, 1 }
 0x1da   : > { %vm3958_vm7 = vmpackc.low %vm5753_vm4, %vm5753_vm4 }
 0x1db   : > { %4295 = vrot.lane.b32.xlu1 %v4284_v33, %s4609_s20 }
 0x1dd   : > { %4325 = vrot.lane.b32.xlu0 %v4314_v49, %s4610_s26 }
 0x1df   : > { %4300 = vrot.lane.b32.xlu1 %v4289_v59, %s4609_s20  ;;  %s512_s20 = sand.u32 1, %s4590_s22  }
 0x1e1   : > { %4330 = vrot.lane.b32.xlu0 %v5635_v52, %s4610_s26  ;;  %s3876_s26 = sshll.u32 %s512_s20, 5 }
 0x1e3   : > { %4305 = vrot.lane.b32.xlu1 %v4284_v33, %s4611_s27 }
 0x1e5   : > { %4335 = vrot.lane.b32.xlu0 %v4314_v49, %s4612_s17  ;;  %v5802_v49 = vsel %vm2726_vm5, 1, %v6537_v21  ;;  %vm2706_vm5 = vcmask 1022976  }
 0x1e7   : > { %4310 = vrot.lane.b32.xlu1 %v4289_v59, %s4611_s27  ;;  %v5818_v59 = vsel %vm5784_vm6, 1, %v6537_v21  ;;  %vm5838_vm6 = vcmp.eq.s32.totalorder %v2451_v56, 1  ;;  %s514_s27 = scalar_lea.vmem [#allocation2], %s3876_s26 }
 0x1e9   : > { %4340 = vrot.lane.b32.xlu0 %v5642_v41, %s6504_s21 }
 0x1eb   : > { %4400 = vrot.lane.b32.xlu1 %v4459_v42, %s6504_s21 }
 0x1ed   : > { %4345 = vrot.lane.b32.xlu0 %v5646_v54, %s6504_s21 }
 0x1ef   : > { %4405 = vrot.lane.b32.xlu1 %v4464_v16, %s6504_s21 }
 0x1f1   : > { %4350 = vrot.lane.b32.xlu0 %v5642_v41, %s4614_s28 }
 0x1f3   : > { %4410 = vrot.lane.b32.xlu1 %v4459_v42, %s4614_s28 }
 0x1f5   : > { %4355 = vrot.lane.b32.xlu0 %v5646_v54, %s4614_s28 }
 0x1f7   : > { %4415 = vrot.lane.b32.xlu1 %v4464_v16, %s4614_s28 }
 0x1f9   : > { %4360 = vrot.lane.b32.xlu0 %v5642_v41, %s4615_s29 }
 0x1fb   : > { %4420 = vrot.lane.b32.xlu1 %v4459_v42, %s4615_s29 }
 0x1fd   : > { %4365 = vrot.lane.b32.xlu0 %v5646_v54, %s4615_s29 }
 0x1ff   : > { %4425 = vrot.lane.b32.xlu1 %v4464_v16, %s4615_s29 }
 0x201   : > { %4370 = vrot.lane.b32.xlu0 %v5635_v52, %s4612_s17 }
 0x203   : > { %4430 = vrot.lane.b32.xlu1 %v5612_v37, %s4612_s17  ;;  %s4618_s17 = smov 112   ;;  %v5733_v37 = vsub.s32 1, %v2449_v11 }
 0x205   : > { %4375 = vrot.lane.b32.xlu0 %v5642_v41, %s4616_s18  ;;  %v2567_v28 = vrot.slane %v2559_v17, %v5733_v37  ;;  %v2511_v43 = vrot.slane %v2503_v47, %v5733_v37  ;;  %v2455_v19 = vrot.slane %v2447_v9, %v5733_v37  ;;  %v2735_v11 = vrot.slane %v5802_v49, %v5733_v37 }
 0x206   : > { %v2679_v14 = vrot.slane %v5818_v59, %v5733_v37 }
 0x207   : > { %4440 = vrot.lane.b32.xlu1 %v4459_v42, %s4616_s18  ;;  %vm5749_vm10 = vcmp.eq.s32.totalorder %v2567_v28, 1  ;;  %vm5788_vm1 = vcmp.eq.s32.totalorder %v2511_v43, 1  ;;  %vm5830_vm12 = vcmp.eq.s32.totalorder %v2455_v19, 1  ;;  %v2731_v28 = vrot.slane %v5802_v49, %v5736_v57 }
 0x208   : > { %vm3955_vm8 = vmpackc.low %vm5749_vm10, %vm5749_vm10  ;;  %vm5892_vm4 = vcmp.eq.s32.totalorder %v2735_v11, 1 }
 0x209   : > { %4380 = vrot.lane.b32.xlu0 %v5646_v54, %s4616_s18  ;;  %vm3967_vm10 = vmpackc.low %vm5788_vm1, %vm5788_vm1  ;;  %vm2803_vm1 = vcmask 261120  }
 0x20b   : > { %4445 = vrot.lane.b32.xlu1 %v4464_v16, %s4616_s18  ;;  %s6431_s18 = scalar_lea.sflag [#allocation3], %s512_s20 }
 0x20d   : > { %4385 = vrot.lane.b32.xlu0 %v5642_v41, %s4617_s30 }
 0x20f   : > { %4450 = vrot.lane.b32.xlu1 %v4459_v42, %s4617_s30 }
 0x211   : > { %4390 = vrot.lane.b32.xlu0 %v5646_v54, %s4617_s30 }
 0x213   : > { %4455 = vrot.lane.b32.xlu1 %v4464_v16, %s4617_s30  ;;  %s4621_s30 = smov [#allocation2]  }
 0x214   : > { %s4542_s19 = sshll.u32 %s4621_s30, 4  ;;  %s4543_s19 = int_to_ptr.vmem [resolvable:$false] %s4542_s19 }
 0x215   : > { %4395 = vrot.lane.b32.xlu0 %v5642_v41, %s4618_s17  ;;  %v2611_v41 = vadd.s32 1, %v525_v39  ;;  %s4544_s26 = scalar_lea.vmem %s4543_s19, 1024 }
 0x217   : > { %4460 = vrot.lane.b32.xlu1 %v4459_v42, %s4618_s17  ;;  %vm2612_vm0 = vcmp.ge.s32.totalorder %v2611_v41, 0  ;;  %vm2613_vm14 = vcmp.lt.s32.totalorder %v2611_v41, 16 }
 0x218   : > { %vm5822_vm11 = vmand %vm2612_vm0, %vm2613_vm14 }
 0x219   : > { %4435 = vrot.lane.b32.xlu0 %v5646_v54, %s4618_s17  ;;  %v5847_v38 = vsel %vm5822_vm11, 1, %v6537_v21  ;;  %vm3979_vm0 = vmpackc.low %vm5830_vm12, %vm5830_vm12 }
 0x21a   : > { %vm3982_vm14 = vmpackc.low %vm5838_vm6, %vm5838_vm6 }
 0x21b   : > { %4465 = vrot.lane.b32.xlu1 %v4464_v16, %s4618_s17  ;;  %s3810_s17 = sshll.u32 %s514_s27, 4  ;;  %s6423_s17 = int_to_ptr.vmem [resolvable:$true] %s3810_s17 }
 0x21c   : > { %p4545_p0 = scmp.lt.s32.totalorder %s6423_s17, %s4543_s19 }
 0x21d   : > { %595 = vperm.xlu0 %4227, %v547_v30  }
 0x21f   : > { %590 = vperm.xlu1 %4228, %v546_v35  }
 0x22f   : > { %v4231_v2 = vpop.permute.xlu0 %4230 }
 0x230   : > { %v4233_v61 = vunpack.i.h.bf16 %v4231_v2  ;;  %v4232_v52 = vunpack.i.l.bf16 %v4231_v2 }
 0x231   : > { %v5721_v45 = vpop.permute.xlu1 %4260 }
 0x232   : > { %v2541_v12 = vsel %vm2538_vm2, %v4232_v52, %v4233_v61  ;;  %v2553_v18 = vsel %vm2538_vm2, 0.0, %v4232_v52  ;;  %v2675_v61 = vrot.slane %v5818_v59, %v5736_v57  ;;  %v4263_v7 = vunpack.i.h.bf16 %v5721_v45 }
 0x233   : > { %v5723_v51 = vpop.permute.xlu0 %4235 }
 0x234   : > { %v4238_v34 = vunpack.i.h.bf16 %v5723_v51  ;;  %v4237_v32 = vunpack.i.l.bf16 %v5723_v51 }
 0x235   : > { %v5725_v48 = vpop.permute.xlu1 %4265 }
 0x236   : > { %v2539_v42 = vsel %vm2538_vm2, %v4237_v32, %v4238_v34  ;;  %v2551_v16 = vsel %vm2538_vm2, 0.0, %v4237_v32  ;;  %v4268_v49 = vunpack.i.h.bf16 %v5725_v48 }
 0x237   : > { %v5727_v4 = vpop.permute.xlu0 %4240 }
 0x238   : > { %v4243_v63 = vunpack.i.h.bf16 %v5727_v4  ;;  %v4242_v30 = vunpack.i.l.bf16 %v5727_v4 }
 0x239   : > { %v5729_v44 = vpop.permute.xlu1 %4270 }
 0x23a   : > { %v2485_v52 = vsel %vm2482_vm15, %v4242_v30, %v4243_v63  ;;  %v2497_v0 = vsel %vm2482_vm15, 0.0, %v4242_v30  ;;  %v4273_v30 = vunpack.i.h.bf16 %v5729_v44 }
 0x23b   : > { %v5731_v26 = vpop.permute.xlu0 %4245 }
 0x23c   : > { %v4248_v20 = vunpack.i.h.bf16 %v5731_v26  ;;  %v4247_v47 = vunpack.i.l.bf16 %v5731_v26 }
 0x23d   : > { %v5738_v1 = vpop.permute.xlu1 %4275 }
 0x23e   : > { %v2483_v34 = vsel %vm2482_vm15, %v4247_v47, %v4248_v20  ;;  %v2495_v32 = vsel %vm2482_vm15, 0.0, %v4247_v47 }
 0x23f   : > { %v5740_v58 = vpop.permute.xlu0 %4250 }
 0x241   : > { %v5744_v50 = vpop.permute.xlu1 %4280 }
 0x243   : > { %v5747_v15 = vpop.permute.xlu0 %4255 }
 0x245   : > { %v4286_v10 = vpop.permute.xlu1 %4285 }
 0x246   : > { %v4288_v54 = vunpack.i.h.bf16 %v4286_v10  ;;  %v4287_v55 = vunpack.i.l.bf16 %v4286_v10 }
 0x247   : > { %v5767_v62 = vpop.permute.xlu0 %4315 }
 0x248   : > { %v2542_v6 = vsel %vm2538_vm2, %v4287_v55, %v4288_v54  ;;  %v2554_v13 = vsel %vm2538_vm2, 0.0, %v4287_v55  ;;  %v2623_v54 = vrot.slane %v5847_v38, %v5733_v37  ;;  %v2619_v55 = vrot.slane %v5847_v38, %v5736_v57 }
 0x249   : > { %v3956_v23 = vpack.c.bf16 %v2542_v6, %v2541_v12  ;;  %v3959_v46 = vpack.c.bf16 %v2554_v13, %v2553_v18  ;;  %v4291_v24 = vpop.permute.xlu1 %4290  ;;  %v4262_v12 = vunpack.i.l.bf16 %v5721_v45  ;;  %v4253_v6 = vunpack.i.h.bf16 %v5740_v58 }
 0x24a   : > { %v4293_v22 = vunpack.i.h.bf16 %v4291_v24  ;;  %v4292_v53 = vunpack.i.l.bf16 %v4291_v24  ;;  %v4252_v13 = vunpack.i.l.bf16 %v5740_v58  ;;  %v4318_v19 = vunpack.i.h.bf16 %v5767_v62 }
 0x24b   : > { %v5793_v33 = vpop.permute.xlu0 %4320  ;;  %3957 = vmatprep.subr.msk.bf16.mxu1 %vm3955_vm8, %v3956_v23  ;;  %v4258_v23 = vunpack.i.h.bf16 %v5747_v15 }
 0x24c   : > { %3960 = vmatpush1.bf16.msk.msra.mxu1 %vm3958_vm7, %v3959_v46  ;;  %v2540_v35 = vsel %vm2538_vm2, %v4292_v53, %v4293_v22  ;;  %v2552_v2 = vsel %vm2538_vm2, 0.0, %v4292_v53  ;;  %vm3970_vm2 = vmpackc.low %vm5811_vm9, %vm5811_vm9  ;;  %v4257_v46 = vunpack.i.l.bf16 %v5747_v15  ;;  %v4317_v22 = vunpack.i.l.bf16 %v5767_v62 }
 0x24d   : > { %v4296_v39 = vpop.permute.xlu1 %4295  ;;  %v3962_v60 = vpack.c.bf16 %v2540_v35, %v2539_v42  ;;  %v3965_v51 = vpack.c.bf16 %v2552_v2, %v2551_v16  ;;  %v4267_v15 = vunpack.i.l.bf16 %v5725_v48  ;;  %v4272_v35 = vunpack.i.l.bf16 %v5729_v44 }
 0x24e   : > { %v4298_v31 = vunpack.i.h.bf16 %v4296_v39  ;;  %v4297_v17 = vunpack.i.l.bf16 %v4296_v39  ;;  %v4278_v62 = vunpack.i.h.bf16 %v5738_v1  ;;  %v2429_v2 = vsel %vm2426_vm3, %v4252_v13, %v4253_v6 }
 0x24f   : > { %v5836_v3 = vpop.permute.xlu0 %4325  ;;  %3963 = vmatprep.subr.msk.bf16.mxu1 %vm3955_vm8, %v3962_v60  ;;  %vm5911_vm8 = vcmp.eq.s32.totalorder %v2731_v28, 1  ;;  %v2441_v48 = vsel %vm2426_vm3, 0.0, %v4252_v13  ;;  %v2427_v39 = vsel %vm2426_vm3, %v4257_v46, %v4258_v23  ;;  %v2722_v36 = vsel %vm2706_vm5, %v4318_v19, 0.0 }
 0x250   : > { %v2486_v10 = vsel %vm2482_vm15, %v4297_v17, %v4298_v31  ;;  %v2498_v26 = vsel %vm2482_vm15, 0.0, %v4297_v17  ;;  %3966 = vmatpush1.bf16.msk.msra.mxu1 %vm3958_vm7, %v3965_v51  ;;  %vm2650_vm7 = vcmask 1031168   ;;  %v2721_v31 = vsel %vm2706_vm5, %v4317_v22, 0.0 }
 0x251   : > { %v4301_v27 = vpop.permute.xlu1 %4300  ;;  %v3968_v43 = vpack.c.bf16 %v2486_v10, %v2485_v52  ;;  %v3971_v41 = vpack.c.bf16 %v2498_v26, %v2497_v0  ;;  %v4323_v20 = vunpack.i.h.bf16 %v5793_v33  ;;  %v4322_v40 = vunpack.i.l.bf16 %v5793_v33 }
 0x252   : > { %v4303_v18 = vunpack.i.h.bf16 %v4301_v27  ;;  %v4302_v5 = vunpack.i.l.bf16 %v4301_v27  ;;  %v2439_v10 = vsel %vm2426_vm3, 0.0, %v4257_v46  ;;  %v2710_v26 = vsel %vm2706_vm5, %v4263_v7, %v4318_v19 }
 0x253   : > { %v5881_v9 = vpop.permute.xlu0 %4330  ;;  %3969 = vmatprep.subr.msk.bf16.mxu1 %vm3967_vm10, %v3968_v43  ;;  %vm6562_vm9 = vcmask 130048   ;;  %v2720_v23 = vsel %vm2706_vm5, %v4323_v20, 0.0  ;;  %v2719_v46 = vsel %vm2706_vm5, %v4322_v40, 0.0  ;;  %v2708_v59 = vsel %vm2706_vm5, %v4268_v49, %v4323_v20 }
 0x254   : > { %v2484_v24 = vsel %vm2482_vm15, %v4302_v5, %v4303_v18  ;;  %v2496_v25 = vsel %vm2482_vm15, 0.0, %v4302_v5  ;;  %3972 = vmatpush1.bf16.msk.msra.mxu1 %vm3970_vm2, %v3971_v41  ;;  %vm5953_vm15 = vcmp.eq.s32.totalorder %v2679_v14, 1  ;;  %v2709_v41 = vsel %vm2706_vm5, %v4262_v12, %v4317_v22  ;;  %vm5966_vm11 = vmneg %vm6562_vm9 }
 0x255   : > { %v4306_v58 = vpop.permute.xlu1 %4305  ;;  %v3974_v53 = vpack.c.bf16 %v2484_v24, %v2483_v34  ;;  %v3977_v56 = vpack.c.bf16 %v2496_v25, %v2495_v32  ;;  %v3992_v18 = vpack.c.bf16 %v2722_v36, %v2721_v31  ;;  %v4328_v24 = vunpack.i.h.bf16 %v5836_v3  ;;  %vm6567_vm13 = vmmov %vm6562_vm9 }
 0x256   : > { %v4308_v42 = vunpack.i.h.bf16 %v4306_v58  ;;  %v4307_v16 = vunpack.i.l.bf16 %v4306_v58  ;;  %v4327_v25 = vunpack.i.l.bf16 %v5836_v3  ;;  %vm4032_vm12 = vmpackc.low %vm5966_vm11, %vm5966_vm11  ;;  %v3998_v8 = vpack.c.bf16 %v2720_v23, %v2719_v46 }
 0x257   : > { %v5909_v29 = vpop.permute.xlu0 %4335  ;;  %3975 = vmatprep.subr.msk.bf16.mxu1 %vm3967_vm10, %v3974_v53  ;;  %vm5980_vm10 = vcmp.eq.s32.totalorder %v2675_v61, 1  ;;  %v2707_v61 = vsel %vm2706_vm5, %v4267_v15, %v4322_v40  ;;  %v2666_v4 = vsel %vm2650_vm7, %v4328_v24, 0.0  ;;  %v4333_v15 = vunpack.i.h.bf16 %v5881_v9  ;;  %vm6568_vm5 = vmmov %vm6562_vm9 }
 0x258   : > { %v2430_v60 = vsel %vm2426_vm3, %v4307_v16, %v4308_v42  ;;  %v2442_v51 = vsel %vm2426_vm3, 0.0, %v4307_v16  ;;  %3978 = vmatpush1.bf16.msk.msra.mxu1 %vm3970_vm2, %v3977_v56  ;;  %vm2594_vm2 = vcmask 1039360   ;;  %v3995_v42 = vpack.c.bf16 %v2710_v26, %v2709_v41  ;;  %vm6569_vm6 = vmmov %vm6568_vm5 }
 0x259   : > { %v4311_v11 = vpop.permute.xlu1 %4310  ;;  %v3980_v17 = vpack.c.bf16 %v2430_v60, %v2429_v2  ;;  %v3983_v28 = vpack.c.bf16 %v2442_v51, %v2441_v48  ;;  %v2665_v49 = vsel %vm2650_vm7, %v4327_v25, 0.0  ;;  %v4332_v51 = vunpack.i.l.bf16 %v5881_v9 }
 0x25a   : > { %v4313_v47 = vunpack.i.h.bf16 %v4311_v11  ;;  %v4312_v52 = vunpack.i.l.bf16 %v4311_v11  ;;  %v4001_v20 = vpack.c.bf16 %v2708_v59, %v2707_v61  ;;  %v2654_v40 = vsel %vm2650_vm7, %v4273_v30, %v4328_v24 }
 0x25b   : > { %v4341_v0 = vpop.permute.xlu0 %4340  ;;  %3981 = vmatprep.subr.msk.bf16.mxu1 %vm3979_vm0, %v3980_v17  ;;  %v2653_v9 = vsel %vm2650_vm7, %v4272_v35, %v4327_v25  ;;  %v2664_v30 = vsel %vm2650_vm7, %v4333_v15, 0.0  ;;  %v2663_v35 = vsel %vm2650_vm7, %v4332_v51, 0.0  ;;  %v4337_v41 = vunpack.i.l.bf16 %v5909_v29 }
 0x25c   : > { %v4343_v27 = vunpack.i.h.bf16 %v4341_v0  ;;  %v4342_v43 = vunpack.i.l.bf16 %v4341_v0  ;;  %v2428_v7 = vsel %vm2426_vm3, %v4312_v52, %v4313_v47  ;;  %v2440_v5 = vsel %vm2426_vm3, 0.0, %v4312_v52  ;;  %3984 = vmatpush1.bf16.msk.msra.mxu1 %vm3982_vm14, %v3983_v28  ;;  %vm3991_vm3 = vmpackc.low %vm5892_vm4, %vm5892_vm4 }
 0x25d   : > { %v4401_v34 = vpop.permute.xlu1 %4400  ;;  %v3986_v32 = vpack.c.bf16 %v2428_v7, %v2427_v39  ;;  %v3989_v14 = vpack.c.bf16 %v2440_v5, %v2439_v10  ;;  %v4004_v0 = vpack.c.bf16 %v2666_v4, %v2665_v49  ;;  %vm4003_vm4 = vmpackc.low %vm5953_vm15, %vm5953_vm15  ;;  %vm6067_vm11 = vcmp.eq.s32.totalorder %v2623_v54, 1 }
 0x25e   : > { %v4403_v6 = vunpack.i.h.bf16 %v4401_v34  ;;  %v4402_v13 = vunpack.i.l.bf16 %v4401_v34  ;;  %v2838_v3 = vsel %vm6562_vm9, %v4342_v43, %v4343_v27  ;;  %v2652_v12 = vsel %vm2650_vm7, %v4278_v62, %v4333_v15  ;;  %vm4015_vm15 = vmpackc.low %vm6067_vm11, %vm6067_vm11 }
 0x25f   : > { %v4346_v58 = vpop.permute.xlu0 %4345  ;;  %3987 = vmatprep.subr.msk.bf16.mxu1 %vm3979_vm0, %v3986_v32  ;;  %vm6037_vm0 = vmneg %vm2803_vm1  ;;  %v4007_v32 = vpack.c.bf16 %v2654_v40, %v2653_v9  ;;  %v4010_v54 = vpack.c.bf16 %v2664_v30, %v2663_v35  ;;  %v2609_v62 = vsel %vm2594_vm2, %v4337_v41, 0.0 }
 0x260   : > { %v4348_v22 = vunpack.i.h.bf16 %v4346_v58  ;;  %v4347_v53 = vunpack.i.l.bf16 %v4346_v58  ;;  %v2839_v56 = vsel %vm6567_vm13, %v4402_v13, %v4403_v6  ;;  %3990 = vmatpush1.bf16.msk.msra.mxu1 %vm3982_vm14, %v3989_v14  ;;  %v4033_v48 = vpack.c.bf16 %v4402_v13, %v4342_v43  ;;  %vm3994_vm13 = vmpackc.low %vm5911_vm8, %vm5911_vm8 }
 0x261   : > { %v4406_v16 = vpop.permute.xlu1 %4405  ;;  %v3049_v2 = vpack.c.bf16 %v2839_v56, %v2838_v3  ;;  %3993 = vmatprep.subr.msk.bf16.mxu1 %vm3991_vm3, %v3992_v18  ;;  %v4338_v43 = vunpack.i.h.bf16 %v5909_v29  ;;  %v4277_v29 = vunpack.i.l.bf16 %v5738_v1  ;;  %vm4042_vm14 = vmpackc.low %vm6037_vm0, %vm6037_vm0  ;;  %v4283_v3 = vunpack.i.h.bf16 %v5744_v50 }
 0x262   : > { %v4408_v39 = vunpack.i.h.bf16 %v4406_v16  ;;  %v4407_v60 = vunpack.i.l.bf16 %v4406_v16  ;;  %v2836_v17 = vsel %vm6568_vm5, %v4347_v53, %v4348_v22  ;;  %vm4006_vm8 = vmpackc.low %vm5980_vm10, %vm5980_vm10  ;;  %v4282_v56 = vunpack.i.l.bf16 %v5744_v50 }
 0x263   : > { %v4351_v11 = vpop.permute.xlu0 %4350  ;;  %3082 = vmatprep.subr.bf16.mxu0 %v3049_v2  ;;  %v2651_v37 = vsel %vm2650_vm7, %v4277_v29, %v4332_v51  ;;  %v2610_v1 = vsel %vm2594_vm2, %v4338_v43, 0.0  ;;  %vm2770_vm7 = vcmask 392192  }
 0x264   : > { %v4353_v36 = vunpack.i.h.bf16 %v4351_v11  ;;  %v4352_v31 = vunpack.i.l.bf16 %v4351_v11  ;;  %4034 = vmatpush1.bf16.msk.msra.mxu0 %vm4032_vm12, %v4033_v48  ;;  %v2837_v28 = vsel %vm6569_vm6, %v4407_v60, %v4408_v39  ;;  %3996 = vmatpush2.bf16.msk.msra.mxu1 %vm3994_vm13, %v3995_v42  ;;  %v4038_v10 = vpack.c.bf16 %v4407_v60, %v4347_v53 }
 0x265   : > { %v4411_v47 = vpop.permute.xlu1 %4410  ;;  %v3047_v52 = vpack.c.bf16 %v2837_v28, %v2836_v17  ;;  %3999 = vmatprep.subr.msk.bf16.mxu1 %vm3991_vm3, %v3998_v8  ;;  %vm6112_vm3 = vmneg %vm2770_vm7  ;;  %v4013_v48 = vpack.c.bf16 %v2652_v12, %v2651_v37  ;;  %v2598_v39 = vsel %vm2594_vm2, %v4283_v3, %v4338_v43  ;;  %v2597_v60 = vsel %vm2594_vm2, %v4282_v56, %v4337_v41 }
 0x266   : > { %v4413_v26 = vunpack.i.h.bf16 %v4411_v47  ;;  %v4412_v27 = vunpack.i.l.bf16 %v4411_v47  ;;  %v2806_v5 = vsel %vm2803_vm1, %v4352_v31, %v4353_v36  ;;  %v4016_v33 = vpack.c.bf16 %v2610_v1, %v2609_v62  ;;  %vm4052_vm9 = vmpackc.low %vm6112_vm3, %vm6112_vm3 }
 0x267   : > { %v4356_v18 = vpop.permute.xlu0 %4355  ;;  %3084 = vmatprep.subr.bf16.mxu0 %v3047_v52  ;;  %v4019_v19 = vpack.c.bf16 %v2598_v39, %v2597_v60  ;;  %vm3228_vm3 = vcmask 31744  }
 0x268   : > { %v4358_v45 = vunpack.i.h.bf16 %v4356_v18  ;;  %v4357_v7 = vunpack.i.l.bf16 %v4356_v18  ;;  %4039 = vmatpush1.bf16.msk.msra.mxu0 %vm4032_vm12, %v4038_v10  ;;  %v2807_v34 = vsel %vm2803_vm1, %v4412_v27, %v4413_v26  ;;  %4002 = vmatpush2.bf16.msk.msra.mxu1 %vm3994_vm13, %v4001_v20  ;;  %v4043_v63 = vpack.c.bf16 %v4412_v27, %v4352_v31 }
 0x269   : > { %v4416_v14 = vpop.permute.xlu1 %4415  ;;  %v3045_v6 = vpack.c.bf16 %v2807_v34, %v2806_v5  ;;  %4005 = vmatprep.subr.msk.bf16.mxu1 %vm4003_vm4, %v4004_v0  ;;  %vm2934_vm12 = vcmask 654336   ;;  %vm6580_vm13 = vcmask 785408  }
 0x26a   : > { %v4418_v23 = vunpack.i.h.bf16 %v4416_v14  ;;  %v4417_v46 = vunpack.i.l.bf16 %v4416_v14  ;;  %v2804_v22 = vsel %vm2803_vm1, %v4357_v7, %v4358_v45  ;;  %vm6581_vm5 = vmmov %vm6580_vm13 }
 0x26b   : > { %v4361_v24 = vpop.permute.xlu0 %4360  ;;  %3086 = vmatprep.subr.bf16.mxu0 %v3045_v6  ;;  %vm6196_vm6 = vmpackc.low %vm6581_vm5, %vm6581_vm5 }
 0x26c   : > { %v4363_v25 = vunpack.i.h.bf16 %v4361_v24  ;;  %v4362_v58 = vunpack.i.l.bf16 %v4361_v24  ;;  %4044 = vmatpush1.bf16.msk.msra.mxu0 %vm4042_vm14, %v4043_v63  ;;  %v2805_v53 = vsel %vm2803_vm1, %v4417_v46, %v4418_v23  ;;  %4008 = vmatpush2.bf16.msk.msra.mxu1 %vm4006_vm8, %v4007_v32  ;;  %v4048_v61 = vpack.c.bf16 %v4417_v46, %v4357_v7  ;;  %v4474_v32 = vld [vmem:[%s6476_s4] ss:$8 sps:$4 sm:$0xff]   ;;  %vm6584_vm0 = vmmov %vm6581_vm5 }
 0x26d   : > { %v4421_v42 = vpop.permute.xlu1 %4420  ;;  %v3043_v59 = vpack.c.bf16 %v2805_v53, %v2804_v22  ;;  %4011 = vmatprep.subr.msk.bf16.mxu1 %vm4003_vm4, %v4010_v54  ;;  %vm6107_vm1 = vcmp.eq.s32.totalorder %v2619_v55, 1  ;;  %vm6585_vm4 = vmmov %vm6584_vm0 }
 0x26e   : > { %v4423_v16 = vunpack.i.h.bf16 %v4421_v42  ;;  %v4422_v2 = vunpack.i.l.bf16 %v4421_v42  ;;  %v2773_v55 = vsel %vm2770_vm7, %v4362_v58, %v4363_v25  ;;  %vm4018_vm10 = vmpackc.low %vm6107_vm1, %vm6107_vm1  ;;  %vm6587_vm1 = vcmask 130048  }
 0x26f   : > { %v4366_v4 = vpop.permute.xlu0 %4365  ;;  %3088 = vmatprep.subr.bf16.mxu0 %v3043_v59  ;;  %vm6586_vm11 = vmmov %vm6584_vm0 }
 0x270   : > { %v4368_v57 = vunpack.i.h.bf16 %v4366_v4  ;;  %v4367_v38 = vunpack.i.l.bf16 %v4366_v4  ;;  %4049 = vmatpush1.bf16.msk.msra.mxu0 %vm4042_vm14, %v4048_v61  ;;  %v2774_v49 = vsel %vm2770_vm7, %v4422_v2, %v4423_v16  ;;  %4014 = vmatpush2.bf16.msk.msra.mxu1 %vm4006_vm8, %v4013_v48  ;;  %v4053_v11 = vpack.c.bf16 %v4422_v2, %v4362_v58  ;;  %vm6592_vm5 = vmmov %vm6587_vm1 }
 0x271   : > { %v4426_v15 = vpop.permute.xlu1 %4425  ;;  %v3041_v51 = vpack.c.bf16 %v2774_v49, %v2773_v55  ;;  %4017 = vmatprep.subr.msk.bf16.mxu1 %vm4015_vm15, %v4016_v33  ;;  %vm2868_vm14 = vcmask 916480  }
 0x272   : > { %v4428_v36 = vunpack.i.h.bf16 %v4426_v15  ;;  %v4427_v31 = vunpack.i.l.bf16 %v4426_v15  ;;  %v2771_v40 = vsel %vm2770_vm7, %v4367_v38, %v4368_v57  ;;  %vm4072_vm8 = vmpackc.low %vm2868_vm14, %vm2868_vm14 }
 0x273   : > { %v4371_v17 = vpop.permute.xlu0 %4370  ;;  %3090 = vmatprep.subr.bf16.mxu0 %v3041_v51 }
 0x274   : > { %v4373_v28 = vunpack.i.h.bf16 %v4371_v17  ;;  %v4372_v20 = vunpack.i.l.bf16 %v4371_v17  ;;  %4054 = vmatpush1.bf16.msk.msra.mxu0 %vm4052_vm9, %v4053_v11  ;;  %v2772_v9 = vsel %vm2770_vm7, %v4427_v31, %v4428_v36  ;;  %v4058_v47 = vpack.c.bf16 %v4427_v31, %v4367_v38  ;;  %4020 = vmatpush2.bf16.msk.msra.mxu1 %vm4018_vm10, %v4019_v19 }
 0x275   : > { %v4431_v52 = vpop.permute.xlu1 %4430  ;;  %v3039_v0 = vpack.c.bf16 %v2772_v9, %v2771_v40  ;;  %vm4620_vm7 = vmmov 0  }
 0x276   : > { %v2608_v10 = vsel %vm2594_vm2, %v4373_v28, 0.0  ;;  %v2607_v26 = vsel %vm2594_vm2, %v4372_v20, 0.0  ;;  %v4433_v27 = vunpack.i.h.bf16 %v4431_v52  ;;  %v4432_v44 = vunpack.i.l.bf16 %v4431_v52 }
 0x277   : > { %v4022_v30 = vpack.c.bf16 %v2608_v10, %v2607_v26  ;;  %v4376_v35 = vpop.permute.xlu0 %4375  ;;  %3092 = vmatprep.subr.bf16.mxu0 %v3039_v0 }
 0x278   : > { %v2595_v43 = vsel %vm2594_vm2, %v4432_v44, %v4372_v20  ;;  %v2596_v41 = vsel %vm2594_vm2, %v4433_v27, %v4373_v28  ;;  %v4378_v18 = vunpack.i.h.bf16 %v4376_v35  ;;  %v4377_v45 = vunpack.i.l.bf16 %v4376_v35  ;;  %4059 = vmatpush1.bf16.msk.msra.mxu0 %vm4052_vm9, %v4058_v47  ;;  %vm6181_vm2 = vmpackc.low %vm2934_vm12, %vm2934_vm12 }
 0x279   : > { %v4025_v7 = vpack.c.bf16 %v2596_v41, %v2595_v43  ;;  %v4441_v5 = vpop.permute.xlu1 %4440  ;;  %4023 = vmatprep.subr.msk.bf16.mxu1 %vm4015_vm15, %v4022_v30  ;;  %vm3247_vm9 = vcmask 1043456  }
 0x27a   : > { %v4443_v34 = vunpack.i.h.bf16 %v4441_v5  ;;  %v4442_v29 = vunpack.i.l.bf16 %v4441_v5  ;;  %v2937_v14 = vsel %vm2934_vm12, %v4377_v45, %v4378_v18  ;;  %v713_v45 = vpop.f32.mrf.mxu0 }
 0x27b   : > { %v4381_v6 = vpop.permute.xlu0 %4380  ;;  %4026 = vmatpush2.bf16.msk.msra.mxu1 %vm4018_vm10, %v4025_v7  ;;  %vm6588_vm10 = vmmov %vm6587_vm1 }
 0x27c   : > { %v2938_v12 = vsel %vm2934_vm12, %v4442_v29, %v4443_v34  ;;  %v4061_v63 = vpack.c.bf16 %v4443_v34, %v4378_v18  ;;  %v4383_v23 = vunpack.i.h.bf16 %v4381_v6  ;;  %v4382_v46 = vunpack.i.l.bf16 %v4381_v6  ;;  %v4477_v18 = vld [vmem:[%s6477_s5] ss:$8 sps:$4 sm:$0xff]   ;;  %v715_v7 = vpop.f32.mrf.mxu0 }
 0x27d   : > { %v3064_v37 = vpack.c.bf16 %v2938_v12, %v2937_v14  ;;  %v4446_v54 = vpop.permute.xlu1 %4445 }
 0x27e   : > { %v4448_v1 = vunpack.i.h.bf16 %v4446_v54  ;;  %v4447_v62 = vunpack.i.l.bf16 %v4446_v54  ;;  %4062 = vmatprep.subr.msk.bf16.mxu0 %vm6181_vm2, %v4061_v63  ;;  %3026 = vmatmul.mubr.bf16.vlgmr.msra.gmra.mxu1 %v4474_v32  ;;  %v2935_v24 = vsel %vm2934_vm12, %v4382_v46, %v4383_v23  ;;  %v717_v5 = vpop.f32.mrf.mxu0 }
 0x27f   : > { %v4386_v25 = vpop.permute.xlu0 %4385  ;;  %3099 = vmatpush2.bf16.msra.mxu0 %v3064_v37  ;;  %3488 = vmatprep.mubr.bf16.mxu1 %v6537_v21 }
 0x280   : > { %v2936_v58 = vsel %vm2934_vm12, %v4447_v62, %v4448_v1  ;;  %v4064_v22 = vpack.c.bf16 %v4448_v1, %v4383_v23  ;;  %v4388_v53 = vunpack.i.h.bf16 %v4386_v25  ;;  %v4387_v3 = vunpack.i.l.bf16 %v4386_v25  ;;  %v719_v29 = vpop.f32.mrf.mxu0  ;;  %vm6589_vm12 = vmmov %vm6587_vm1 }
 0x281   : > { %v3062_v56 = vpack.c.bf16 %v2936_v58, %v2935_v24  ;;  %v4451_v42 = vpop.permute.xlu1 %4450 }
 0x282   : > { %v4453_v59 = vunpack.i.h.bf16 %v4451_v42  ;;  %v4452_v61 = vunpack.i.l.bf16 %v4451_v42  ;;  %4065 = vmatprep.subr.msk.bf16.mxu0 %vm6181_vm2, %v4064_v22  ;;  %v2904_v16 = vsel %vm6580_vm13, %v4387_v3, %v4388_v53  ;;  %vm6590_vm2 = vmmov %vm6587_vm1 }
 0x283   : > { %v4391_v2 = vpop.permute.xlu0 %4390  ;;  %3101 = vmatpush2.bf16.msra.mxu0 %v3062_v56  ;;  %vm6591_vm13 = vmmov %vm6587_vm1 }
 0x284   : > { %v2905_v8 = vsel %vm6584_vm0, %v4452_v61, %v4453_v59  ;;  %v4067_v48 = vpack.c.bf16 %v4453_v59, %v4388_v53  ;;  %v4393_v39 = vunpack.i.h.bf16 %v4391_v2  ;;  %v4392_v60 = vunpack.i.l.bf16 %v4391_v2 }
 0x285   : > { %v3060_v33 = vpack.c.bf16 %v2905_v8, %v2904_v16  ;;  %v4456_v4 = vpop.permute.xlu1 %4455  ;;  %v4619_v2 = vmov 0.0  }
 0x286   : > { %v4458_v57 = vunpack.i.h.bf16 %v4456_v4  ;;  %v4457_v38 = vunpack.i.l.bf16 %v4456_v4  ;;  %4068 = vmatprep.subr.msk.bf16.mxu0 %vm6196_vm6, %v4067_v48  ;;  %v2902_v55 = vsel %vm6585_vm4, %v4392_v60, %v4393_v39  ;;  %v3138_v60 = vld [vmem:[%s6478_s6] sm:$0xf] }
 0x287   : > { %v4396_v49 = vpop.permute.xlu0 %4395  ;;  %3103 = vmatpush2.bf16.msra.mxu0 %v3060_v33  ;;  %v3216_v33 = vld [vmem:[%s6480_s8] sm:$0xff] }
 0x288   : > { %v2903_v15 = vsel %vm6586_vm11, %v4457_v38, %v4458_v57  ;;  %v4070_v51 = vpack.c.bf16 %v4458_v57, %v4393_v39  ;;  %v4398_v11 = vunpack.i.h.bf16 %v4396_v49  ;;  %v4397_v36 = vunpack.i.l.bf16 %v4396_v49  ;;  %v3139_v4 = vld [vmem:[%s6479_s7] sm:$0xf] }
 0x289   : > { %v3058_v31 = vpack.c.bf16 %v2903_v15, %v2902_v55  ;;  %v4461_v19 = vpop.permute.xlu1 %4460 }
 0x28a   : > { %v4463_v17 = vunpack.i.h.bf16 %v4461_v19  ;;  %v4462_v28 = vunpack.i.l.bf16 %v4461_v19  ;;  %4071 = vmatprep.subr.msk.bf16.mxu0 %vm6196_vm6, %v4070_v51  ;;  %v2871_v20 = vsel %vm2868_vm14, %v4397_v36, %v4398_v11  ;;  %v3217_v51 = vld [vmem:[%s6480_s8 + $0x8] sm:$0xff]  ;;  %v3219_v36 = vld [vmem:[%s6480_s8 + $0x18] sm:$0xff] }
 0x28b   : > { %v4436_v40 = vpop.permute.xlu0 %4435  ;;  %3105 = vmatpush2.bf16.msra.mxu0 %v3058_v31  ;;  %v3220_v31 = vld [vmem:[%s6480_s8 + $0x20] sm:$0xff]  ;;  %v3221_v19 = vld [vmem:[%s6480_s8 + $0x28] sm:$0xff] }
 0x28c   : > { %v2872_v9 = vsel %vm2868_vm14, %v4462_v28, %v4463_v17  ;;  %v4073_v47 = vpack.c.bf16 %v4463_v17, %v4398_v11  ;;  %v4438_v52 = vunpack.i.h.bf16 %v4436_v40  ;;  %v4437_v0 = vunpack.i.l.bf16 %v4436_v40  ;;  %v3218_v11 = vld [vmem:[%s6480_s8 + $0x10] sm:$0xff]  ;;  %v3223_v40 = vld [vmem:[%s6481_s9 + $0x8] sm:$0xff] }
 0x28d   : > { %v3056_v10 = vpack.c.bf16 %v2872_v9, %v2871_v20  ;;  %v4466_v26 = vpop.permute.xlu1 %4465  ;;  %v3225_v20 = vld [vmem:[%s6481_s9 + $0x18] sm:$0xff] }
 0x28e   : > { %v4468_v27 = vunpack.i.h.bf16 %v4466_v26  ;;  %v4467_v44 = vunpack.i.l.bf16 %v4466_v26  ;;  %4074 = vmatprep.subr.msk.bf16.mxu0 %vm4072_vm8, %v4073_v47  ;;  %v2869_v30 = vsel %vm2868_vm14, %v4437_v0, %v4438_v52  ;;  %v3224_v47 = vld [vmem:[%s6481_s9 + $0x10] sm:$0xff]  ;;  %v3222_v0 = vld [vmem:[%s6481_s9] sm:$0xff]  ;;  %v3227_v26 = vld [vmem:[%s6481_s9 + $0x28] sm:$0xff] }
 0x28f   : > { %3107 = vmatpush2.bf16.msra.mxu0 %v3056_v10 }
 0x290   : > { %v2870_v35 = vsel %vm2868_vm14, %v4467_v44, %v4468_v27  ;;  %v4076_v43 = vpack.c.bf16 %v4468_v27, %v4438_v52 }
 0x291   : > { %v3054_v41 = vpack.c.bf16 %v2870_v35, %v2869_v30  ;;  %v3226_v35 = vld [vmem:[%s6481_s9 + $0x20] sm:$0xff] }
 0x292   : > { %4077 = vmatprep.subr.msk.bf16.mxu0 %vm4072_vm8, %v4076_v43 }
 0x293   : > { %3109 = vmatpush2.bf16.msra.mxu0 %v3054_v41 }
 0x294   : > { %4116 = vmatprep.subr.mxu0 %v4619_v2 }
 0x296   : > { %3111 = vmatmul.mubr.bf16.vlgmr.msra.gmra.mxu0 %v4477_v18 }
 0x297   : > { %4120 = vmatprep.mubr.msk.f32.mxu0 %vm4620_vm7, %v4619_v2 }
 0x298   : > { %v596_v54 = vpop.permute.xlu0 %595 }
 0x299   : > { %v6244_v53 = vadd.f32 %v717_v5, %v596_v54  ;;  %v6246_v3 = vadd.f32 %v719_v29, %v596_v54 }
 0x29a   : > { %v591_v14 = vpop.permute.xlu1 %590 }
 0x29b   : > { %v6228_v23 = vadd.f32 %v713_v45, %v591_v14  ;;  %v6230_v46 = vadd.f32 %v715_v7, %v591_v14 }
 0x33e   : > { %v6216_v34 = vpop.f32.mrf.mxu1 }
 0x340   : > { %v6218_v32 = vpop.f32.mrf.mxu1 }
 0x342   : > { %v6224_v12 = vpop.f32.mrf.mxu1 }
 0x344   : > { %v6240_v58 = vpop.f32.mrf.mxu1 }
 0x356   : > { %v6220_v6 = vpop.f32.mrf.mxu0 }
 0x357   : > { %v3121_v13 = vadd.f32 %v6220_v6, %v6216_v34 }
 0x358   : > { %v6226_v63 = vpop.f32.mrf.mxu0 }
 0x359   : > { %v3122_v37 = vadd.f32 %v6226_v63, %v6218_v32  ;;  %v3125_v24 = vadd.f32 %v3121_v13, %v6228_v23 }
 0x35a   : > { %v6234_v1 = vpop.f32.mrf.mxu0 }
 0x35b   : > { %v3123_v62 = vadd.f32 %v6234_v1, %v6224_v12  ;;  %v3126_v25 = vadd.f32 %v3122_v37, %v6230_v46 }
 0x35c   : > { %v6242_v22 = vpop.f32.mrf.mxu0 }
 0x35d   : > { %v3124_v56 = vadd.f32 %v6242_v22, %v6240_v58  ;;  %v3129_v42 = vadd.f32 %v3126_v25, %v3125_v24  ;;  %v3127_v59 = vadd.f32 %v3123_v62, %v6244_v53 }
 0x35f   : > { %3130 = vadd.xlane.f32.xlu1 %v3129_v42  ;;  %v3128_v61 = vadd.f32 %v3124_v56, %v6246_v3 }
 0x361   : > { %v3132_v16 = vadd.f32 %v3128_v61, %v3127_v59 }
 0x363   : > { %3133 = vadd.xlane.f32.xlu0 %v3132_v16 }
 0x3e8   : > { %v3131_v50 = vpop.xlane.xlu1 %3130 }
 0x3e9   : > { %v3136_v39 = vmul.f32 0.00390625, %v3131_v50 }
 0x3ec   : > { %v3134_v8 = vpop.xlane.xlu0 %3133 }
 0x3ed   : > { %v3137_v48 = vmul.f32 0.00390625, %v3134_v8 }
 0x3ef   : > { %4117 = vmatpush3.msra.mxu0 %v3137_v48 }
 0x3f0   : > { %4118 = vmatprep.subr.mxu0 %v4619_v2 }
 0x3f1   : > { %4119 = vmatpush3.msra.mxu0 %v3136_v39 }
 0x3f2   : > { %4121 = vmatmul.mubr.msk.f32.vlgmr.msra.gmra.mxu0 %vm6587_vm1, %v3138_v60 }
 0x3f3   : > { %4125 = vmatprep.mubr.msk.f32.mxu0 %vm3228_vm3, %v3216_v33 }
 0x4b2   : > { %v3209_v57 = vpop.f32.mrf.mxu0 }
 0x4b3   : > { %v3210_v38 = vadd.f32 %v3209_v57, %v3139_v4 }
 0x4b4   : > { %v4122_v55 = vpop.f32.mrf.mxu0 }
 0x4b5   : > { %vm3213_vm15 = vcmp.ge.f32.partialorder %v3210_v38, 0.0  ;;  %v3214_v49 = vmul.f32 0.3, %v3210_v38 }
 0x4b7   : > { %v3215_v15 = vsel %vm3213_vm15, %v3210_v38, %v3214_v49 }
 0x4b8   : > { %4123 = vmatprep.subr.msk.mxu0 %vm3247_vm9, %v3215_v15 }
 0x4b9   : > { %4124 = vmatpush3.msk.msra.mxu0 %vm3247_vm9, %v3215_v15 }
 0x4ba   : > { %4126 = vmatmul.mubr.msk.f32.vlgmr.msra.gmra.mxu0 %vm3228_vm3, %v3217_v51 }
 0x4bb   : > { %4128 = vmatprep.mubr.msk.f32.mxu0 %vm3228_vm3, %v3218_v11 }
 0x4be   : > { %4129 = vmatmul.mubr.msk.f32.gmra.mxu0 %vm3228_vm3, %v3219_v36 }
 0x4bf   : > { %4131 = vmatprep.mubr.msk.f32.mxu0 %vm3228_vm3, %v3220_v31 }
 0x4c2   : > { %4132 = vmatmul.mubr.msk.f32.gmra.mxu0 %vm3228_vm3, %v3221_v19 }
 0x4c3   : > { %3777 = vmatprep.mubr.bf16.mxu0 %v6537_v21 }
 0x57a   : > { %v4127_v17 = vpop.f32.mrf.mxu0 }
 0x57b   : > { %v3323_v27 = vadd.f32 %v4127_v17, %v3223_v40  ;;  %v3520_v40 = vld [vmem:[%s6485_s13 + $0x38] sm:$0xff] }
 0x57c   : > { %v3317_v28 = vpop.f32.mrf.mxu0 }
 0x57d   : > { %v3318_v43 = vadd.f32 %v3317_v28, %v3222_v0  ;;  %v3437_v28 = vld [vmem:[%s6483_s11 + $0x8] sm:$0xff]  ;;  %v3516_v0 = vld [vmem:[%s6485_s13 + $0x18] sm:$0xff] }
 0x57e   : > { %v4130_v9 = vpop.f32.mrf.mxu0 }
 0x57f   : > { %v3333_v52 = vadd.f32 %v4130_v9, %v3225_v20  ;;  %v3436_v20 = vld [vmem:[%s6483_s11] sm:$0xff]  ;;  %v3519_v9 = vld [vmem:[%s6485_s13 + $0x30] sm:$0xff] }
 0x580   : > { %v3327_v10 = vpop.f32.mrf.mxu0 }
 0x581   : > { %v3328_v44 = vadd.f32 %v3327_v10, %v3224_v47  ;;  %v3347_v41 = vmax.f32 %v3323_v27, %v3333_v52  ;;  %v3518_v47 = vld [vmem:[%s6485_s13 + $0x28] sm:$0xff]  ;;  %v3515_v10 = vld [vmem:[%s6485_s13 + $0x10] sm:$0xff] }
 0x582   : > { %v4133_v30 = vpop.f32.mrf.mxu0 }
 0x583   : > { %v3343_v18 = vadd.f32 %v4133_v30, %v3227_v26  ;;  %v3346_v7 = vmax.f32 %v3318_v43, %v3328_v44  ;;  %v3514_v26 = vld [vmem:[%s6485_s13 + $0x8] sm:$0xff]  ;;  %v3724_v30 = vld [vmem:[%s6487_s15] sm:$0xff] }
 0x584   : > { %v3337_v45 = vpop.f32.mrf.mxu0 }
 0x585   : > { %v3349_v5 = vmax.f32 %v3347_v41, %v3343_v18  ;;  %v3338_v29 = vadd.f32 %v3337_v45, %v3226_v35 }
 0x587   : > { %v3351_v14 = vsub.f32 %v3323_v27, %v3349_v5  ;;  %v3357_v13 = vsub.f32 %v3333_v52, %v3349_v5  ;;  %v3363_v37 = vsub.f32 %v3343_v18, %v3349_v5  ;;  %v3348_v54 = vmax.f32 %v3346_v7, %v3338_v29  ;;  %v3517_v52 = vld [vmem:[%s6485_s13 + $0x20] sm:$0xff] }
 0x588   : > { %v3513_v27 = vld [vmem:[%s6485_s13] sm:$0xff] }
 0x589   : > { %v3354_v62 = vmul.f32 1.442695, %v3351_v14  ;;  %v3360_v24 = vmul.f32 1.442695, %v3357_v13  ;;  %v3366_v25 = vmul.f32 1.442695, %v3363_v37  ;;  %v3350_v56 = vsub.f32 %v3318_v43, %v3348_v54 }
 0x58a   : > { %v3356_v42 = vsub.f32 %v3328_v44, %v3348_v54  ;;  %v3362_v59 = vsub.f32 %v3338_v29, %v3348_v54  ;;  %v3725_v44 = vld [vmem:[%s6487_s15 + $0x8] sm:$0xff] }
 0x58b   : > { %4518 = vpow2.f32 %v3354_v62  ;;  %v3352_v61 = vmul.f32 1.442695, %v3350_v56 }
 0x58c   : > { %4520 = vpow2.f32 %v3360_v24  ;;  %v3358_v16 = vmul.f32 1.442695, %v3356_v42  ;;  %v3364_v2 = vmul.f32 1.442695, %v3362_v59 }
 0x58d   : > { %4522 = vpow2.f32 %v3366_v25 }
 0x58e   : > { %4524 = vpow2.f32 %v3352_v61 }
 0x58f   : > { %4526 = vpow2.f32 %v3358_v16 }
 0x590   : > { %4528 = vpow2.f32 %v3364_v2 }
 0x598   : > { %v4519_v50 = vpop.eup %4518 }
 0x599   : > { %v4521_v8 = vpop.eup %4520 }
 0x59a   : > { %v4523_v48 = vpop.eup %4522  ;;  %v3369_v39 = vadd.f32 %v4521_v8, %v4519_v50 }
 0x59b   : > { %v4525_v60 = vpop.eup %4524 }
 0x59c   : > { %v4527_v33 = vpop.eup %4526  ;;  %v3371_v4 = vadd.f32 %v4523_v48, %v3369_v39 }
 0x59d   : > { %v3368_v57 = vadd.f32 %v4527_v33, %v4525_v60  ;;  %v4529_v38 = vpop.eup %4528 }
 0x59e   : > { %4530 = vrcp.f32 %v3371_v4  ;;  %v4534_v4 = vld [vmem:[%s4767_s23 + $0x10] sm:$0xff] }
 0x59f   : > { %v3370_v55 = vadd.f32 %v4529_v38, %v3368_v57 }
 0x5a1   : > { %4532 = vrcp.f32 %v3370_v55 }
 0x5ab   : > { %v4531_v49 = vpop.eup %4530 }
 0x5ac   : > { %v3377_v15 = vmul.f32 %v4531_v49, %v4519_v50  ;;  %v3393_v36 = vmul.f32 %v4531_v49, %v4521_v8  ;;  %v3413_v19 = vmul.f32 %v4531_v49, %v4523_v48  ;;  %v4536_v49 = vld [vmem:[%s4767_s23 + $0x18] sm:$0xff] }
 0x5ae   : > { %v4533_v51 = vpop.eup %4532  ;;  %3385 = vperm.xlu1 %4228, %v3377_v15  }
 0x5af   : > { %v3376_v11 = vmul.f32 %v4533_v51, %v4525_v60  ;;  %v3392_v31 = vmul.f32 %v4533_v51, %v4527_v33  ;;  %v3412_v17 = vmul.f32 %v4533_v51, %v4529_v38  ;;  %v4535_v38 = vld [vmem:[%s4767_s23 + $0x8] sm:$0xff]  ;;  %v4537_v51 = vld [vmem:[%s4767_s23] sm:$0xff]  ;;  %s4105_s23 = sshll.u32 %s4729_s25, 9  ;;  %s4538_s25 = scalar_lea.vmem %s6423_s17, 512 }
 0x5b0   : > { %s6429_s29 = scalar_lea.hbm %s6488_s16, %s4105_s23  ;;  %p4539_p11 = scmp.ne.s32.totalorder %s6423_s17, %s4538_s25 }
 0x5b1   : > { %3380 = vperm.xlu0 %4227, %v3376_v11   ;;  %p4546_p1 = scmp.lt.s32.totalorder %s4544_s26, %s4538_s25 }
 0x5b2   : > { %3401 = vperm.xlu1 %4228, %v3393_v36   ;;  %p4540_p12 = pnand %p4539_p11, %p4746_p5 }
 0x5b3   : > { %p4547_p2 = por %p4546_p1, %p4545_p0 }
 0x5b4   : > { %p4541_p13 = pneg %p4540_p12 }
 0x5b5   : > { %3396 = vperm.xlu0 %4227, %v3392_v31  }
 0x5b6   : > { %3421 = vperm.xlu1 %4228, %v3413_v19   ;;  %v4481_v19 = vld [vmem:[%s6484_s12] sm:$0xff]   ;;  %p4548_p3 = pnand %p4547_p2, %p4541_p13 }
 0x5b9   : > { %3416 = vperm.xlu0 %4227, %v3412_v17   ;;  %v4482_v17 = vld [vmem:[%s6484_s12 + $0x8] sm:$0xff]  }
 0x5ba   : > { %3445 = vperm.xlu1 %4228, %v3437_v28   ;;  %v4483_v28 = vld [vmem:[%s6484_s12 + $0x10] sm:$0xff]  }
 0x5bd   : > { %3440 = vperm.xlu0 %4227, %v3436_v20   ;;  %v4484_v20 = vld [vmem:[%s6484_s12 + $0x18] sm:$0xff]  }
 0x5be   : > { %3558 = vperm.xlu1 %4228, %v3520_v40  }
 0x5c1   : > { %3553 = vperm.xlu0 %4227, %v3519_v9  }
 0x5c2   : > { %3548 = vperm.xlu1 %4228, %v3518_v47  }
 0x5c5   : > { %3543 = vperm.xlu0 %4227, %v3517_v52  }
 0x5c6   : > { %3538 = vperm.xlu1 %4228, %v3516_v0  }
 0x5c9   : > { %3533 = vperm.xlu0 %4227, %v3515_v10  }
 0x5ca   : > { %3528 = vperm.xlu1 %4228, %v3514_v26  }
 0x5cd   : > { %3523 = vperm.xlu0 %4227, %v3513_v27  }
 0x5ce   : > { %3733 = vperm.xlu1 %4228, %v3725_v44  }
 0x5d1   : > { %3728 = vperm.xlu0 %4227, %v3724_v30  }
 0x629   : > { %v3386_v35 = vpop.permute.xlu1 %3385 }
 0x62a   : > { %v3390_v13 = vmul.f32 %v3386_v35, %v6224_v12  ;;  %v3391_v37 = vmul.f32 %v3386_v35, %v6240_v58 }
 0x62c   : > { %v3381_v43 = vpop.permute.xlu0 %3380 }
 0x62d   : > { %v3402_v41 = vpop.permute.xlu1 %3401  ;;  %v3388_v54 = vmul.f32 %v3381_v43, %v6216_v34  ;;  %v3389_v62 = vmul.f32 %v3381_v43, %v6218_v32  ;;  %v4480_v32 = vld [vmem:[%s6482_s10] sm:$0xff]  }
 0x62e   : > { %v3406_v18 = vmul.f32 %v3402_v41, %v6234_v1  ;;  %v3407_v45 = vmul.f32 %v3402_v41, %v6242_v22 }
 0x630   : > { %v3397_v7 = vpop.permute.xlu0 %3396  ;;  %v3410_v25 = vadd.f32 %v3406_v18, %v3390_v13  ;;  %v3411_v22 = vadd.f32 %v3407_v45, %v3391_v37 }
 0x631   : > { %v3404_v5 = vmul.f32 %v3397_v7, %v6220_v6  ;;  %v3405_v29 = vmul.f32 %v3397_v7, %v6226_v63  ;;  %v3422_v14 = vpop.permute.xlu1 %3421 }
 0x632   : > { %v3426_v24 = vmul.f32 %v3422_v14, %v6244_v53  ;;  %v3427_v1 = vmul.f32 %v3422_v14, %v6246_v3 }
 0x633   : > { %v3408_v42 = vadd.f32 %v3404_v5, %v3388_v54  ;;  %v3409_v6 = vadd.f32 %v3405_v29, %v3389_v62 }
 0x634   : > { %v3417_v56 = vpop.permute.xlu0 %3416  ;;  %v3430_v12 = vadd.f32 %v3426_v24, %v3410_v25  ;;  %v3431_v61 = vadd.f32 %v3427_v1, %v3411_v22 }
 0x635   : > { %v3424_v63 = vmul.f32 %v3417_v56, %v6228_v23  ;;  %v3425_v59 = vmul.f32 %v3417_v56, %v6230_v46  ;;  %v3446_v53 = vpop.permute.xlu1 %3445 }
 0x637   : > { %v3428_v58 = vadd.f32 %v3424_v63, %v3408_v42  ;;  %v3429_v16 = vadd.f32 %v3425_v59, %v3409_v6 }
 0x638   : > { %v3441_v3 = vpop.permute.xlu0 %3440 }
 0x639   : > { %v3434_v34 = vpack.c.bf16 %v3430_v12, %v3428_v58  ;;  %v3435_v2 = vpack.c.bf16 %v3431_v61, %v3429_v16  ;;  %v3559_v10 = vpop.permute.xlu1 %3558 }
 0x63b   : > { %3470 = vmatprep.subr.bf16.mxu1 %v3435_v2 }
 0x63c   : > { %3471 = vmatpush1.bf16.msra.mxu1 %v3434_v34  ;;  %v3554_v26 = vpop.permute.xlu0 %3553 }
 0x63d   : > { %v3549_v35 = vpop.permute.xlu1 %3548 }
 0x63f   : > { %4088 = vmatmul.mubr.msk.bf16.vlgmr.msra.gmra.mxu1 %vm6588_vm10, %v4480_v32 }
 0x640   : > { %3625 = vmatprep.mubr.bf16.mxu1 %v6537_v21  ;;  %v3544_v43 = vpop.permute.xlu0 %3543 }
 0x641   : > { %v3539_v45 = vpop.permute.xlu1 %3538 }
 0x644   : > { %v3534_v7 = vpop.permute.xlu0 %3533 }
 0x645   : > { %v3529_v37 = vpop.permute.xlu1 %3528 }
 0x648   : > { %v3524_v54 = vpop.permute.xlu0 %3523 }
 0x6ff   : > { %v3490_v23 = vpop.f32.mrf.mxu1 }
 0x700   : > { %v3491_v39 = vadd.f32 %v3490_v23, %v3441_v3 }
 0x701   : > { %v3492_v46 = vpop.f32.mrf.mxu1 }
 0x702   : > { %v3493_v8 = vadd.f32 %v3492_v46, %v3441_v3  ;;  %v6365_v11 = vadd.f32 %v4537_v51, %v3491_v39 }
 0x703   : > { %v3494_v50 = vpop.f32.mrf.mxu1 }
 0x704   : > { %v3495_v48 = vadd.f32 %v3494_v50, %v3446_v53  ;;  %v6359_v55 = vadd.f32 %v4535_v38, %v3493_v8 }
 0x705   : > { %v3496_v60 = vpop.f32.mrf.mxu1 }
 0x706   : > { %v3497_v33 = vadd.f32 %v3496_v60, %v3446_v53  ;;  %v6356_v57 = vadd.f32 %v4534_v4, %v3495_v48 }
 0x708   : > { %v6362_v15 = vadd.f32 %v4536_v49, %v3497_v33  ;;  %v3511_v31 = vpack.c.bf16 %v6356_v57, %v6365_v11 }
 0x70a   : > { %v3512_v36 = vpack.c.bf16 %v6362_v15, %v6359_v55 }
 0x70c   : > { %3607 = vmatprep.subr.bf16.mxu1 %v3512_v36 }
 0x70d   : > { %3608 = vmatpush1.bf16.msra.mxu1 %v3511_v31 }
 0x710   : > { %4093 = vmatmul.mubr.msk.bf16.vlgmr.msra.gmra.mxu1 %vm6589_vm12, %v4481_v19 }
 0x711   : > { %3635 = vmatprep.mubr.bf16.mxu1 %v6537_v21 }
 0x718   : > { %4094 = vmatmul.mubr.msk.bf16.gmra.mxu1 %vm6590_vm2, %v4482_v17 }
 0x719   : > { %3645 = vmatprep.mubr.bf16.mxu1 %v6537_v21 }
 0x720   : > { %4095 = vmatmul.mubr.msk.bf16.gmra.mxu1 %vm6591_vm13, %v4483_v28 }
 0x721   : > { %3655 = vmatprep.mubr.bf16.mxu1 %v6537_v21 }
 0x728   : > { %4096 = vmatmul.mubr.msk.bf16.gmra.mxu1 %vm6592_vm5, %v4484_v20 }
 0x7d0   : > { %v6390_v40 = vpop.f32.mrf.mxu1 }
 0x7d2   : > { %v3629_v9 = vpop.f32.mrf.mxu1 }
 0x7d3   : > { %v6392_v24 = vadd.f32 %v3629_v9, %v3524_v54 }
 0x7d4   : > { %v3631_v47 = vpop.f32.mrf.mxu1 }
 0x7d5   : > { %v6394_v1 = vadd.f32 %v3631_v47, %v3529_v37  ;;  %vm3667_vm2 = vcmp.ge.f32.partialorder %v6392_v24, 0.0 }
 0x7d6   : > { %v3633_v52 = vpop.f32.mrf.mxu1 }
 0x7d7   : > { %v6396_v25 = vadd.f32 %v3633_v52, %v3529_v37  ;;  %v3628_v52 = vadd.f32 %v6390_v40, %v3524_v54  ;;  %vm3668_vm13 = vcmp.ge.f32.partialorder %v6394_v1, 0.0  ;;  %v3729_v37 = vpop.permute.xlu0 %3728 }
 0x7d8   : > { %v3637_v0 = vpop.f32.mrf.mxu1 }
 0x7d9   : > { %v6398_v42 = vadd.f32 %v3637_v0, %v3534_v7  ;;  %v3685_v9 = vmul.f32 0.3, %v6396_v25  ;;  %vm3669_vm10 = vcmp.ge.f32.partialorder %v6396_v25, 0.0  ;;  %vm3666_vm5 = vcmp.ge.f32.partialorder %v3628_v52, 0.0 }
 0x7da   : > { %v3639_v27 = vpop.f32.mrf.mxu1 }
 0x7db   : > { %v3640_v6 = vadd.f32 %v3639_v27, %v3534_v7  ;;  %v3686_v0 = vmul.f32 0.3, %v6398_v42  ;;  %vm3670_vm12 = vcmp.ge.f32.partialorder %v6398_v42, 0.0  ;;  %v3701_v40 = vsel %vm3669_vm10, %v6396_v25, %v3685_v9 }
 0x7dc   : > { %v3641_v44 = vpop.f32.mrf.mxu1 }
 0x7dd   : > { %v3642_v12 = vadd.f32 %v3641_v44, %v3539_v45  ;;  %v3687_v36 = vmul.f32 0.3, %v3640_v6  ;;  %vm3671_vm15 = vcmp.ge.f32.partialorder %v3640_v6, 0.0 }
 0x7de   : > { %v3643_v30 = vpop.f32.mrf.mxu1 }
 0x7df   : > { %v3644_v61 = vadd.f32 %v3643_v30, %v3539_v45  ;;  %v3688_v17 = vmul.f32 0.3, %v3642_v12  ;;  %vm3672_vm9 = vcmp.ge.f32.partialorder %v3642_v12, 0.0  ;;  %v3703_v44 = vsel %vm3671_vm15, %v3640_v6, %v3687_v36 }
 0x7e0   : > { %v3647_v21 = vpop.f32.mrf.mxu1  ;;  %v3684_v30 = vmul.f32 0.3, %v6394_v1 }
 0x7e1   : > { %v3648_v46 = vadd.f32 %v3647_v21, %v3544_v43  ;;  %v3689_v8 = vmul.f32 0.3, %v3644_v61  ;;  %vm3673_vm1 = vcmp.ge.f32.partialorder %v3644_v61, 0.0  ;;  %v3682_v21 = vmul.f32 0.3, %v3628_v52 }
 0x7e2   : > { %v3649_v41 = vpop.f32.mrf.mxu1  ;;  %v3700_v7 = vsel %vm3668_vm13, %v6394_v1, %v3684_v30 }
 0x7e3   : > { %v3650_v63 = vadd.f32 %v3649_v41, %v3544_v43  ;;  %v3690_v38 = vmul.f32 0.3, %v3648_v46  ;;  %vm3674_vm3 = vcmp.ge.f32.partialorder %v3648_v46, 0.0  ;;  %v3705_v47 = vsel %vm3673_vm1, %v3644_v61, %v3689_v8 }
 0x7e4   : > { %v3651_v18 = vpop.f32.mrf.mxu1  ;;  %v3719_v43 = vpack.c.bf16 %v3705_v47, %v3703_v44  ;;  %v3702_v41 = vsel %vm3670_vm12, %v6398_v42, %v3686_v0 }
 0x7e5   : > { %v3652_v58 = vadd.f32 %v3651_v18, %v3549_v35  ;;  %v3691_v3 = vmul.f32 0.3, %v3650_v63  ;;  %vm3675_vm8 = vcmp.ge.f32.partialorder %v3650_v63, 0.0 }
 0x7e6   : > { %v3653_v5 = vpop.f32.mrf.mxu1 }
 0x7e7   : > { %v3654_v14 = vadd.f32 %v3653_v5, %v3549_v35  ;;  %v3692_v48 = vmul.f32 0.3, %v3652_v58  ;;  %vm3676_vm7 = vcmp.ge.f32.partialorder %v3652_v58, 0.0  ;;  %v3707_v19 = vsel %vm3675_vm8, %v3650_v63, %v3691_v3 }
 0x7e8   : > { %v3657_v29 = vpop.f32.mrf.mxu1  ;;  %v3704_v35 = vsel %vm3672_vm9, %v3642_v12, %v3688_v17 }
 0x7e9   : > { %v3658_v22 = vadd.f32 %v3657_v29, %v3554_v26  ;;  %v3693_v16 = vmul.f32 0.3, %v3654_v14  ;;  %vm3677_vm0 = vcmp.ge.f32.partialorder %v3654_v14, 0.0  ;;  %v3708_v28 = vsel %vm3676_vm7, %v3652_v58, %v3692_v48 }
 0x7ea   : > { %v3659_v13 = vpop.f32.mrf.mxu1  ;;  %v3718_v18 = vpack.c.bf16 %v3704_v35, %v3702_v41  ;;  %v3698_v29 = vsel %vm3666_vm5, %v3628_v52, %v3682_v21 }
 0x7eb   : > { %v3660_v62 = vadd.f32 %v3659_v13, %v3554_v26  ;;  %v3694_v53 = vmul.f32 0.3, %v3658_v22  ;;  %vm3678_vm14 = vcmp.ge.f32.partialorder %v3658_v22, 0.0  ;;  %v3709_v4 = vsel %vm3677_vm0, %v3654_v14, %v3693_v16  ;;  %v4485_v13 = vld [vmem:[%s6486_s14] sm:$0xff]  }
 0x7ec   : > { %v3661_v56 = vpop.f32.mrf.mxu1  ;;  %v3721_v20 = vpack.c.bf16 %v3709_v4, %v3707_v19  ;;  %v3683_v26 = vmul.f32 0.3, %v6392_v24  ;;  %v3716_v14 = vpack.c.bf16 %v3700_v7, %v3698_v29 }
 0x7ed   : > { %v3662_v59 = vadd.f32 %v3661_v56, %v3559_v10  ;;  %v3695_v2 = vmul.f32 0.3, %v3660_v62  ;;  %vm3679_vm4 = vcmp.ge.f32.partialorder %v3660_v62, 0.0  ;;  %v3710_v49 = vsel %vm3678_vm14, %v3658_v22, %v3694_v53  ;;  %v3734_v22 = vpop.permute.xlu1 %3733 }
 0x7ee   : > { %v3663_v34 = vpop.f32.mrf.mxu1  ;;  %v3699_v45 = vsel %vm3667_vm2, %v6392_v24, %v3683_v26 }
 0x7ef   : > { %vm3680_vm6 = vcmp.ge.f32.partialorder %v3662_v59, 0.0  ;;  %v3696_v32 = vmul.f32 0.3, %v3662_v59  ;;  %v3664_v23 = vadd.f32 %v3663_v34, %v3559_v10  ;;  %v3711_v60 = vsel %vm3679_vm4, %v3660_v62, %v3695_v2 }
 0x7f0   : > { %v3706_v10 = vsel %vm3674_vm3, %v3648_v46, %v3690_v38  ;;  %v3717_v5 = vpack.c.bf16 %v3701_v40, %v3699_v45 }
 0x7f1   : > { %vm3681_vm11 = vcmp.ge.f32.partialorder %v3664_v23, 0.0  ;;  %v3697_v50 = vmul.f32 0.3, %v3664_v23  ;;  %v3712_v39 = vsel %vm3680_vm6, %v3662_v59, %v3696_v32  ;;  %v3720_v27 = vpack.c.bf16 %v3708_v28, %v3706_v10 }
 0x7f2   : > { %v3722_v31 = vpack.c.bf16 %v3712_v39, %v3710_v49  ;;  %vm3741_vm6 = vcmask 523264  }
 0x7f3   : > { %v3713_v33 = vsel %vm3681_vm11, %v3664_v23, %v3697_v50 }
 0x7f4   : > { %v3723_v51 = vpack.c.bf16 %v3713_v33, %v3711_v60 }
 0x7f6   : > { %3753 = vmatprep.subr.bf16.mxu0 %v3723_v51 }
 0x7f7   : > { %3754 = vmatpush1.bf16.msra.mxu0 %v3722_v31 }
 0x7f8   : > { %3755 = vmatprep.subr.bf16.mxu0 %v3721_v20 }
 0x7fb   : > { %3756 = vmatpush1.bf16.msra.mxu0 %v3720_v27 }
 0x7fc   : > { %3757 = vmatprep.subr.bf16.mxu0 %v3719_v43 }
 0x7ff   : > { %3758 = vmatpush1.bf16.msra.mxu0 %v3718_v18 }
 0x800   : > { %3759 = vmatprep.subr.bf16.mxu0 %v3717_v5 }
 0x803   : > { %3760 = vmatpush1.bf16.msra.mxu0 %v3716_v14 }
 0x806   : > { %4098 = vmatmul.mubr.msk.bf16.vlgmr.msra.gmra.mxu0 %vm3741_vm6, %v4485_v13 }
 0x8c6   : > { %v3779_v54 = vpop.f32.mrf.mxu0 }
 0x8c7   : > { %v3780_v62 = vadd.f32 %v3779_v54, %v3729_v37 }
 0x8c8   : > { %v3781_v24 = vpop.f32.mrf.mxu0 }
 0x8c9   : > { %v3788_v1 = vadd.f32 %v3780_v62, %v6365_v11  ;;  %v3782_v25 = vadd.f32 %v3781_v24, %v3729_v37 }
 0x8ca   : > { %v3783_v56 = vpop.f32.mrf.mxu0 }
 0x8cb   : > { %3792 = vst [vmem:[%s514_s27] sm:$0xff] %v3788_v1  ;;  %v3789_v42 = vadd.f32 %v3782_v25, %v6359_v55  ;;  %v3784_v6 = vadd.f32 %v3783_v56, %v3734_v22 }
 0x8cc   : > { %v3785_v63 = vpop.f32.mrf.mxu0 }
 0x8cd   : > { %3793 = vst [vmem:[%s514_s27 + $0x8] sm:$0xff] %v3789_v42  ;;  %v3790_v59 = vadd.f32 %v3784_v6, %v6356_v57  ;;  %v3786_v12 = vadd.f32 %v3785_v63, %v3734_v22 }
 0x8cf   : > { %3794 = vst [vmem:[%s514_s27 + $0x10] sm:$0xff] %v3790_v59  ;;  %v3791_v11 = vadd.f32 %v3786_v12, %v6362_v15 }
 0x8d1   : > { %3795 = vst [vmem:[%s514_s27 + $0x18] sm:$0xff] %v3791_v11 }
 0x8d2   : > { %4551 = shalt.err (!%p4548_p3)
}
 0x8d3   : > { %s4552_s20 = scalar_lea.hbm %s6429_s29, 512  ;;  %s4556_s28 = scalar_lea.hbm %s6488_s16, 1024 }
 0x8d4   : > { %p4553_p4 = scmp.ne.s32.totalorder %s6429_s29, %s4552_s20  ;;  %p4557_p9 = scmp.lt.s32.totalorder %s6429_s29, %s6488_s16 }
 0x8d5   : > { %p4558_p10 = scmp.lt.s32.totalorder %s4556_s28, %s4552_s20 }
 0x8d6   : > { %p4554_p7 = pnand %p4553_p4, %p4746_p5 }
 0x8d7   : > { %p4559_p11 = por %p4558_p10, %p4557_p9 }
 0x8d8   : > { %p4555_p8 = pneg %p4554_p7 }
 0x8da   : > { %p4560_p12 = pnand %p4559_p11, %p4555_p8 }
 0x8dc   : > { %4563 = shalt.err (!%p4560_p12)
}
 0x8dd   : > { %s4622_s25 = smov 256   ;;  %s6593_s19 = smov 16  }
 0x8de   : > { %4166 = dma.vmem_to_hbm [thread:$0]  (%p4746_p5), %s6423_s17, 512, %s6429_s29, %s6431_s18, %s4622_s25, %s4622_s25, %s6593_s19  }
 0x8df PF: > { %s6594_s26 = sld [smem:[#allocation5_spill]]  ;;  %p4172_p13 = scmp.ge.s32.totalorder %s4598_s24, 2 }
 0x8e1   : > { %p4169_p0 = pnand %p4172_p13, %p4750_p6 }
 0x8e3   : > { %p4170_p1 = pneg %p4169_p0 }
 0x8e5   : > { %s3825_s23 = sand.u32 1, %s6594_s26  }
 0x8e6   : > { %s3826_s20 = scalar_lea.sflag [#allocation3], %s3825_s23 }
 0x8e7   : > { %4581 = dma.done.wait (%p4170_p1), %s3826_s20, 512  }
 0x8e8   : > { %4583 = vsyncadd (%p4170_p1), %s3826_s20, 4294966784  ;;  %s6596_s24 = sld [smem:[#allocation7_spill]]  ;;  %s6599_s21 = smov %s4590_s22 }
 0x8e9   : > { %s6597_s0 = sld [smem:[#allocation6_spill]] }
 0x8ea   : > { %s6598_s23 = sld [smem:[#allocation8_spill]] }
 0x8ee   : > { %p26_p2 = scmp.ge.s32.totalorder %s6596_s24, 4  }
 0x8ef   : > { %s6600_s22 = smov %s6597_s0 }
 0x8f0   :  { %28 = sbr.rel (!%p26_p2) target bundleno = 5 (0x5), region = 119 }
 0x8f5   :  { %3831 = vsyncpa [#allocation3], 1 }
 0x8f6   :  { %3833 = vsyncpa [#allocation3 + $0x1], 1 }

</bundles_post_ra>
